<compile_context>
chip_gen: v7x
topology: tpu7x:2x2x1
jax: 0.10.0
libtpu: 0.0.40
codegen_flags: <defaults>
</compile_context>

<pallas_src>
import math

import jax
import jax.numpy as jnp
from jax.experimental import pallas as pl
from jax.experimental.pallas import tpu as pltpu


# --------------------------------------------------------------------------- #
# Fused Pallas kernel (one batch element per grid step)
# --------------------------------------------------------------------------- #
def _seg_head_kernel(x0_ref, x1_ref, x2_ref,      # (1, H*W, Cin)  bf16 per level
                     pw_ref, pb_ref,              # (3, Cin, P) bf16 / (3, 1, P) f32
                     w1_ref, b1_ref,              # (3, 3, 3P, C1) bf16 / (1, C1) f32
                     w2_ref, b2_ref,              # (3, 3, C1, C2) bf16 / (1, C2) f32
                     w3_ref, b3_ref,              # (1, C2) f32 / (1, 1) f32
                     uh_ref, uwt_ref,             # (Ho, H) bf16 / (W, Wo) bf16
                     o_ref,                       # (1, Ho, Wo) f32  (lane-dense)
                     fused_ref, h1_ref):          # flat zero-bordered VMEM scratch
    HW = x0_ref.shape[1]
    P = pw_ref.shape[2]
    C1 = w1_ref.shape[3]
    C2 = w2_ref.shape[3]
    H = uh_ref.shape[1]
    W = uwt_ref.shape[0]
    PAD = W + 1                    # top/bottom halo row + 1 elem so the dx==0
                                   # tap slice never underflows the buffer
    CF = fused_ref.shape[1]        # = 3 * P

    # -- border-only zeroing (two thin slabs per buffer, every step -> safe
    #    under megacore 'parallel' batch sharding); interior is overwritten.
    fused_ref[0:PAD, :] = jnp.zeros((PAD, CF), jnp.bfloat16)
    fused_ref[PAD + HW:, :] = jnp.zeros((PAD, CF), jnp.bfloat16)
    h1_ref[0:PAD, :] = jnp.zeros((PAD, C1), jnp.bfloat16)
    h1_ref[PAD + HW:, :] = jnp.zeros((PAD, C1), jnp.bfloat16)

    # -- per-level 1x1 conv (+folded BN) + ReLU, concat into the fused scratch.
    #    Operand is already 2-D (H*W, Cin): no in-kernel reshape / relayout.
    for l, x_ref in enumerate((x0_ref, x1_ref, x2_ref)):
        y = jnp.dot(x_ref[0], pw_ref[l], preferred_element_type=jnp.float32)
        y = jnp.maximum(y + pb_ref[l], 0.0)                       # f32 bias+ReLU
        fused_ref[PAD:PAD + HW, l * P:(l + 1) * P] = y.astype(jnp.bfloat16)

    # Horizontal wrap masks for the flat conv (the flat layout has no left/right
    # halo columns; contributions that wrapped across a row edge are dropped).
    col = jax.lax.broadcasted_iota(jnp.int32, (HW, 1), 0) % W
    keep_left = col > 0            # tap dx == 0 is invalid at x == 0
    keep_right = col < (W - 1)     # tap dx == 2 is invalid at x == W - 1

    # -- 3x3 conv (+folded BN) + ReLU over the flat zero-bordered scratch.
    #    Tap (dy, dx) for output pixel o = y*W + x reads scratch row
    #    PAD + (dy-1)*W + (dx-1) + o  ==  dy*W + dx + o, i.e. each tap is a
    #    single CONTIGUOUS static slice fed straight to the MXU (no staging
    #    copy, no reshape); accumulation stays a traced f32 value.
    def conv3x3_bn_relu(src_ref, w_ref, b_ref, cout):
        acc = jnp.zeros((HW, cout), jnp.float32)
        for dy in range(3):
            for dx in range(3):
                base = dy * W + dx                        # static offset
                xs = src_ref[base:base + HW, :]           # (HW, cin) bf16
                r = jnp.dot(xs, w_ref[dy, dx], preferred_element_type=jnp.float32)
                if dx == 0:
                    r = jnp.where(keep_left, r, 0.0)
                elif dx == 2:
                    r = jnp.where(keep_right, r, 0.0)
                acc = acc + r
        return jnp.maximum(acc + b_ref[...], 0.0)         # f32

    h1 = conv3x3_bn_relu(fused_ref, w1_ref, b1_ref, C1)           # (HW, C1)
    h1_ref[PAD:PAD + HW, :] = h1.astype(jnp.bfloat16)
    h2 = conv3x3_bn_relu(h1_ref, w2_ref, b2_ref, C2)              # (HW, C2)

    # -- final 1x1 conv to num_classes == 1: VPU multiply + lane reduction
    #    (keeps the single-output-column matmul off the MXU).
    logits = jnp.sum(h2 * w3_ref[...], axis=-1, keepdims=True) + b3_ref[...]  # (HW, 1)
    logits = logits.reshape(H, W).astype(jnp.bfloat16)

    # -- separable bilinear x`scale` upsample: bf16 MXU operands, f32 accum.
    tmp = jnp.dot(logits, uwt_ref[...], preferred_element_type=jnp.float32)   # (H, Wo)
    o_ref[0] = jnp.dot(uh_ref[...], tmp.astype(jnp.bfloat16),
                       preferred_element_type=jnp.float32)                    # (Ho, Wo)


# --------------------------------------------------------------------------- #
# pallas_call wrapper
# --------------------------------------------------------------------------- #
def _batch_spec(shape):
    n = len(shape)
    return pl.BlockSpec(shape, lambda b, _n=n: (b,) + (0,) * (_n - 1))


def _full_spec(shape):
    n = len(shape)
    return pl.BlockSpec(shape, lambda b, _n=n: (0,) * _n)


def _nbytes(shape, dtype):
    return math.prod(shape) * jnp.dtype(dtype).itemsize


def _vmem_capacity_bytes():
    try:
        info = pltpu.get_tpu_info()
        return int(getattr(info, "vmem_capacity_bytes", 128 * 2 ** 20))
    except Exception:
        return 128 * 2 ** 20   # v5e / v6e physical VMEM


def seg_head_apply(feats_flat_bf16, pw, pb, w1, b1, w2, b2, w3, b3, uh, uwt, *, H, W):
    B, HW, Cin = feats_flat_bf16[0].shape
    assert HW == H * W
    P = pw.shape[2]
    C1 = w1.shape[3]
    C2 = w2.shape[3]
    Ho, Wo = uh.shape[0], uwt.shape[1]
    NBUF = HW + 2 * (W + 1)        # flat padded scratch length

    weights = (pw, pb, w1, b1, w2, b2, w3, b3, uh, uwt)
    in_specs = ([_batch_spec((1, HW, Cin)) for _ in range(3)]
                + [_full_spec(t.shape) for t in weights])
    scratch_shapes = [pltpu.VMEM((NBUF, 3 * P), jnp.bfloat16),
                      pltpu.VMEM((NBUF, C1), jnp.bfloat16)]

    # VMEM budget: double-buffered per-step blocks + scratch + live f32 temps,
    # capped at ~80% of this generation's physical VMEM (leaves Mosaic headroom
    # on 64 MiB v7x, does not carry that ceiling to 128 MiB v5e/v6e).
    block_bytes = (3 * _nbytes((1, HW, Cin), jnp.bfloat16)
                   + sum(_nbytes(t.shape, t.dtype) for t in weights)
                   + _nbytes((1, Ho, Wo), jnp.float32))
    scratch_bytes = (_nbytes((NBUF, 3 * P), jnp.bfloat16)
                     + _nbytes((NBUF, C1), jnp.bfloat16))
    temp_bytes = (6 * _nbytes((HW, max(3 * P, C1, C2)), jnp.float32)
                  + 2 * _nbytes((Ho, Wo), jnp.float32))
    est = 2 * block_bytes + scratch_bytes + temp_bytes
    cap = _vmem_capacity_bytes()
    vmem_limit = int(min(max(2 * est, 32 * 2 ** 20), int(0.8 * cap)))

    return pl.pallas_call(
        _seg_head_kernel,
        out_shape=jax.ShapeDtypeStruct((B, Ho, Wo), jnp.float32),
        grid=(B,),
        in_specs=in_specs,
        out_specs=_batch_spec((1, Ho, Wo)),
        scratch_shapes=scratch_shapes,
        compiler_params=pltpu.CompilerParams(
            dimension_semantics=("parallel",),
            vmem_limit_bytes=vmem_limit),
    )(*feats_flat_bf16, *weights)


# --------------------------------------------------------------------------- #
# Parameter setup glue (plain JAX)
# --------------------------------------------------------------------------- #
def fold_conv_bn(w, b, gamma, beta, mean, var, eps=1e-5):
    """Fold eval-mode BatchNorm into the preceding conv (out-channel last)."""
    scale = gamma / jnp.sqrt(var + eps)
    return w * scale, (b - mean) * scale + beta


def bilinear_upsample_matrix(n_in, scale):
    """Row-stochastic interpolation matrix matching PyTorch bilinear,
    align_corners=False (half-pixel centers)."""
    n_out = n_in * scale
    dst = jnp.arange(n_out, dtype=jnp.float32)
    src = (dst + 0.5) / scale - 0.5
    src = jnp.maximum(src, 0.0)
    lo = jnp.minimum(jnp.floor(src).astype(jnp.int32), n_in - 1)
    hi = jnp.minimum(lo + 1, n_in - 1)
    frac = src - lo.astype(jnp.float32)
    rows = jnp.arange(n_out)
    m = jnp.zeros((n_out, n_in), jnp.float32)
    m = m.at[rows, lo].add(1.0 - frac)
    m = m.at[rows, hi].add(frac)
    return m


def _bn_init(key, c):
    k1, k2, k3, k4 = jax.random.split(key, 4)
    return dict(
        gamma=1.0 + 0.1 * jax.random.normal(k1, (c,), jnp.float32),
        beta=0.1 * jax.random.normal(k2, (c,), jnp.float32),
        mean=0.1 * jax.random.normal(k3, (c,), jnp.float32),
        var=1.0 + 0.5 * jax.random.uniform(k4, (c,), jnp.float32),
    )


def init_params(key, cin, proj_dim, c1, c2, num_classes):
    keys = jax.random.split(key, 16)
    params = {"proj": []}
    for l in range(3):
        kw, kb, kbn = jax.random.split(keys[l], 3)
        params["proj"].append(dict(
            w=0.05 * jax.random.normal(kw, (cin, proj_dim), jnp.float32),
            b=0.05 * jax.random.normal(kb, (proj_dim,), jnp.float32),
            bn=_bn_init(kbn, proj_dim),
        ))
    kw1, kb1, kbn1 = jax.random.split(keys[4], 3)
    params["conv1"] = dict(
        w=0.05 * jax.random.normal(kw1, (3, 3, 3 * proj_dim, c1), jnp.float32),
        b=0.05 * jax.random.normal(kb1, (c1,), jnp.float32),
        bn=_bn_init(kbn1, c1))
    kw2, kb2, kbn2 = jax.random.split(keys[5], 3)
    params["conv2"] = dict(
        w=0.05 * jax.random.normal(kw2, (3, 3, c1, c2), jnp.float32),
        b=0.05 * jax.random.normal(kb2, (c2,), jnp.float32),
        bn=_bn_init(kbn2, c2))
    kw3, kb3 = jax.random.split(keys[6], 2)
    params["conv3"] = dict(
        w=0.05 * jax.random.normal(kw3, (c2, num_classes), jnp.float32),
        b=0.05 * jax.random.normal(kb3, (num_classes,), jnp.float32))
    return params


# --------------------------------------------------------------------------- #
# Forward pass (matches DINOv2SegHeadV2.forward after the backbone)
# --------------------------------------------------------------------------- #
def seghead_forward(feats_nchw, params, scale=14):
    B, Cin, H, W = feats_nchw[0].shape
    # NCHW -> NHWC -> flat (B, H*W, Cin); bf16 activations for the MXU.
    feats = [jnp.transpose(f, (0, 2, 3, 1)).reshape(B, H * W, Cin).astype(jnp.bfloat16)
             for f in feats_nchw]

    # Fold eval-mode BN into the convs; matmul weights -> bf16, biases stay f32.
    pws, pbs = [], []
    for p in params["proj"]:
        w, b = fold_conv_bn(p["w"], p["b"], **p["bn"])
        pws.append(w)
        pbs.append(b)
    pw = jnp.stack(pws).astype(jnp.bfloat16)                  # (3, Cin, P)
    pb = jnp.stack(pbs)[:, None, :].astype(jnp.float32)       # (3, 1, P)

    w1, b1 = fold_conv_bn(params["conv1"]["w"], params["conv1"]["b"],
                          **params["conv1"]["bn"])
    w2, b2 = fold_conv_bn(params["conv2"]["w"], params["conv2"]["b"],
                          **params["conv2"]["bn"])
    w1 = w1.astype(jnp.bfloat16)
    w2 = w2.astype(jnp.bfloat16)
    b1 = b1.reshape(1, -1).astype(jnp.float32)
    b2 = b2.reshape(1, -1).astype(jnp.float32)

    w3 = params["conv3"]["w"]                                  # (C2, num_classes)
    # TODO(synk): the fused kernel emits a lane-dense (B, Ho, Wo) map, so only
    # the module default num_classes=1 is supported by this path.
    assert w3.shape[1] == 1, "fused kernel supports num_classes == 1 only"
    w3r = w3.T.astype(jnp.float32)                             # (1, C2)
    b3 = params["conv3"]["b"].reshape(1, 1).astype(jnp.float32)

    uh = bilinear_upsample_matrix(H, scale).astype(jnp.bfloat16)      # (scale*H, H)
    uwt = bilinear_upsample_matrix(W, scale).T.astype(jnp.bfloat16)   # (W, scale*W)

    out = seg_head_apply(feats, pw, pb, w1, b1, w2, b2, w3r, b3, uh, uwt, H=H, W=W)
    # lane-dense (B, Ho, Wo) -> PyTorch NCHW (B, 1, Ho, Wo)
    return out[:, None, :, :]


# --------------------------------------------------------------------------- #
# Pure-JAX f32 reference (for a correctness spot-check)
# --------------------------------------------------------------------------- #
def _reference_forward(feats_nchw, params, scale):
    feats = [jnp.transpose(f, (0, 2, 3, 1)).astype(jnp.float32)
             for f in feats_nchw]
    projs = []
    for f, p in zip(feats, params["proj"]):
        w, b = fold_conv_bn(p["w"], p["b"], **p["bn"])
        projs.append(jax.nn.relu(jnp.einsum("bhwc,cp->bhwp", f, w) + b))
    fused = jnp.concatenate(projs, axis=-1)

    def conv3x3(x, w, b):
        H, W = x.shape[1], x.shape[2]
        xp = jnp.pad(x, ((0, 0), (1, 1), (1, 1), (0, 0)))
        acc = 0.0
        for dy in range(3):
            for dx in range(3):
                acc = acc + jnp.einsum("bhwc,cd->bhwd",
                                       xp[:, dy:dy + H, dx:dx + W, :], w[dy, dx])
        return jax.nn.relu(acc + b)

    w1, b1 = fold_conv_bn(params["conv1"]["w"], params["conv1"]["b"],
                          **params["conv1"]["bn"])
    h1 = conv3x3(fused, w1, b1)
    w2, b2 = fold_conv_bn(params["conv2"]["w"], params["conv2"]["b"],
                          **params["conv2"]["bn"])
    h2 = conv3x3(h1, w2, b2)
    logits = jnp.einsum("bhwc,cn->bhwn", h2, params["conv3"]["w"]) + params["conv3"]["b"]
    H, W = logits.shape[1], logits.shape[2]
    uh = bilinear_upsample_matrix(H, scale)
    uw = bilinear_upsample_matrix(W, scale)
    up = jnp.einsum("oh,bhwn,pw->bopn", uh, logits, uw)
    return jnp.transpose(up, (0, 3, 1, 2))


# --------------------------------------------------------------------------- #
if __name__ == "__main__":
    # Small stand-ins for the real 768-ch 37x37 features (P=128, C1=256, C2=128).
    # NOTE: benchmark / tune with the real shapes; the toy case only checks
    # correctness of the fused path.
    B, CIN, HF, WF = 2, 64, 8, 8
    PROJ, C1, C2, NUM_CLASSES, SCALE = 32, 64, 32, 1, 14

    key = jax.random.PRNGKey(0)
    kf, kp = jax.random.split(key)
    feat_keys = jax.random.split(kf, 3)
    # synthetic multi-level backbone features (NCHW, as timm features_only emits)
    feats_nchw = [jax.random.normal(k, (B, CIN, HF, WF), jnp.float32)
                  for k in feat_keys]
    params = init_params(kp, CIN, PROJ, C1, C2, NUM_CLASSES)

    out = jax.block_until_ready(seghead_forward(feats_nchw, params, scale=SCALE))

    assert out.shape == (B, NUM_CLASSES, HF * SCALE, WF * SCALE), out.shape
    assert bool(jnp.all(jnp.isfinite(out)))

    # spot-check against the pure-JAX f32 reference (kernel uses bf16 MXU
    # operands, so allow a loose tolerance)
    ref = jax.block_until_ready(_reference_forward(feats_nchw, params, SCALE))
    rel_l2 = float(jnp.linalg.norm(out - ref) / (jnp.linalg.norm(ref) + 1e-12))
    assert rel_l2 < 5e-2, f"rel L2 error too large: {rel_l2}"

    print("KERNEL_OK")
</pallas_src>

<mosaic_0001>
module attributes {stable_mosaic.version = 11 : i64} {
  func.func @_seg_head_kernel(%arg0: i32, %arg1: memref<1x64x64xbf16, #tpu.memory_space<vmem>>, %arg2: memref<1x64x64xbf16, #tpu.memory_space<vmem>>, %arg3: memref<1x64x64xbf16, #tpu.memory_space<vmem>>, %arg4: memref<3x64x32xbf16, #tpu.memory_space<vmem>>, %arg5: memref<3x1x32xf32, #tpu.memory_space<vmem>>, %arg6: memref<3x3x96x64xbf16, #tpu.memory_space<vmem>>, %arg7: memref<1x64xf32, #tpu.memory_space<vmem>>, %arg8: memref<3x3x64x32xbf16, #tpu.memory_space<vmem>>, %arg9: memref<1x32xf32, #tpu.memory_space<vmem>>, %arg10: memref<1x32xf32, #tpu.memory_space<vmem>>, %arg11: memref<1x1xf32, #tpu.memory_space<vmem>>, %arg12: memref<112x8xbf16, #tpu.memory_space<vmem>>, %arg13: memref<8x112xbf16, #tpu.memory_space<vmem>>, %arg14: memref<1x112x112xf32, #tpu.memory_space<vmem>>, %arg15: memref<82x96xbf16, #tpu.memory_space<vmem>>, %arg16: memref<82x64xbf16, #tpu.memory_space<vmem>>) attributes {dimension_semantics = [#tpu.dimension_semantics<parallel>], iteration_bounds = array<i64: 2>, scalar_prefetch = 0 : i64, scratch_operands = 2 : i64, tpu.core_type = #tpu.core_type<tc>, window_params = [{transform_indices = @transform_0, window_bounds = array<i64: 1, 64, 64>}, {transform_indices = @transform_1, window_bounds = array<i64: 1, 64, 64>}, {transform_indices = @transform_2, window_bounds = array<i64: 1, 64, 64>}, {pipeline_mode = #tpu.pipeline_mode<synchronous>, transform_indices = @transform_3, window_bounds = array<i64: 3, 64, 32>}, {pipeline_mode = #tpu.pipeline_mode<synchronous>, transform_indices = @transform_4, window_bounds = array<i64: 3, 1, 32>}, {pipeline_mode = #tpu.pipeline_mode<synchronous>, transform_indices = @transform_5, window_bounds = array<i64: 3, 3, 96, 64>}, {pipeline_mode = #tpu.pipeline_mode<synchronous>, transform_indices = @transform_6, window_bounds = array<i64: 1, 64>}, {pipeline_mode = #tpu.pipeline_mode<synchronous>, transform_indices = @transform_7, window_bounds = array<i64: 3, 3, 64, 32>}, {pipeline_mode = #tpu.pipeline_mode<synchronous>, transform_indices = @transform_8, window_bounds = array<i64: 1, 32>}, {pipeline_mode = #tpu.pipeline_mode<synchronous>, transform_indices = @transform_9, window_bounds = array<i64: 1, 32>}, {pipeline_mode = #tpu.pipeline_mode<synchronous>, transform_indices = @transform_10, window_bounds = array<i64: 1, 1>}, {pipeline_mode = #tpu.pipeline_mode<synchronous>, transform_indices = @transform_11, window_bounds = array<i64: 112, 8>}, {pipeline_mode = #tpu.pipeline_mode<synchronous>, transform_indices = @transform_12, window_bounds = array<i64: 8, 112>}, {transform_indices = @transform_13, window_bounds = array<i64: 1, 112, 112>}]} {
    %cst = arith.constant 0.000000e+00 : bf16
    %0 = vector.broadcast %cst : bf16 to vector<9x96xbf16>
    %c0 = arith.constant 0 : index
    %c0_0 = arith.constant 0 : index
    %1 = vector.load %arg15[%c0, %c0_0] : memref<82x96xbf16, #tpu.memory_space<vmem>>, vector<9x96xbf16>
    tpu.vector_store %arg15[%c0, %c0_0], %0 {strides = array<i32>} : memref<82x96xbf16, #tpu.memory_space<vmem>>, vector<9x96xbf16>,
    %cst_1 = arith.constant 0.000000e+00 : bf16
    %2 = vector.broadcast %cst_1 : bf16 to vector<9x96xbf16>
    %c73 = arith.constant 73 : index
    %c0_2 = arith.constant 0 : index
    %3 = vector.load %arg15[%c73, %c0_2] : memref<82x96xbf16, #tpu.memory_space<vmem>>, vector<9x96xbf16>
    tpu.vector_store %arg15[%c73, %c0_2], %2 {strides = array<i32>} : memref<82x96xbf16, #tpu.memory_space<vmem>>, vector<9x96xbf16>,
    %cst_3 = arith.constant 0.000000e+00 : bf16
    %4 = vector.broadcast %cst_3 : bf16 to vector<9x64xbf16>
    %c0_4 = arith.constant 0 : index
    %c0_5 = arith.constant 0 : index
    %5 = vector.load %arg16[%c0_4, %c0_5] : memref<82x64xbf16, #tpu.memory_space<vmem>>, vector<9x64xbf16>
    tpu.vector_store %arg16[%c0_4, %c0_5], %4 {strides = array<i32>} : memref<82x64xbf16, #tpu.memory_space<vmem>>, vector<9x64xbf16>,
    %cst_6 = arith.constant 0.000000e+00 : bf16
    %6 = vector.broadcast %cst_6 : bf16 to vector<9x64xbf16>
    %c73_7 = arith.constant 73 : index
    %c0_8 = arith.constant 0 : index
    %7 = vector.load %arg16[%c73_7, %c0_8] : memref<82x64xbf16, #tpu.memory_space<vmem>>, vector<9x64xbf16>
    tpu.vector_store %arg16[%c73_7, %c0_8], %6 {strides = array<i32>} : memref<82x64xbf16, #tpu.memory_space<vmem>>, vector<9x64xbf16>,
    %c0_9 = arith.constant 0 : index
    %c0_10 = arith.constant 0 : index
    %c0_11 = arith.constant 0 : index
    %8 = vector.load %arg1[%c0_9, %c0_10, %c0_11] : memref<1x64x64xbf16, #tpu.memory_space<vmem>>, vector<1x64x64xbf16>
    %9 = vector.shape_cast %8 : vector<1x64x64xbf16> to vector<64x64xbf16>
    %c0_12 = arith.constant 0 : index
    %c0_13 = arith.constant 0 : index
    %c0_14 = arith.constant 0 : index
    %10 = vector.load %arg4[%c0_12, %c0_13, %c0_14] : memref<3x64x32xbf16, #tpu.memory_space<vmem>>, vector<1x64x32xbf16>
    %11 = vector.shape_cast %10 : vector<1x64x32xbf16> to vector<64x32xbf16>
    %cst_15 = arith.constant dense<0.000000e+00> : vector<64x32xf32>
    %12 = tpu.matmul %9, %11, %cst_15 {dimension_numbers = #tpu.dot_dimension_numbers<[1], [0], [0], [1], [0, 0, 1, 1], [], []>} : vector<64x64xbf16>, vector<64x32xbf16>, vector<64x32xf32> -> vector<64x32xf32>
    %c0_16 = arith.constant 0 : index
    %c0_17 = arith.constant 0 : index
    %c0_18 = arith.constant 0 : index
    %13 = vector.load %arg5[%c0_16, %c0_17, %c0_18] : memref<3x1x32xf32, #tpu.memory_space<vmem>>, vector<1x1x32xf32>
    %14 = vector.shape_cast %13 : vector<1x1x32xf32> to vector<1x32xf32>
    %15 = vector.broadcast %14 : vector<1x32xf32> to vector<64x32xf32>
    %16 = arith.addf %12, %15 : vector<64x32xf32>
    %cst_19 = arith.constant 0.000000e+00 : f32
    %17 = vector.broadcast %cst_19 : f32 to vector<64x32xf32>
    %18 = arith.maximumf %16, %17 : vector<64x32xf32>
    %19 = arith.truncf %18 : vector<64x32xf32> to vector<64x32xbf16>
    %c9 = arith.constant 9 : index
    %c0_20 = arith.constant 0 : index
    %20 = vector.load %arg15[%c9, %c0_20] : memref<82x96xbf16, #tpu.memory_space<vmem>>, vector<64x32xbf16>
    tpu.vector_store %arg15[%c9, %c0_20], %19 {strides = array<i32>} : memref<82x96xbf16, #tpu.memory_space<vmem>>, vector<64x32xbf16>,
    %c0_21 = arith.constant 0 : index
    %c0_22 = arith.constant 0 : index
    %c0_23 = arith.constant 0 : index
    %21 = vector.load %arg2[%c0_21, %c0_22, %c0_23] : memref<1x64x64xbf16, #tpu.memory_space<vmem>>, vector<1x64x64xbf16>
    %22 = vector.shape_cast %21 : vector<1x64x64xbf16> to vector<64x64xbf16>
    %c1 = arith.constant 1 : index
    %c0_24 = arith.constant 0 : index
    %c0_25 = arith.constant 0 : index
    %23 = vector.load %arg4[%c1, %c0_24, %c0_25] : memref<3x64x32xbf16, #tpu.memory_space<vmem>>, vector<1x64x32xbf16>
    %24 = vector.shape_cast %23 : vector<1x64x32xbf16> to vector<64x32xbf16>
    %cst_26 = arith.constant dense<0.000000e+00> : vector<64x32xf32>
    %25 = tpu.matmul %22, %24, %cst_26 {dimension_numbers = #tpu.dot_dimension_numbers<[1], [0], [0], [1], [0, 0, 1, 1], [], []>} : vector<64x64xbf16>, vector<64x32xbf16>, vector<64x32xf32> -> vector<64x32xf32>
    %c1_27 = arith.constant 1 : index
    %c0_28 = arith.constant 0 : index
    %c0_29 = arith.constant 0 : index
    %26 = vector.load %arg5[%c1_27, %c0_28, %c0_29] : memref<3x1x32xf32, #tpu.memory_space<vmem>>, vector<1x1x32xf32>
    %27 = vector.shape_cast %26 : vector<1x1x32xf32> to vector<1x32xf32>
    %28 = vector.broadcast %27 : vector<1x32xf32> to vector<64x32xf32>
    %29 = arith.addf %25, %28 : vector<64x32xf32>
    %cst_30 = arith.constant 0.000000e+00 : f32
    %30 = vector.broadcast %cst_30 : f32 to vector<64x32xf32>
    %31 = arith.maximumf %29, %30 : vector<64x32xf32>
    %32 = arith.truncf %31 : vector<64x32xf32> to vector<64x32xbf16>
    %c9_31 = arith.constant 9 : index
    %c32 = arith.constant 32 : index
    %33 = vector.load %arg15[%c9_31, %c32] : memref<82x96xbf16, #tpu.memory_space<vmem>>, vector<64x32xbf16>
    tpu.vector_store %arg15[%c9_31, %c32], %32 {strides = array<i32>} : memref<82x96xbf16, #tpu.memory_space<vmem>>, vector<64x32xbf16>,
    %c0_32 = arith.constant 0 : index
    %c0_33 = arith.constant 0 : index
    %c0_34 = arith.constant 0 : index
    %34 = vector.load %arg3[%c0_32, %c0_33, %c0_34] : memref<1x64x64xbf16, #tpu.memory_space<vmem>>, vector<1x64x64xbf16>
    %35 = vector.shape_cast %34 : vector<1x64x64xbf16> to vector<64x64xbf16>
    %c2 = arith.constant 2 : index
    %c0_35 = arith.constant 0 : index
    %c0_36 = arith.constant 0 : index
    %36 = vector.load %arg4[%c2, %c0_35, %c0_36] : memref<3x64x32xbf16, #tpu.memory_space<vmem>>, vector<1x64x32xbf16>
    %37 = vector.shape_cast %36 : vector<1x64x32xbf16> to vector<64x32xbf16>
    %cst_37 = arith.constant dense<0.000000e+00> : vector<64x32xf32>
    %38 = tpu.matmul %35, %37, %cst_37 {dimension_numbers = #tpu.dot_dimension_numbers<[1], [0], [0], [1], [0, 0, 1, 1], [], []>} : vector<64x64xbf16>, vector<64x32xbf16>, vector<64x32xf32> -> vector<64x32xf32>
    %c2_38 = arith.constant 2 : index
    %c0_39 = arith.constant 0 : index
    %c0_40 = arith.constant 0 : index
    %39 = vector.load %arg5[%c2_38, %c0_39, %c0_40] : memref<3x1x32xf32, #tpu.memory_space<vmem>>, vector<1x1x32xf32>
    %40 = vector.shape_cast %39 : vector<1x1x32xf32> to vector<1x32xf32>
    %41 = vector.broadcast %40 : vector<1x32xf32> to vector<64x32xf32>
    %42 = arith.addf %38, %41 : vector<64x32xf32>
    %cst_41 = arith.constant 0.000000e+00 : f32
    %43 = vector.broadcast %cst_41 : f32 to vector<64x32xf32>
    %44 = arith.maximumf %42, %43 : vector<64x32xf32>
    %45 = arith.truncf %44 : vector<64x32xf32> to vector<64x32xbf16>
    %c9_42 = arith.constant 9 : index
    %c64 = arith.constant 64 : index
    %46 = vector.load %arg15[%c9_42, %c64] : memref<82x96xbf16, #tpu.memory_space<vmem>>, vector<64x32xbf16>
    tpu.vector_store %arg15[%c9_42, %c64], %45 {strides = array<i32>} : memref<82x96xbf16, #tpu.memory_space<vmem>>, vector<64x32xbf16>,
    %47 = tpu.iota {dimensions = array<i32: 0>} : vector<64x1xi32>
    %c8_i32 = arith.constant 8 : i32
    %c0_i32 = arith.constant 0 : i32
    %48 = arith.cmpi eq, %c8_i32, %c0_i32 : i32
    %c1_i32 = arith.constant 1 : i32
    %49 = arith.select %48, %c1_i32, %c8_i32 : i32
    %50 = vector.broadcast %49 : i32 to vector<64x1xi32>
    %51 = arith.remsi %47, %50 : vector<64x1xi32>
    %c0_i32_43 = arith.constant 0 : i32
    %52 = vector.broadcast %c0_i32_43 : i32 to vector<64x1xi32>
    %53 = arith.cmpi ne, %51, %52 : vector<64x1xi32>
    %c0_i32_44 = arith.constant 0 : i32
    %54 = vector.broadcast %c0_i32_44 : i32 to vector<64x1xi32>
    %55 = arith.cmpi slt, %51, %54 : vector<64x1xi32>
    %c0_i32_45 = arith.constant 0 : i32
    %56 = arith.cmpi slt, %49, %c0_i32_45 : i32
    %57 = vector.broadcast %56 : i1 to vector<64x1xi1>
    %58 = vector.broadcast %57 : vector<64x1xi1> to vector<64x1xi1>
    %59 = arith.xori %55, %58 : vector<64x1xi1>
    %60 = arith.andi %59, %53 : vector<64x1xi1>
    %61 = vector.broadcast %49 : i32 to vector<64x1xi32>
    %62 = arith.addi %51, %61 : vector<64x1xi32>
    %63 = arith.select %60, %62, %51 : vector<64x1xi1>, vector<64x1xi32>
    %c0_i32_46 = arith.constant 0 : i32
    %64 = vector.broadcast %c0_i32_46 : i32 to vector<64x1xi32>
    %65 = arith.cmpi sgt, %63, %64 : vector<64x1xi32>
    %c7_i32 = arith.constant 7 : i32
    %66 = vector.broadcast %c7_i32 : i32 to vector<64x1xi32>
    %67 = arith.cmpi slt, %63, %66 : vector<64x1xi32>
    %cst_47 = arith.constant 0.000000e+00 : f32
    %68 = vector.broadcast %cst_47 : f32 to vector<64x64xf32>
    %c0_48 = arith.constant 0 : index
    %c0_49 = arith.constant 0 : index
    %69 = vector.load %arg15[%c0_48, %c0_49] : memref<82x96xbf16, #tpu.memory_space<vmem>>, vector<64x96xbf16>
    %c0_50 = arith.constant 0 : index
    %c0_51 = arith.constant 0 : index
    %c0_52 = arith.constant 0 : index
    %c0_53 = arith.constant 0 : index
    %70 = vector.load %arg6[%c0_50, %c0_51, %c0_52, %c0_53] : memref<3x3x96x64xbf16, #tpu.memory_space<vmem>>, vector<1x1x96x64xbf16>
    %71 = vector.shape_cast %70 : vector<1x1x96x64xbf16> to vector<96x64xbf16>
    %cst_54 = arith.constant dense<0.000000e+00> : vector<64x64xf32>
    %72 = tpu.matmul %69, %71, %cst_54 {dimension_numbers = #tpu.dot_dimension_numbers<[1], [0], [0], [1], [0, 0, 1, 1], [], []>} : vector<64x96xbf16>, vector<96x64xbf16>, vector<64x64xf32> -> vector<64x64xf32>
    %cst_55 = arith.constant 0.000000e+00 : f32
    %73 = vector.shape_cast %65 : vector<64x1xi1> to vector<64x1xi1>
    %74 = vector.broadcast %73 : vector<64x1xi1> to vector<64x64xi1>
    %75 = vector.broadcast %cst_55 : f32 to vector<64x64xf32>
    %76 = arith.select %74, %72, %75 : vector<64x64xi1>, vector<64x64xf32>
    %77 = arith.addf %68, %76 : vector<64x64xf32>
    %c1_56 = arith.constant 1 : index
    %c0_57 = arith.constant 0 : index
    %78 = vector.load %arg15[%c1_56, %c0_57] : memref<82x96xbf16, #tpu.memory_space<vmem>>, vector<64x96xbf16>
    %c0_58 = arith.constant 0 : index
    %c1_59 = arith.constant 1 : index
    %c0_60 = arith.constant 0 : index
    %c0_61 = arith.constant 0 : index
    %79 = vector.load %arg6[%c0_58, %c1_59, %c0_60, %c0_61] : memref<3x3x96x64xbf16, #tpu.memory_space<vmem>>, vector<1x1x96x64xbf16>
    %80 = vector.shape_cast %79 : vector<1x1x96x64xbf16> to vector<96x64xbf16>
    %cst_62 = arith.constant dense<0.000000e+00> : vector<64x64xf32>
    %81 = tpu.matmul %78, %80, %cst_62 {dimension_numbers = #tpu.dot_dimension_numbers<[1], [0], [0], [1], [0, 0, 1, 1], [], []>} : vector<64x96xbf16>, vector<96x64xbf16>, vector<64x64xf32> -> vector<64x64xf32>
    %82 = arith.addf %77, %81 : vector<64x64xf32>
    %c2_63 = arith.constant 2 : index
    %c0_64 = arith.constant 0 : index
    %83 = vector.load %arg15[%c2_63, %c0_64] : memref<82x96xbf16, #tpu.memory_space<vmem>>, vector<64x96xbf16>
    %c0_65 = arith.constant 0 : index
    %c2_66 = arith.constant 2 : index
    %c0_67 = arith.constant 0 : index
    %c0_68 = arith.constant 0 : index
    %84 = vector.load %arg6[%c0_65, %c2_66, %c0_67, %c0_68] : memref<3x3x96x64xbf16, #tpu.memory_space<vmem>>, vector<1x1x96x64xbf16>
    %85 = vector.shape_cast %84 : vector<1x1x96x64xbf16> to vector<96x64xbf16>
    %cst_69 = arith.constant dense<0.000000e+00> : vector<64x64xf32>
    %86 = tpu.matmul %83, %85, %cst_69 {dimension_numbers = #tpu.dot_dimension_numbers<[1], [0], [0], [1], [0, 0, 1, 1], [], []>} : vector<64x96xbf16>, vector<96x64xbf16>, vector<64x64xf32> -> vector<64x64xf32>
    %cst_70 = arith.constant 0.000000e+00 : f32
    %87 = vector.shape_cast %67 : vector<64x1xi1> to vector<64x1xi1>
    %88 = vector.broadcast %87 : vector<64x1xi1> to vector<64x64xi1>
    %89 = vector.broadcast %cst_70 : f32 to vector<64x64xf32>
    %90 = arith.select %88, %86, %89 : vector<64x64xi1>, vector<64x64xf32>
    %91 = arith.addf %82, %90 : vector<64x64xf32>
    %c8 = arith.constant 8 : index
    %c0_71 = arith.constant 0 : index
    %92 = vector.load %arg15[%c8, %c0_71] : memref<82x96xbf16, #tpu.memory_space<vmem>>, vector<64x96xbf16>
    %c1_72 = arith.constant 1 : index
    %c0_73 = arith.constant 0 : index
    %c0_74 = arith.constant 0 : index
    %c0_75 = arith.constant 0 : index
    %93 = vector.load %arg6[%c1_72, %c0_73, %c0_74, %c0_75] : memref<3x3x96x64xbf16, #tpu.memory_space<vmem>>, vector<1x1x96x64xbf16>
    %94 = vector.shape_cast %93 : vector<1x1x96x64xbf16> to vector<96x64xbf16>
    %cst_76 = arith.constant dense<0.000000e+00> : vector<64x64xf32>
    %95 = tpu.matmul %92, %94, %cst_76 {dimension_numbers = #tpu.dot_dimension_numbers<[1], [0], [0], [1], [0, 0, 1, 1], [], []>} : vector<64x96xbf16>, vector<96x64xbf16>, vector<64x64xf32> -> vector<64x64xf32>
    %cst_77 = arith.constant 0.000000e+00 : f32
    %96 = vector.shape_cast %65 : vector<64x1xi1> to vector<64x1xi1>
    %97 = vector.broadcast %96 : vector<64x1xi1> to vector<64x64xi1>
    %98 = vector.broadcast %cst_77 : f32 to vector<64x64xf32>
    %99 = arith.select %97, %95, %98 : vector<64x64xi1>, vector<64x64xf32>
    %100 = arith.addf %91, %99 : vector<64x64xf32>
    %c9_78 = arith.constant 9 : index
    %c0_79 = arith.constant 0 : index
    %101 = vector.load %arg15[%c9_78, %c0_79] : memref<82x96xbf16, #tpu.memory_space<vmem>>, vector<64x96xbf16>
    %c1_80 = arith.constant 1 : index
    %c1_81 = arith.constant 1 : index
    %c0_82 = arith.constant 0 : index
    %c0_83 = arith.constant 0 : index
    %102 = vector.load %arg6[%c1_80, %c1_81, %c0_82, %c0_83] : memref<3x3x96x64xbf16, #tpu.memory_space<vmem>>, vector<1x1x96x64xbf16>
    %103 = vector.shape_cast %102 : vector<1x1x96x64xbf16> to vector<96x64xbf16>
    %cst_84 = arith.constant dense<0.000000e+00> : vector<64x64xf32>
    %104 = tpu.matmul %101, %103, %cst_84 {dimension_numbers = #tpu.dot_dimension_numbers<[1], [0], [0], [1], [0, 0, 1, 1], [], []>} : vector<64x96xbf16>, vector<96x64xbf16>, vector<64x64xf32> -> vector<64x64xf32>
    %105 = arith.addf %100, %104 : vector<64x64xf32>
    %c10 = arith.constant 10 : index
    %c0_85 = arith.constant 0 : index
    %106 = vector.load %arg15[%c10, %c0_85] : memref<82x96xbf16, #tpu.memory_space<vmem>>, vector<64x96xbf16>
    %c1_86 = arith.constant 1 : index
    %c2_87 = arith.constant 2 : index
    %c0_88 = arith.constant 0 : index
    %c0_89 = arith.constant 0 : index
    %107 = vector.load %arg6[%c1_86, %c2_87, %c0_88, %c0_89] : memref<3x3x96x64xbf16, #tpu.memory_space<vmem>>, vector<1x1x96x64xbf16>
    %108 = vector.shape_cast %107 : vector<1x1x96x64xbf16> to vector<96x64xbf16>
    %cst_90 = arith.constant dense<0.000000e+00> : vector<64x64xf32>
    %109 = tpu.matmul %106, %108, %cst_90 {dimension_numbers = #tpu.dot_dimension_numbers<[1], [0], [0], [1], [0, 0, 1, 1], [], []>} : vector<64x96xbf16>, vector<96x64xbf16>, vector<64x64xf32> -> vector<64x64xf32>
    %cst_91 = arith.constant 0.000000e+00 : f32
    %110 = vector.shape_cast %67 : vector<64x1xi1> to vector<64x1xi1>
    %111 = vector.broadcast %110 : vector<64x1xi1> to vector<64x64xi1>
    %112 = vector.broadcast %cst_91 : f32 to vector<64x64xf32>
    %113 = arith.select %111, %109, %112 : vector<64x64xi1>, vector<64x64xf32>
    %114 = arith.addf %105, %113 : vector<64x64xf32>
    %c16 = arith.constant 16 : index
    %c0_92 = arith.constant 0 : index
    %115 = vector.load %arg15[%c16, %c0_92] : memref<82x96xbf16, #tpu.memory_space<vmem>>, vector<64x96xbf16>
    %c2_93 = arith.constant 2 : index
    %c0_94 = arith.constant 0 : index
    %c0_95 = arith.constant 0 : index
    %c0_96 = arith.constant 0 : index
    %116 = vector.load %arg6[%c2_93, %c0_94, %c0_95, %c0_96] : memref<3x3x96x64xbf16, #tpu.memory_space<vmem>>, vector<1x1x96x64xbf16>
    %117 = vector.shape_cast %116 : vector<1x1x96x64xbf16> to vector<96x64xbf16>
    %cst_97 = arith.constant dense<0.000000e+00> : vector<64x64xf32>
    %118 = tpu.matmul %115, %117, %cst_97 {dimension_numbers = #tpu.dot_dimension_numbers<[1], [0], [0], [1], [0, 0, 1, 1], [], []>} : vector<64x96xbf16>, vector<96x64xbf16>, vector<64x64xf32> -> vector<64x64xf32>
    %cst_98 = arith.constant 0.000000e+00 : f32
    %119 = vector.shape_cast %65 : vector<64x1xi1> to vector<64x1xi1>
    %120 = vector.broadcast %119 : vector<64x1xi1> to vector<64x64xi1>
    %121 = vector.broadcast %cst_98 : f32 to vector<64x64xf32>
    %122 = arith.select %120, %118, %121 : vector<64x64xi1>, vector<64x64xf32>
    %123 = arith.addf %114, %122 : vector<64x64xf32>
    %c17 = arith.constant 17 : index
    %c0_99 = arith.constant 0 : index
    %124 = vector.load %arg15[%c17, %c0_99] : memref<82x96xbf16, #tpu.memory_space<vmem>>, vector<64x96xbf16>
    %c2_100 = arith.constant 2 : index
    %c1_101 = arith.constant 1 : index
    %c0_102 = arith.constant 0 : index
    %c0_103 = arith.constant 0 : index
    %125 = vector.load %arg6[%c2_100, %c1_101, %c0_102, %c0_103] : memref<3x3x96x64xbf16, #tpu.memory_space<vmem>>, vector<1x1x96x64xbf16>
    %126 = vector.shape_cast %125 : vector<1x1x96x64xbf16> to vector<96x64xbf16>
    %cst_104 = arith.constant dense<0.000000e+00> : vector<64x64xf32>
    %127 = tpu.matmul %124, %126, %cst_104 {dimension_numbers = #tpu.dot_dimension_numbers<[1], [0], [0], [1], [0, 0, 1, 1], [], []>} : vector<64x96xbf16>, vector<96x64xbf16>, vector<64x64xf32> -> vector<64x64xf32>
    %128 = arith.addf %123, %127 : vector<64x64xf32>
    %c18 = arith.constant 18 : index
    %c0_105 = arith.constant 0 : index
    %129 = vector.load %arg15[%c18, %c0_105] : memref<82x96xbf16, #tpu.memory_space<vmem>>, vector<64x96xbf16>
    %c2_106 = arith.constant 2 : index
    %c2_107 = arith.constant 2 : index
    %c0_108 = arith.constant 0 : index
    %c0_109 = arith.constant 0 : index
    %130 = vector.load %arg6[%c2_106, %c2_107, %c0_108, %c0_109] : memref<3x3x96x64xbf16, #tpu.memory_space<vmem>>, vector<1x1x96x64xbf16>
    %131 = vector.shape_cast %130 : vector<1x1x96x64xbf16> to vector<96x64xbf16>
    %cst_110 = arith.constant dense<0.000000e+00> : vector<64x64xf32>
    %132 = tpu.matmul %129, %131, %cst_110 {dimension_numbers = #tpu.dot_dimension_numbers<[1], [0], [0], [1], [0, 0, 1, 1], [], []>} : vector<64x96xbf16>, vector<96x64xbf16>, vector<64x64xf32> -> vector<64x64xf32>
    %cst_111 = arith.constant 0.000000e+00 : f32
    %133 = vector.shape_cast %67 : vector<64x1xi1> to vector<64x1xi1>
    %134 = vector.broadcast %133 : vector<64x1xi1> to vector<64x64xi1>
    %135 = vector.broadcast %cst_111 : f32 to vector<64x64xf32>
    %136 = arith.select %134, %132, %135 : vector<64x64xi1>, vector<64x64xf32>
    %137 = arith.addf %128, %136 : vector<64x64xf32>
    %c0_112 = arith.constant 0 : index
    %c0_113 = arith.constant 0 : index
    %138 = vector.load %arg7[%c0_112, %c0_113] : memref<1x64xf32, #tpu.memory_space<vmem>>, vector<1x64xf32>
    %139 = vector.broadcast %138 : vector<1x64xf32> to vector<64x64xf32>
    %140 = arith.addf %137, %139 : vector<64x64xf32>
    %cst_114 = arith.constant 0.000000e+00 : f32
    %141 = vector.broadcast %cst_114 : f32 to vector<64x64xf32>
    %142 = arith.maximumf %140, %141 : vector<64x64xf32>
    %143 = arith.truncf %142 : vector<64x64xf32> to vector<64x64xbf16>
    %c9_115 = arith.constant 9 : index
    %c0_116 = arith.constant 0 : index
    %144 = vector.load %arg16[%c9_115, %c0_116] : memref<82x64xbf16, #tpu.memory_space<vmem>>, vector<64x64xbf16>
    tpu.vector_store %arg16[%c9_115, %c0_116], %143 {strides = array<i32>} : memref<82x64xbf16, #tpu.memory_space<vmem>>, vector<64x64xbf16>,
    %cst_117 = arith.constant 0.000000e+00 : f32
    %145 = vector.broadcast %cst_117 : f32 to vector<64x32xf32>
    %c0_118 = arith.constant 0 : index
    %c0_119 = arith.constant 0 : index
    %146 = vector.load %arg16[%c0_118, %c0_119] : memref<82x64xbf16, #tpu.memory_space<vmem>>, vector<64x64xbf16>
    %c0_120 = arith.constant 0 : index
    %c0_121 = arith.constant 0 : index
    %c0_122 = arith.constant 0 : index
    %c0_123 = arith.constant 0 : index
    %147 = vector.load %arg8[%c0_120, %c0_121, %c0_122, %c0_123] : memref<3x3x64x32xbf16, #tpu.memory_space<vmem>>, vector<1x1x64x32xbf16>
    %148 = vector.shape_cast %147 : vector<1x1x64x32xbf16> to vector<64x32xbf16>
    %cst_124 = arith.constant dense<0.000000e+00> : vector<64x32xf32>
    %149 = tpu.matmul %146, %148, %cst_124 {dimension_numbers = #tpu.dot_dimension_numbers<[1], [0], [0], [1], [0, 0, 1, 1], [], []>} : vector<64x64xbf16>, vector<64x32xbf16>, vector<64x32xf32> -> vector<64x32xf32>
    %cst_125 = arith.constant 0.000000e+00 : f32
    %150 = vector.shape_cast %65 : vector<64x1xi1> to vector<64x1xi1>
    %151 = vector.broadcast %150 : vector<64x1xi1> to vector<64x32xi1>
    %152 = vector.broadcast %cst_125 : f32 to vector<64x32xf32>
    %153 = arith.select %151, %149, %152 : vector<64x32xi1>, vector<64x32xf32>
    %154 = arith.addf %145, %153 : vector<64x32xf32>
    %c1_126 = arith.constant 1 : index
    %c0_127 = arith.constant 0 : index
    %155 = vector.load %arg16[%c1_126, %c0_127] : memref<82x64xbf16, #tpu.memory_space<vmem>>, vector<64x64xbf16>
    %c0_128 = arith.constant 0 : index
    %c1_129 = arith.constant 1 : index
    %c0_130 = arith.constant 0 : index
    %c0_131 = arith.constant 0 : index
    %156 = vector.load %arg8[%c0_128, %c1_129, %c0_130, %c0_131] : memref<3x3x64x32xbf16, #tpu.memory_space<vmem>>, vector<1x1x64x32xbf16>
    %157 = vector.shape_cast %156 : vector<1x1x64x32xbf16> to vector<64x32xbf16>
    %cst_132 = arith.constant dense<0.000000e+00> : vector<64x32xf32>
    %158 = tpu.matmul %155, %157, %cst_132 {dimension_numbers = #tpu.dot_dimension_numbers<[1], [0], [0], [1], [0, 0, 1, 1], [], []>} : vector<64x64xbf16>, vector<64x32xbf16>, vector<64x32xf32> -> vector<64x32xf32>
    %159 = arith.addf %154, %158 : vector<64x32xf32>
    %c2_133 = arith.constant 2 : index
    %c0_134 = arith.constant 0 : index
    %160 = vector.load %arg16[%c2_133, %c0_134] : memref<82x64xbf16, #tpu.memory_space<vmem>>, vector<64x64xbf16>
    %c0_135 = arith.constant 0 : index
    %c2_136 = arith.constant 2 : index
    %c0_137 = arith.constant 0 : index
    %c0_138 = arith.constant 0 : index
    %161 = vector.load %arg8[%c0_135, %c2_136, %c0_137, %c0_138] : memref<3x3x64x32xbf16, #tpu.memory_space<vmem>>, vector<1x1x64x32xbf16>
    %162 = vector.shape_cast %161 : vector<1x1x64x32xbf16> to vector<64x32xbf16>
    %cst_139 = arith.constant dense<0.000000e+00> : vector<64x32xf32>
    %163 = tpu.matmul %160, %162, %cst_139 {dimension_numbers = #tpu.dot_dimension_numbers<[1], [0], [0], [1], [0, 0, 1, 1], [], []>} : vector<64x64xbf16>, vector<64x32xbf16>, vector<64x32xf32> -> vector<64x32xf32>
    %cst_140 = arith.constant 0.000000e+00 : f32
    %164 = vector.shape_cast %67 : vector<64x1xi1> to vector<64x1xi1>
    %165 = vector.broadcast %164 : vector<64x1xi1> to vector<64x32xi1>
    %166 = vector.broadcast %cst_140 : f32 to vector<64x32xf32>
    %167 = arith.select %165, %163, %166 : vector<64x32xi1>, vector<64x32xf32>
    %168 = arith.addf %159, %167 : vector<64x32xf32>
    %c8_141 = arith.constant 8 : index
    %c0_142 = arith.constant 0 : index
    %169 = vector.load %arg16[%c8_141, %c0_142] : memref<82x64xbf16, #tpu.memory_space<vmem>>, vector<64x64xbf16>
    %c1_143 = arith.constant 1 : index
    %c0_144 = arith.constant 0 : index
    %c0_145 = arith.constant 0 : index
    %c0_146 = arith.constant 0 : index
    %170 = vector.load %arg8[%c1_143, %c0_144, %c0_145, %c0_146] : memref<3x3x64x32xbf16, #tpu.memory_space<vmem>>, vector<1x1x64x32xbf16>
    %171 = vector.shape_cast %170 : vector<1x1x64x32xbf16> to vector<64x32xbf16>
    %cst_147 = arith.constant dense<0.000000e+00> : vector<64x32xf32>
    %172 = tpu.matmul %169, %171, %cst_147 {dimension_numbers = #tpu.dot_dimension_numbers<[1], [0], [0], [1], [0, 0, 1, 1], [], []>} : vector<64x64xbf16>, vector<64x32xbf16>, vector<64x32xf32> -> vector<64x32xf32>
    %cst_148 = arith.constant 0.000000e+00 : f32
    %173 = vector.shape_cast %65 : vector<64x1xi1> to vector<64x1xi1>
    %174 = vector.broadcast %173 : vector<64x1xi1> to vector<64x32xi1>
    %175 = vector.broadcast %cst_148 : f32 to vector<64x32xf32>
    %176 = arith.select %174, %172, %175 : vector<64x32xi1>, vector<64x32xf32>
    %177 = arith.addf %168, %176 : vector<64x32xf32>
    %c9_149 = arith.constant 9 : index
    %c0_150 = arith.constant 0 : index
    %178 = vector.load %arg16[%c9_149, %c0_150] : memref<82x64xbf16, #tpu.memory_space<vmem>>, vector<64x64xbf16>
    %c1_151 = arith.constant 1 : index
    %c1_152 = arith.constant 1 : index
    %c0_153 = arith.constant 0 : index
    %c0_154 = arith.constant 0 : index
    %179 = vector.load %arg8[%c1_151, %c1_152, %c0_153, %c0_154] : memref<3x3x64x32xbf16, #tpu.memory_space<vmem>>, vector<1x1x64x32xbf16>
    %180 = vector.shape_cast %179 : vector<1x1x64x32xbf16> to vector<64x32xbf16>
    %cst_155 = arith.constant dense<0.000000e+00> : vector<64x32xf32>
    %181 = tpu.matmul %178, %180, %cst_155 {dimension_numbers = #tpu.dot_dimension_numbers<[1], [0], [0], [1], [0, 0, 1, 1], [], []>} : vector<64x64xbf16>, vector<64x32xbf16>, vector<64x32xf32> -> vector<64x32xf32>
    %182 = arith.addf %177, %181 : vector<64x32xf32>
    %c10_156 = arith.constant 10 : index
    %c0_157 = arith.constant 0 : index
    %183 = vector.load %arg16[%c10_156, %c0_157] : memref<82x64xbf16, #tpu.memory_space<vmem>>, vector<64x64xbf16>
    %c1_158 = arith.constant 1 : index
    %c2_159 = arith.constant 2 : index
    %c0_160 = arith.constant 0 : index
    %c0_161 = arith.constant 0 : index
    %184 = vector.load %arg8[%c1_158, %c2_159, %c0_160, %c0_161] : memref<3x3x64x32xbf16, #tpu.memory_space<vmem>>, vector<1x1x64x32xbf16>
    %185 = vector.shape_cast %184 : vector<1x1x64x32xbf16> to vector<64x32xbf16>
    %cst_162 = arith.constant dense<0.000000e+00> : vector<64x32xf32>
    %186 = tpu.matmul %183, %185, %cst_162 {dimension_numbers = #tpu.dot_dimension_numbers<[1], [0], [0], [1], [0, 0, 1, 1], [], []>} : vector<64x64xbf16>, vector<64x32xbf16>, vector<64x32xf32> -> vector<64x32xf32>
    %cst_163 = arith.constant 0.000000e+00 : f32
    %187 = vector.shape_cast %67 : vector<64x1xi1> to vector<64x1xi1>
    %188 = vector.broadcast %187 : vector<64x1xi1> to vector<64x32xi1>
    %189 = vector.broadcast %cst_163 : f32 to vector<64x32xf32>
    %190 = arith.select %188, %186, %189 : vector<64x32xi1>, vector<64x32xf32>
    %191 = arith.addf %182, %190 : vector<64x32xf32>
    %c16_164 = arith.constant 16 : index
    %c0_165 = arith.constant 0 : index
    %192 = vector.load %arg16[%c16_164, %c0_165] : memref<82x64xbf16, #tpu.memory_space<vmem>>, vector<64x64xbf16>
    %c2_166 = arith.constant 2 : index
    %c0_167 = arith.constant 0 : index
    %c0_168 = arith.constant 0 : index
    %c0_169 = arith.constant 0 : index
    %193 = vector.load %arg8[%c2_166, %c0_167, %c0_168, %c0_169] : memref<3x3x64x32xbf16, #tpu.memory_space<vmem>>, vector<1x1x64x32xbf16>
    %194 = vector.shape_cast %193 : vector<1x1x64x32xbf16> to vector<64x32xbf16>
    %cst_170 = arith.constant dense<0.000000e+00> : vector<64x32xf32>
    %195 = tpu.matmul %192, %194, %cst_170 {dimension_numbers = #tpu.dot_dimension_numbers<[1], [0], [0], [1], [0, 0, 1, 1], [], []>} : vector<64x64xbf16>, vector<64x32xbf16>, vector<64x32xf32> -> vector<64x32xf32>
    %cst_171 = arith.constant 0.000000e+00 : f32
    %196 = vector.shape_cast %65 : vector<64x1xi1> to vector<64x1xi1>
    %197 = vector.broadcast %196 : vector<64x1xi1> to vector<64x32xi1>
    %198 = vector.broadcast %cst_171 : f32 to vector<64x32xf32>
    %199 = arith.select %197, %195, %198 : vector<64x32xi1>, vector<64x32xf32>
    %200 = arith.addf %191, %199 : vector<64x32xf32>
    %c17_172 = arith.constant 17 : index
    %c0_173 = arith.constant 0 : index
    %201 = vector.load %arg16[%c17_172, %c0_173] : memref<82x64xbf16, #tpu.memory_space<vmem>>, vector<64x64xbf16>
    %c2_174 = arith.constant 2 : index
    %c1_175 = arith.constant 1 : index
    %c0_176 = arith.constant 0 : index
    %c0_177 = arith.constant 0 : index
    %202 = vector.load %arg8[%c2_174, %c1_175, %c0_176, %c0_177] : memref<3x3x64x32xbf16, #tpu.memory_space<vmem>>, vector<1x1x64x32xbf16>
    %203 = vector.shape_cast %202 : vector<1x1x64x32xbf16> to vector<64x32xbf16>
    %cst_178 = arith.constant dense<0.000000e+00> : vector<64x32xf32>
    %204 = tpu.matmul %201, %203, %cst_178 {dimension_numbers = #tpu.dot_dimension_numbers<[1], [0], [0], [1], [0, 0, 1, 1], [], []>} : vector<64x64xbf16>, vector<64x32xbf16>, vector<64x32xf32> -> vector<64x32xf32>
    %205 = arith.addf %200, %204 : vector<64x32xf32>
    %c18_179 = arith.constant 18 : index
    %c0_180 = arith.constant 0 : index
    %206 = vector.load %arg16[%c18_179, %c0_180] : memref<82x64xbf16, #tpu.memory_space<vmem>>, vector<64x64xbf16>
    %c2_181 = arith.constant 2 : index
    %c2_182 = arith.constant 2 : index
    %c0_183 = arith.constant 0 : index
    %c0_184 = arith.constant 0 : index
    %207 = vector.load %arg8[%c2_181, %c2_182, %c0_183, %c0_184] : memref<3x3x64x32xbf16, #tpu.memory_space<vmem>>, vector<1x1x64x32xbf16>
    %208 = vector.shape_cast %207 : vector<1x1x64x32xbf16> to vector<64x32xbf16>
    %cst_185 = arith.constant dense<0.000000e+00> : vector<64x32xf32>
    %209 = tpu.matmul %206, %208, %cst_185 {dimension_numbers = #tpu.dot_dimension_numbers<[1], [0], [0], [1], [0, 0, 1, 1], [], []>} : vector<64x64xbf16>, vector<64x32xbf16>, vector<64x32xf32> -> vector<64x32xf32>
    %cst_186 = arith.constant 0.000000e+00 : f32
    %210 = vector.shape_cast %67 : vector<64x1xi1> to vector<64x1xi1>
    %211 = vector.broadcast %210 : vector<64x1xi1> to vector<64x32xi1>
    %212 = vector.broadcast %cst_186 : f32 to vector<64x32xf32>
    %213 = arith.select %211, %209, %212 : vector<64x32xi1>, vector<64x32xf32>
    %214 = arith.addf %205, %213 : vector<64x32xf32>
    %c0_187 = arith.constant 0 : index
    %c0_188 = arith.constant 0 : index
    %215 = vector.load %arg9[%c0_187, %c0_188] : memref<1x32xf32, #tpu.memory_space<vmem>>, vector<1x32xf32>
    %216 = vector.broadcast %215 : vector<1x32xf32> to vector<64x32xf32>
    %217 = arith.addf %214, %216 : vector<64x32xf32>
    %cst_189 = arith.constant 0.000000e+00 : f32
    %218 = vector.broadcast %cst_189 : f32 to vector<64x32xf32>
    %219 = arith.maximumf %217, %218 : vector<64x32xf32>
    %c0_190 = arith.constant 0 : index
    %c0_191 = arith.constant 0 : index
    %220 = vector.load %arg10[%c0_190, %c0_191] : memref<1x32xf32, #tpu.memory_space<vmem>>, vector<1x32xf32>
    %221 = vector.broadcast %220 : vector<1x32xf32> to vector<64x32xf32>
    %222 = arith.mulf %219, %221 : vector<64x32xf32>
    %cst_192 = arith.constant dense<0.000000e+00> : vector<64xf32>
    %223 = vector.multi_reduction <add>, %222, %cst_192 [1] : vector<64x32xf32> to vector<64xf32>
    %224 = vector.shape_cast %223 : vector<64xf32> to vector<64x1xf32>
    %c0_193 = arith.constant 0 : index
    %c0_194 = arith.constant 0 : index
    %225 = vector.load %arg11[%c0_193, %c0_194] : memref<1x1xf32, #tpu.memory_space<vmem>>, vector<1x1xf32>
    %226 = vector.broadcast %225 : vector<1x1xf32> to vector<64x1xf32>
    %227 = arith.addf %224, %226 : vector<64x1xf32>
    %228 = vector.shape_cast %227 : vector<64x1xf32> to vector<8x8xf32>
    %229 = arith.truncf %228 : vector<8x8xf32> to vector<8x8xbf16>
    %c0_195 = arith.constant 0 : index
    %c0_196 = arith.constant 0 : index
    %230 = vector.load %arg13[%c0_195, %c0_196] : memref<8x112xbf16, #tpu.memory_space<vmem>>, vector<8x112xbf16>
    %cst_197 = arith.constant dense<0.000000e+00> : vector<8x112xf32>
    %231 = tpu.matmul %229, %230, %cst_197 {dimension_numbers = #tpu.dot_dimension_numbers<[1], [0], [0], [1], [0, 0, 1, 1], [], []>} : vector<8x8xbf16>, vector<8x112xbf16>, vector<8x112xf32> -> vector<8x112xf32>
    %c0_198 = arith.constant 0 : index
    %c0_199 = arith.constant 0 : index
    %232 = vector.load %arg12[%c0_198, %c0_199] : memref<112x8xbf16, #tpu.memory_space<vmem>>, vector<112x8xbf16>
    %233 = arith.truncf %231 : vector<8x112xf32> to vector<8x112xbf16>
    %cst_200 = arith.constant dense<0.000000e+00> : vector<112x112xf32>
    %234 = tpu.matmul %232, %233, %cst_200 {dimension_numbers = #tpu.dot_dimension_numbers<[1], [0], [0], [1], [0, 0, 1, 1], [], []>} : vector<112x8xbf16>, vector<8x112xbf16>, vector<112x112xf32> -> vector<112x112xf32>
    %c0_201 = arith.constant 0 : index
    %c0_202 = arith.constant 0 : index
    %c0_203 = arith.constant 0 : index
    %235 = vector.load %arg14[%c0_201, %c0_202, %c0_203] : memref<1x112x112xf32, #tpu.memory_space<vmem>>, vector<1x112x112xf32>
    %236 = vector.shape_cast %235 : vector<1x112x112xf32> to vector<112x112xf32>
    %237 = vector.shape_cast %234 : vector<112x112xf32> to vector<1x112x112xf32>
    tpu.vector_store %arg14[%c0_201, %c0_202, %c0_203], %237 {strides = array<i32>} : memref<1x112x112xf32, #tpu.memory_space<vmem>>, vector<1x112x112xf32>,
    return
  }
  func.func @transform_0(%arg0: i32) -> (i32, i32, i32) {
    %c0_i32 = arith.constant 0 : i32
    %c0_i32_0 = arith.constant 0 : i32
    %c0_i32_1 = arith.constant 0 : i32
    return %arg0, %c0_i32, %c0_i32_0 : i32, i32, i32
  }
  func.func @transform_1(%arg0: i32) -> (i32, i32, i32) {
    %c0_i32 = arith.constant 0 : i32
    %c0_i32_0 = arith.constant 0 : i32
    %c0_i32_1 = arith.constant 0 : i32
    return %arg0, %c0_i32, %c0_i32_0 : i32, i32, i32
  }
  func.func @transform_2(%arg0: i32) -> (i32, i32, i32) {
    %c0_i32 = arith.constant 0 : i32
    %c0_i32_0 = arith.constant 0 : i32
    %c0_i32_1 = arith.constant 0 : i32
    return %arg0, %c0_i32, %c0_i32_0 : i32, i32, i32
  }
  func.func @transform_3(%arg0: i32) -> (i32, i32, i32) {
    %c0_i32 = arith.constant 0 : i32
    %c0_i32_0 = arith.constant 0 : i32
    %c0_i32_1 = arith.constant 0 : i32
    %c0_i32_2 = arith.constant 0 : i32
    return %c0_i32, %c0_i32_0, %c0_i32_1 : i32, i32, i32
  }
  func.func @transform_4(%arg0: i32) -> (i32, i32, i32) {
    %c0_i32 = arith.constant 0 : i32
    %c0_i32_0 = arith.constant 0 : i32
    %c0_i32_1 = arith.constant 0 : i32
    %c0_i32_2 = arith.constant 0 : i32
    return %c0_i32, %c0_i32_0, %c0_i32_1 : i32, i32, i32
  }
  func.func @transform_5(%arg0: i32) -> (i32, i32, i32, i32) {
    %c0_i32 = arith.constant 0 : i32
    %c0_i32_0 = arith.constant 0 : i32
    %c0_i32_1 = arith.constant 0 : i32
    %c0_i32_2 = arith.constant 0 : i32
    %c0_i32_3 = arith.constant 0 : i32
    return %c0_i32, %c0_i32_0, %c0_i32_1, %c0_i32_2 : i32, i32, i32, i32
  }
  func.func @transform_6(%arg0: i32) -> (i32, i32) {
    %c0_i32 = arith.constant 0 : i32
    %c0_i32_0 = arith.constant 0 : i32
    %c0_i32_1 = arith.constant 0 : i32
    return %c0_i32, %c0_i32_0 : i32, i32
  }
  func.func @transform_7(%arg0: i32) -> (i32, i32, i32, i32) {
    %c0_i32 = arith.constant 0 : i32
    %c0_i32_0 = arith.constant 0 : i32
    %c0_i32_1 = arith.constant 0 : i32
    %c0_i32_2 = arith.constant 0 : i32
    %c0_i32_3 = arith.constant 0 : i32
    return %c0_i32, %c0_i32_0, %c0_i32_1, %c0_i32_2 : i32, i32, i32, i32
  }
  func.func @transform_8(%arg0: i32) -> (i32, i32) {
    %c0_i32 = arith.constant 0 : i32
    %c0_i32_0 = arith.constant 0 : i32
    %c0_i32_1 = arith.constant 0 : i32
    return %c0_i32, %c0_i32_0 : i32, i32
  }
  func.func @transform_9(%arg0: i32) -> (i32, i32) {
    %c0_i32 = arith.constant 0 : i32
    %c0_i32_0 = arith.constant 0 : i32
    %c0_i32_1 = arith.constant 0 : i32
    return %c0_i32, %c0_i32_0 : i32, i32
  }
  func.func @transform_10(%arg0: i32) -> (i32, i32) {
    %c0_i32 = arith.constant 0 : i32
    %c0_i32_0 = arith.constant 0 : i32
    %c0_i32_1 = arith.constant 0 : i32
    return %c0_i32, %c0_i32_0 : i32, i32
  }
  func.func @transform_11(%arg0: i32) -> (i32, i32) {
    %c0_i32 = arith.constant 0 : i32
    %c0_i32_0 = arith.constant 0 : i32
    %c0_i32_1 = arith.constant 0 : i32
    return %c0_i32, %c0_i32_0 : i32, i32
  }
  func.func @transform_12(%arg0: i32) -> (i32, i32) {
    %c0_i32 = arith.constant 0 : i32
    %c0_i32_0 = arith.constant 0 : i32
    %c0_i32_1 = arith.constant 0 : i32
    return %c0_i32, %c0_i32_0 : i32, i32
  }
  func.func @transform_13(%arg0: i32) -> (i32, i32, i32) {
    %c0_i32 = arith.constant 0 : i32
    %c0_i32_0 = arith.constant 0 : i32
    %c0_i32_1 = arith.constant 0 : i32
    return %arg0, %c0_i32, %c0_i32_0 : i32, i32, i32
  }
}

</mosaic_0001>

<bundles_post_ra>
// kernel: tpu_custom_call.1
= control target key start
LH: loop header
LB: loop body
LE: loop exit
PB: predicated region body
PF: predicated region fallthrough
CT: control target
= control target key end

     0   :  { %s8354_s0 = inlined_call_operand.vmem [shape: bf16[2,64,64], index: 0, kind: input, shape index: {}]   ;;  %s8355_s1 = inlined_call_operand.vmem [shape: bf16[2,64,64], index: 1, kind: input, shape index: {}]   ;;  %s8356_s2 = inlined_call_operand.vmem [shape: bf16[2,64,64], index: 2, kind: input, shape index: {}]   ;;  %s8357_s3 = inlined_call_operand.vmem [shape: bf16[3,64,32], index: 3, kind: input, shape index: {}]   ;;  %s8358_s4 = inlined_call_operand.vmem [shape: f32[3,1,32], index: 4, kind: input, shape index: {}]   ;;  %s8359_s5 = inlined_call_operand.vmem [shape: bf16[3,3,96,64], index: 5, kind: input, shape index: {}]   ;;  %s8360_s6 = inlined_call_operand.vmem [shape: f32[1,64], index: 6, kind: input, shape index: {}]   ;;  %s8361_s7 = inlined_call_operand.vmem [shape: bf16[3,3,64,32], index: 7, kind: input, shape index: {}]   ;;  %s8362_s8 = inlined_call_operand.vmem [shape: f32[1,32], index: 8, kind: input, shape index: {}]   ;;  %s8363_s9 = inlined_call_operand.vmem [shape: f32[1,32], index: 9, kind: input, shape index: {}]   ;;  %s8364_s10 = inlined_call_operand.<no memory space> [shape: f32[1,1], index: 10, kind: input, shape index: {}]   ;;  %s8365_s11 = inlined_call_operand.vmem [shape: bf16[112,8], index: 11, kind: input, shape index: {}]   ;;  %s8366_s12 = inlined_call_operand.vmem [shape: bf16[8,112], index: 12, kind: input, shape index: {}]   ;;  %s8367_s13 = inlined_call_operand.hbm [shape: f32[2,112,112], index: 13, kind: output, shape index: {}]  }
   0x1   :  { %v18_v0 = vstv %s8364_s10 }
   0x2   :  { %19 = vst [vmem:[#allocation4] sm:$0x1] %v18_v0 }
   0x3   :  { %20 = vsyncpa [#allocation6], 0 }
   0x4   :  { %22 = vsyncpa [#allocation6 + $0x1], 0  ;;  %s6734_s27 = smov 0   ;;  %s6736_s28 = smov 0  }
   0x5   :  { %s6738_s29 = smov 0   ;;  %s6740_s30 = smov 0  }
   0x6 LB: > { %8395 = sst [smem:[#allocation8_spill]] %s6647_s29  ;;  %s6755_s10 = sadd.s32 4294967295, %s6651_s30   ;;  %s6651_s30 = sphi %s6740_s30, %s8517_s30   ;;  %s6647_s29 = sphi %s6738_s29, %s8514_s29   ;;  %s6643_s28 = sphi %s6736_s28, %s8516_s28   ;;  %s6639_s27 = sphi %s6734_s27, %s8515_s27  }
   0x7   : > { %s5107_s14 = sadd.s32 4294967294, %s6651_s30   ;;  %s6759_s15 = sadd.s32 1, %s6651_s30  }
   0x8   : > { %s323_s16 = sadd.s32 1, %s6647_s29  ;;  %s320_s17 = ssub.s32 %s6651_s30, %s6759_s15 }
   0x9   : > { %p333_p0 = scmp.ne.s32.totalorder %s6647_s29, %s6643_s28  ;;  %p321_p1 = scmp.eq.s32.totalorder %s320_s17, 0 }
   0xa   : > { %p334_p2 = scmp.eq.s32.totalorder %s6755_s10, 1  ;;  %p339_p3 = scmp.ne.s32.totalorder %s6643_s28, %s6639_s27 }
   0xb   : > { %p340_p4 = scmp.eq.s32.totalorder %s5107_s14, 1  ;;  %p5110_p7 = scmp.ge.s32.totalorder %s6651_s30, 1 }
   0xc   : > { %s6770_s18 = scalar_select %p321_p1, %s6647_s29, %s323_s16  }
   0xd   : > { %p6772_p5 = por %p334_p2, %p333_p0  ;;  %p6776_p6 = por %p340_p4, %p339_p3 }
   0xe   : > { %8396 = sst [smem:[#allocation9_spill]] %s6770_s18  ;;  %p412_p8 = scmp.lt.s32.totalorder %s6651_s30, 3 }
  0x10   : > { %p413_p9 = pnand %p5110_p7, %p412_p8 }
  0x11   : > { %v6411_v1 = vld [vmem:[%s8357_s3] sm:$0xff] (!%p413_p9)   ;;  %p466_p10 = scmp.lt.s32.totalorder (!%p413_p9), %s6755_s10, 1  ;;  %v6413_v3 = vld [vmem:[%s8357_s3 + $0x8] sm:$0xff] (!%p413_p9)   ;;  %v6415_v5 = vld [vmem:[%s8357_s3 + $0x10] sm:$0xff] (!%p413_p9)   ;;  %vm8373_vm0 = vcmask (!%p413_p9), 523264   ;;  %vm484_vm1 = vcmask (!%p413_p9), 778240  }
  0x12   : > { %416 = sbr.rel (%p413_p9) target bundleno = 1876 (0x754), region = 72  ;;  %v6412_v2 = vld [vmem:[%s8357_s3 + $0x20] sm:$0xff] (!%p413_p9)   ;;  %5841 = vmatprep.subr.bf16.mxu0 (!%p413_p9), %v6411_v1  ;;  %v6414_v4 = vld [vmem:[%s8357_s3 + $0x28] sm:$0xff] (!%p413_p9)   ;;  %v6416_v6 = vld [vmem:[%s8357_s3 + $0x30] sm:$0xff] (!%p413_p9)   ;;  %vm485_vm2 = vsmask.f32 (!%p413_p9), 256 }
  0x13   : > { %5857 = vmatprep.subr.bf16.mxu1 (!%p413_p9), %v6412_v2  ;;  %5842 = vmatpush3.bf16.msra.mxu0 (!%p413_p9), %v6411_v1  ;;  %v6417_v7 = vld [vmem:[%s8357_s3 + $0x18] sm:$0xff] (!%p413_p9)   ;;  %v6423_v11 = vld [vmem:[%s8357_s3 + $0x40] sm:$0xff] (!%p413_p9)   ;;  %v6424_v14 = vld [vmem:[%s8357_s3 + $0x48] sm:$0xff] (!%p413_p9)   ;;  %vm482_vm4 = vcmask (!%p413_p9), 781312   ;;  %v8369_v27 = vmov (!%p413_p9), 0   ;;  %vm771_vm7 = vcmask (!%p413_p9), 257024  }
  0x14   : > { %5858 = vmatpush3.bf16.msra.mxu1 (!%p413_p9), %v6412_v2  ;;  %5843 = vmatprep.subr.bf16.mxu0 (!%p413_p9), %v6413_v3  ;;  %v6418_v8 = vld [vmem:[%s8357_s3 + $0x38] sm:$0xff] (!%p413_p9)   ;;  %v6429_v18 = vld [vmem:[%s8357_s3 + $0x50] sm:$0xff] (!%p413_p9)   ;;  %vm486_vm3 = vmand (!%p413_p9), %vm484_vm1, %vm485_vm2  ;;  %483 = vst.msk [vmem:[#allocation2] sm:$0xf] (!%p413_p9), %vm482_vm4, %v8369_v27  ;;  %vm491_vm5 = vsmask.f32 (!%p413_p9), 7938 }
  0x15   : > { %5859 = vmatprep.subr.bf16.mxu1 (!%p413_p9), %v6414_v4  ;;  %v6430_v20 = vld [vmem:[%s8357_s3 + $0x58] sm:$0xff] (!%p413_p9)   ;;  %v487_v25 = vld [vmem:[#allocation2 + $0x4] sm:$0x1] (!%p413_p9)  ;;  %497 = vst.msk [vmem:[#allocation2 + $0x28] sm:$0x1] (!%p413_p9), %vm484_vm1, %v8369_v27  ;;  %6410 = vset.pattern.permute.xlu0 (!%p413_p9), %v8369_v27  ;;  %vm492_vm6 = vmand (!%p413_p9), %vm482_vm4, %vm491_vm5  ;;  %vm784_vm10 = vcmask (!%p413_p9), 253952  }
  0x16   : > { %v488_v26 = vsel (!%p413_p9), %vm486_vm3, 0, %v487_v25  ;;  %6409 = vset.pattern.permute.xlu1 (!%p413_p9), %v8369_v27  ;;  %v493_v28 = vld [vmem:[#allocation2 + $0x24] sm:$0xf] (!%p413_p9)  ;;  %v6867_v30 = vld [vmem:[%s8358_s4] ss:$0 sm:$0xff] (!%p413_p9)  ;;  %vm6892_vm8 = vmand (!%p413_p9), %vm771_vm7, %vm491_vm5  ;;  %s6655_s21 = smov (!%p413_p9), 64  }
  0x17   : > { %5844 = vmatpush3.bf16.msra.mxu0 (!%p413_p9), %v6413_v3  ;;  %489 = vst [vmem:[#allocation2 + $0x4] sm:$0x1] (!%p413_p9), %v488_v26  ;;  %v494_v29 = vsel (!%p413_p9), %vm492_vm6, 0, %v493_v28  ;;  %v6872_v32 = vld [vmem:[%s8358_s4 + $0x1] ss:$0 sm:$0xff] (!%p413_p9)  ;;  %vm7002_vm12 = vmand (!%p413_p9), %vm784_vm10, %vm485_vm2  ;;  %vm1065_vm13 = vcmask (!%p413_p9), 519424  }
  0x18   : > { %5860 = vmatpush3.bf16.msra.mxu1 (!%p413_p9), %v6414_v4  ;;  %5845 = vmatprep.subr.bf16.mxu0 (!%p413_p9), %v6415_v5  ;;  %495 = vst [vmem:[#allocation2 + $0x24] sm:$0xf] (!%p413_p9), %v494_v29  ;;  %vm689_vm9 = vsmask.f32 (!%p413_p9), 4368  ;;  %vm1066_vm14 = vmand (!%p413_p9), %vm1065_vm13, %vm491_vm5  ;;  %vm1359_vm15 = vcmask (!%p413_p9), 781824   ;;  %vm1574_vm3 = vcmask (!%p413_p9), 785408  }
  0x19   : > { %s467_s14 = scalar_select %p466_p10, %s6755_s10, 1  ;;  %5861 = vmatprep.subr.bf16.mxu1 %v6416_v6  ;;  %vm6990_vm11 = vmor %vm485_vm2, %vm689_vm9  ;;  %vm1078_vm4 = vcmask 516352   ;;  %vm8371_vm10 = vcmask 1046528  }
  0x1a   : > { %vm1360_vm1 = vmand %vm1359_vm15, %vm491_vm5  ;;  %s463_s17 = sand.u32 1, %s6643_s28  }
  0x1b   : > { %s6799_s23 = sshll.u32 %s467_s14, 5  ;;  %5846 = vmatpush3.bf16.msra.mxu0 %v6415_v5  ;;  %vm7253_vm6 = vmand %vm1078_vm4, %vm485_vm2  ;;  %s6361_s14 = smul.u32 112, %s463_s17 }
  0x1c   : > { %s6808_s16 = scalar_lea.vmem %s8354_s0, %s6799_s23  ;;  %s6817_s22 = scalar_lea.vmem %s8355_s1, %s6799_s23  ;;  %5862 = vmatpush3.bf16.msra.mxu1 %v6416_v6  ;;  %5847 = vmatprep.subr.bf16.mxu0 %v6417_v7 }
  0x1d   : > { %v6419_v9 = vld [vmem:[%s6808_s16] sm:$0xff]   ;;  %5863 = vmatprep.subr.bf16.mxu1 %v6418_v8  ;;  %v6421_v12 = vld [vmem:[%s6808_s16 + $0x8] sm:$0xff]   ;;  %v6425_v15 = vld [vmem:[%s6808_s16 + $0x10] sm:$0xff]   ;;  %s480_s24 = scalar_lea.vmem %s8356_s2, %s6799_s23  ;;  %s6658_s23 = smov [#allocation5]  }
  0x1e   : > { %v6420_v10 = vld [vmem:[%s6817_s22] sm:$0xff]   ;;  %5849 = vmatprep.mubr.msk.bf16.mxu0 %vm8373_vm0, %v6419_v9  ;;  %v6422_v13 = vld [vmem:[%s6817_s22 + $0x8] sm:$0xff]   ;;  %v6426_v16 = vld [vmem:[%s6817_s22 + $0x10] sm:$0xff]  }
  0x1f   : > { %5865 = vmatprep.mubr.msk.bf16.mxu1 %vm8373_vm0, %v6420_v10  ;;  %5848 = vmatpush3.bf16.msra.mxu0 %v6417_v7  ;;  %v6427_v17 = vld [vmem:[%s6808_s16 + $0x18] sm:$0xff]   ;;  %v6431_v21 = vld [vmem:[%s480_s24] sm:$0xff]   ;;  %v6432_v22 = vld [vmem:[%s480_s24 + $0x8] sm:$0xff]   ;;  %s6654_s16 = smov 32  }
  0x20   : > { %5864 = vmatpush3.bf16.msra.mxu1 %v6418_v8  ;;  %5873 = vmatprep.subr.bf16.mxu0 %v6423_v11  ;;  %v6428_v19 = vld [vmem:[%s6817_s22 + $0x18] sm:$0xff]   ;;  %v6433_v23 = vld [vmem:[%s480_s24 + $0x10] sm:$0xff]   ;;  %v773_v9 = vld [vmem:[#allocation2 + $0x4] sm:$0xf]  ;;  %s6593_s22 = sshll.u32 %s6658_s23, 4  ;;  %s6594_s22 = int_to_ptr.vmem [resolvable:$false] %s6593_s22 }
  0x21   : > { %v6434_v24 = vld [vmem:[%s480_s24 + $0x18] sm:$0xff]  }
  0x22   : > { %5850 = vmatmul.mubr.msk.bf16.vlgmr.msra.gmra.mrb[0].mxu0 %vm8373_vm0, %v6421_v12 }
  0x23   : > { %5866 = vmatmul.mubr.msk.bf16.vlgmr.msra.gmra.mrb[0].mxu1 %vm8373_vm0, %v6422_v13  ;;  %5874 = vmatpush3.bf16.msra.mxu0 %v6423_v11 }
  0x24   : > { %5875 = vmatprep.subr.bf16.mxu0 %v6424_v14  ;;  %5853 = vmatprep.mubr.msk.bf16.mxu0 %vm8373_vm0, %v6425_v15 }
  0x25   : > { %5869 = vmatprep.mubr.msk.bf16.mxu1 %vm8373_vm0, %v6426_v16 }
  0x27   : > { %5876 = vmatpush3.bf16.msra.mxu0 %v6424_v14 }
  0x28   : > { %5877 = vmatprep.subr.bf16.mxu0 %v6429_v18 }
  0x2a   : > { %5854 = vmatmul.mubr.msk.bf16.gmra.mrb[4].mxu0 %vm8373_vm0, %v6427_v17 }
  0x2b   : > { %5870 = vmatmul.mubr.msk.bf16.gmra.mrb[4].mxu1 %vm8373_vm0, %v6428_v19  ;;  %5878 = vmatpush3.bf16.msra.mxu0 %v6429_v18 }
  0x2c   : > { %5879 = vmatprep.subr.bf16.mxu0 %v6430_v20  ;;  %5881 = vmatprep.mubr.msk.bf16.mxu0 %vm8373_vm0, %v6431_v21 }
  0x2f   : > { %5880 = vmatpush3.bf16.msra.mxu0 %v6430_v20 }
  0x32   : > { %5882 = vmatmul.mubr.msk.bf16.vlgmr.msra.gmra.mrb[8].mxu0 %vm8373_vm0, %v6432_v22 }
  0x33   : > { %5885 = vmatprep.mubr.msk.bf16.mxu0 %vm8373_vm0, %v6433_v23 }
  0x3a   : > { %5886 = vmatmul.mubr.msk.bf16.gmra.mrb[12].mxu0 %vm8373_vm0, %v6434_v24 }
  0xf5   : > { %v5851_v31 = vpop.f32.mrb[0].mxu0 }
  0xf6   : > { %v635_v33 = vadd.f32 %v5851_v31, %v6867_v30  ;;  %v5867_v34 = vpop.f32.mrb[0].mxu1  ;;  %v626_v35 = vpop.f32.mrb[1].mxu0 }
  0xf7   : > { %v913_v36 = vadd.f32 %v5867_v34, %v6872_v32  ;;  %v627_v37 = vadd.f32 %v6867_v30, %v626_v35  ;;  %v904_v38 = vpop.f32.mrb[1].mxu1  ;;  %v5852_v39 = vpop.f32.mrb[2].mxu0 }
  0xf8   : > { %v659_v40 = vmax.f32 %v635_v33, 0.0  ;;  %v905_v41 = vadd.f32 %v6872_v32, %v904_v38  ;;  %v638_v42 = vadd.f32 %v5852_v39, %v6867_v30  ;;  %v5868_v43 = vpop.f32.mrb[2].mxu1  ;;  %v629_v44 = vpop.f32.mrb[3].mxu0 }
  0xf9   : > { %v937_v45 = vmax.f32 %v913_v36, 0.0  ;;  %v657_v46 = vmax.f32 %v627_v37, 0.0  ;;  %v916_v47 = vadd.f32 %v5868_v43, %v6872_v32  ;;  %v630_v48 = vadd.f32 %v6867_v30, %v629_v44  ;;  %v907_v49 = vpop.f32.mrb[3].mxu1 }
  0xfa   : > { %v5615_v50 = vpack.c.bf16 %v659_v40, %v659_v40  ;;  %v935_v51 = vmax.f32 %v905_v41, 0.0  ;;  %v660_v52 = vmax.f32 %v638_v42, 0.0  ;;  %v908_v60 = vadd.f32 %v6872_v32, %v907_v49 }
  0xfb   : > { %v5623_v53 = vpack.c.bf16 %v937_v45, %v937_v45  ;;  %v5613_v54 = vpack.c.bf16 %v657_v46, %v657_v46  ;;  %v938_v55 = vmax.f32 %v916_v47, 0.0  ;;  %v658_v56 = vmax.f32 %v630_v48, 0.0 }
  0xfc   : > { %v709_v57 = vshrl.u32 %v5615_v50, 16  ;;  %v6881_v58 = vpack.c.bf16 %v935_v51, %v935_v51  ;;  %v5616_v59 = vpack.c.bf16 %v660_v52, %v660_v52  ;;  %v712_v61 = vshll.u32 %v5615_v50, 16 }
  0xfd   : > { %v985_v62 = vshrl.u32 %v5623_v53, 16  ;;  %v692_v63 = vshrl.u32 %v5613_v54, 16  ;;  %v5855_v0 = vpop.f32.mrb[4].mxu0  ;;  %v988_v2 = vshll.u32 %v5623_v53, 16  ;;  %v695_v3 = vshll.u32 %v5613_v54, 16 }
  0xfe   : > { %v6884_v1 = vrot.slane %v709_v57, 7  ;;  %v718_v4 = vshrl.u32 %v5616_v59, 16  ;;  %v5871_v5 = vpop.f32.mrb[4].mxu1  ;;  %v642_v6 = vpop.f32.mrb[5].mxu0  ;;  %v5624_v10 = vpack.c.bf16 %v938_v55, %v938_v55  ;;  %v5614_v11 = vpack.c.bf16 %v658_v56, %v658_v56 }
  0xff   : > { %v6886_v7 = vrot.slane %v985_v62, 7  ;;  %v6888_v8 = vrot.slane %v692_v63, 7  ;;  %v920_v12 = vpop.f32.mrb[5].mxu1  ;;  %v5856_v13 = vpop.f32.mrb[6].mxu0  ;;  %v968_v15 = vshrl.u32 %v6881_v58, 16  ;;  %v721_v16 = vshll.u32 %v5616_v59, 16 }
 0x100   : > { %v936_v17 = vmax.f32 %v908_v60, 0.0  ;;  %v645_v18 = vpop.f32.mrb[7].mxu0  ;;  %v6897_v19 = vpop.f32.mrb[6].mxu1  ;;  %v6900_v20 = vor.u32 %v712_v61, %v6884_v1  ;;  %v6904_v23 = vrot.slane %v718_v4, 7  ;;  %v994_v29 = vshrl.u32 %v5624_v10, 16  ;;  %v6435_v61 = vld [vmem:[%s8359_s5] sm:$0xff]  }
 0x101   : > { %v697_v22 = vor.u32 %v695_v3, %v6888_v8  ;;  %v6906_v24 = vpop.f32.mrb[7].mxu1  ;;  %v6909_v25 = vor.u32 %v988_v2, %v6886_v7  ;;  %v992_v26 = vrot.slane %v6886_v7, 4  ;;  %v698_v28 = vrot.slane %v6888_v8, 4  ;;  %5889 = vmatprep.subr.bf16.mxu1 %v6435_v61  ;;  %v6451_v7 = vld [vmem:[%s8359_s5 + $0xb0] sm:$0xff]  }
 0x102   : > { %v997_v33 = vshll.u32 %v5624_v10, 16  ;;  %v700_v34 = vshrl.u32 %v5614_v11, 16  ;;  %v6915_v35 = vpack.c.bf16 %v936_v17, %v936_v17  ;;  %v6917_v36 = vrot.slane %v994_v29, 7  ;;  %5890 = vmatpush3.bf16.msra.mxu1 %v6435_v61 }
 0x103   : > { %v774_v31 = vsel %vm6892_vm8, %v697_v22, %v773_v9  ;;  %v651_v37 = vadd.f32 %v5855_v0, %v6867_v30  ;;  %v929_v38 = vadd.f32 %v5871_v5, %v6872_v32  ;;  %v643_v39 = vadd.f32 %v6867_v30, %v642_v6 }
 0x104   : > { %775 = vst [vmem:[#allocation2 + $0x4] sm:$0xf] %v774_v31  ;;  %v6923_v40 = vor.u32 %v721_v16, %v6904_v23  ;;  %v6925_v41 = vrot.slane %v700_v34, 7  ;;  %v976_v42 = vshrl.u32 %v6915_v35, 16  ;;  %v921_v43 = vadd.f32 %v6872_v32, %v920_v12 }
 0x105   : > { %v5883_v44 = vpop.f32.mrb[8].mxu0  ;;  %v725_v45 = vrot.slane %v6904_v23, 4  ;;  %v703_v46 = vshll.u32 %v5614_v11, 16  ;;  %v663_v47 = vmax.f32 %v651_v37, 0.0  ;;  %v941_v48 = vmax.f32 %v929_v38, 0.0 }
 0x106   : > { %v6930_v49 = vpop.f32.mrb[9].mxu0  ;;  %v6933_v50 = vor.u32 %v997_v33, %v6917_v36  ;;  %v1001_v51 = vrot.slane %v6917_v36, 4  ;;  %v979_v52 = vshll.u32 %v6915_v35, 16  ;;  %v661_v53 = vmax.f32 %v643_v39, 0.0  ;;  %v6968_v33 = vld [vmem:[%s8358_s4 + $0x2] ss:$0 sm:$0xff] }
 0x107   : > { %v6937_v54 = vpop.f32.mrb[10].mxu0  ;;  %v5619_v55 = vpack.c.bf16 %v663_v47, %v663_v47  ;;  %v5627_v56 = vpack.c.bf16 %v941_v48, %v941_v48  ;;  %v939_v57 = vmax.f32 %v921_v43, 0.0  ;;  %v654_v59 = vadd.f32 %v5856_v13, %v6867_v30 }
 0x108   : > { %v6940_v60 = vpop.f32.mrb[11].mxu0  ;;  %v6946_v62 = vor.u32 %v703_v46, %v6925_v41  ;;  %v6948_v63 = vrot.slane %v976_v42, 7  ;;  %v5617_v0 = vpack.c.bf16 %v661_v53, %v661_v53  ;;  %v646_v2 = vadd.f32 %v6867_v30, %v645_v18  ;;  %v6436_v30 = vld [vmem:[%s8359_s5 + $0x8] sm:$0xff]  }
 0x109   : > { %v745_v3 = vshrl.u32 %v5619_v55, 16  ;;  %v748_v4 = vshll.u32 %v5619_v55, 16  ;;  %v1021_v5 = vshrl.u32 %v5627_v56, 16  ;;  %v970_v6 = vrot.slane %v968_v15, 7  ;;  %v6437_v15 = vld [vmem:[%s8359_s5 + $0x10] sm:$0xff]   ;;  %5891 = vmatprep.subr.bf16.mxu1 %v6436_v30 }
 0x10a   : > { %v1024_v9 = vshll.u32 %v5627_v56, 16  ;;  %v727_v10 = vshrl.u32 %v5617_v0, 16  ;;  %v5625_v11 = vpack.c.bf16 %v939_v57, %v939_v57  ;;  %v664_v12 = vmax.f32 %v654_v59, 0.0  ;;  %5892 = vmatpush3.bf16.msra.mxu1 %v6436_v30 }
 0x10b   : > { %v6951_v13 = vrot.slane %v745_v3, 7  ;;  %v6953_v14 = vrot.slane %v1021_v5, 7  ;;  %v662_v16 = vmax.f32 %v646_v2, 0.0  ;;  %v971_v17 = vshll.u32 %v6881_v58, 16  ;;  %5893 = vmatprep.subr.bf16.mxu1 %v6437_v15 }
 0x10c   : > { %v707_v18 = vrot.slane %v6925_v41, 4  ;;  %v6963_v22 = vrot.slane %v727_v10, 7  ;;  %v1003_v29 = vshrl.u32 %v5625_v11, 16  ;;  %v5620_v31 = vpack.c.bf16 %v664_v12, %v664_v12  ;;  %v786_v10 = vld [vmem:[#allocation2 + $0x24] sm:$0x1] }
 0x10d   : > { %v5887_v58 = vpop.f32.mrb[12].mxu0  ;;  %v983_v34 = vrot.slane %v6948_v63, 4  ;;  %v6972_v37 = vor.u32 %v748_v4, %v6951_v13  ;;  %v730_v38 = vshll.u32 %v5617_v0, 16  ;;  %v1006_v39 = vshll.u32 %v5625_v11, 16 }
 0x10e   : > { %v6974_v42 = vpop.f32.mrb[13].mxu0  ;;  %v6978_v46 = vor.u32 %v1024_v9, %v6953_v14  ;;  %v6980_v47 = vrot.slane %v1003_v29, 7  ;;  %v754_v48 = vshrl.u32 %v5620_v31, 16  ;;  %v1028_v55 = vrot.slane %v6953_v14, 4  ;;  %5894 = vmatpush3.bf16.msra.mxu1 %v6437_v15 }
 0x10f   : > { %v6982_v53 = vpop.f32.mrb[14].mxu0  ;;  %v5618_v56 = vpack.c.bf16 %v662_v16, %v662_v16  ;;  %v973_v57 = vor.u32 %v971_v17, %v970_v6  ;;  %v1207_v59 = vadd.f32 %v5883_v44, %v6968_v33  ;;  %v8401_v0 = vmov 0 }
 0x110   : > { %v6986_v61 = vpop.f32.mrb[15].mxu0  ;;  %v8402_v0 = vsel %vm6990_vm11, 4294967295, %v8401_v0  ;;  %v6995_v2 = vor.u32 %v730_v38, %v6963_v22  ;;  %v756_v3 = vrot.slane %v754_v48, 7  ;;  %v757_v4 = vshll.u32 %v5620_v31, 16 }
 0x111   : > { %v974_v5 = vrot.slane %v970_v6, 4  ;;  %v6998_v9 = vor.u32 %v1006_v39, %v6980_v47  ;;  %v736_v11 = vshrl.u32 %v5618_v56, 16  ;;  %1038 = vrot.lane.b32.xlu0 %v973_v57, %s6654_s16  ;;  %v1231_v12 = vmax.f32 %v1207_v59, 0.0 }
 0x112   : > { %v981_v16 = vor.u32 %v979_v52, %v6948_v63  ;;  %v761_v6 = vrot.slane %v756_v3, 4  ;;  %v739_v17 = vshll.u32 %v5618_v56, 16  ;;  %v1199_v30 = vadd.f32 %v6968_v33, %v6930_v49 }
 0x113   : > { %v1210_v29 = vadd.f32 %v6937_v54, %v6968_v33  ;;  %v7014_v31 = vrot.slane %v736_v11, 7  ;;  %v5631_v38 = vpack.c.bf16 %v1231_v12, %v1231_v12  ;;  %v1202_v48 = vadd.f32 %v6968_v33, %v6940_v60  ;;  %v6439_v12 = vld [vmem:[%s8359_s5 + $0x90] sm:$0xff]  }
 0x114   : > { %v982_v39 = vsel %vm6990_vm11, %v974_v5, %v981_v16  ;;  %v787_v35 = vsel %vm7002_vm12, %v761_v6, %v786_v10  ;;  %v1229_v52 = vmax.f32 %v1199_v30, 0.0  ;;  %v932_v54 = vadd.f32 %v6897_v19, %v6872_v32  ;;  %5949 = vmatprep.subr.bf16.mxu0 %v6439_v12 }
 0x115   : > { %1040 = vrot.lane.b32.xlu1 %v982_v39, %s6654_s16  ;;  %v1232_v49 = vmax.f32 %v1210_v29, 0.0  ;;  %v1010_v63 = vrot.slane %v6980_v47, 4  ;;  %v7026_v15 = vor.u32 %v757_v4, %v756_v3  ;;  %788 = vst [vmem:[#allocation2 + $0x24] sm:$0x1] %v787_v35  ;;  %v7029_v56 = vor.u32 %v739_v17, %v7014_v31  ;;  %v6438_v4 = vld [vmem:[%s8359_s5 + $0x18] sm:$0xff]   ;;  %5950 = vmatpush3.bf16.msra.mxu0 %v6439_v12 }
 0x116   : > { %v1279_v57 = vshrl.u32 %v5631_v38, 16  ;;  %v7031_v60 = vpack.c.bf16 %v1229_v52, %v1229_v52  ;;  %v1230_v5 = vmax.f32 %v1202_v48, 0.0  ;;  %v942_v44 = vmax.f32 %v932_v54, 0.0  ;;  %5895 = vmatprep.subr.bf16.mxu1 %v6438_v4  ;;  %v6441_v35 = vld [vmem:[%s8359_s5 + $0x98] sm:$0xff]  }
 0x117   : > { %v5632_v59 = vpack.c.bf16 %v1232_v49, %v1232_v49  ;;  %v924_v11 = vadd.f32 %v6872_v32, %v6906_v24  ;;  %v991_v19 = vsel %vm6990_vm11, %v983_v34, %v6909_v25  ;;  %v1223_v3 = vadd.f32 %v5887_v58, %v6968_v33  ;;  %5896 = vmatpush3.bf16.msra.mxu1 %v6438_v4 }
 0x118   : > { %v7033_v10 = vrot.slane %v1279_v57, 7  ;;  %v1282_v6 = vshll.u32 %v5631_v38, 16  ;;  %v1262_v17 = vshrl.u32 %v7031_v60, 16  ;;  %v1265_v24 = vshll.u32 %v7031_v60, 16  ;;  %v6440_v38 = vld [vmem:[%s8359_s5 + $0x20] sm:$0xff]   ;;  %5951 = vmatprep.subr.bf16.mxu0 %v6441_v35 }
 0x119   : > { %v1288_v32 = vshrl.u32 %v5632_v59, 16  ;;  %1042 = vrot.lane.b32.xlu1 %v991_v19, %s6654_s16  ;;  %v1291_v25 = vshll.u32 %v5632_v59, 16  ;;  %v5630_v58 = vpack.c.bf16 %v1230_v5, %v1230_v5  ;;  %v5628_v34 = vpack.c.bf16 %v942_v44, %v942_v44  ;;  %5897 = vmatprep.subr.bf16.mxu1 %v6440_v38 }
 0x11a   : > { %v1284_v30 = vor.u32 %v1282_v6, %v7033_v10  ;;  %v1264_v29 = vrot.slane %v1262_v17, 7  ;;  %v940_v39 = vmax.f32 %v924_v11, 0.0  ;;  %v1235_v48 = vmax.f32 %v1223_v3, 0.0  ;;  %5952 = vmatpush3.bf16.msra.mxu0 %v6441_v35 }
 0x11b   : > { %v1286_v52 = vrot.slane %v7033_v10, 4  ;;  %v7059_v49 = vrot.slane %v1288_v32, 7  ;;  %v1270_v54 = vshrl.u32 %v5630_v58, 16  ;;  %v1030_v57 = vshrl.u32 %v5628_v34, 16  ;;  %5898 = vmatpush3.bf16.msra.mxu1 %v6440_v38 }
 0x11c   : > { %v1268_v60 = vrot.slane %v1264_v29, 4  ;;  %v1273_v59 = vshll.u32 %v5630_v58, 16  ;;  %v1033_v5 = vshll.u32 %v5628_v34, 16  ;;  %v5626_v44 = vpack.c.bf16 %v940_v39, %v940_v39  ;;  %v6442_v58 = vld [vmem:[%s8359_s5 + $0x28] sm:$0xff]   ;;  %v6443_v34 = vld [vmem:[%s8359_s5 + $0xa0] sm:$0xff]  }
 0x11d   : > { %v1272_v11 = vrot.slane %v1270_v54, 7  ;;  %v7061_v19 = vrot.slane %v1030_v57, 7  ;;  %v5635_v3 = vpack.c.bf16 %v1235_v48, %v1235_v48  ;;  %v1215_v4 = vadd.f32 %v6968_v33, %v6974_v42  ;;  %5899 = vmatprep.subr.bf16.mxu1 %v6442_v58  ;;  %5953 = vmatprep.subr.bf16.mxu0 %v6443_v34 }
 0x11e   : > { %v1012_v12 = vshrl.u32 %v5626_v44, 16  ;;  %v1015_v6 = vshll.u32 %v5626_v44, 16  ;;  %v1226_v17 = vadd.f32 %v6982_v53, %v6968_v33  ;;  %v1218_v32 = vadd.f32 %v6968_v33, %v6986_v61  ;;  %5954 = vmatpush3.bf16.msra.mxu0 %v6443_v34 }
 0x11f   : > { %v1293_v42 = vor.u32 %v1291_v25, %v7059_v49  ;;  %v1275_v39 = vor.u32 %v1273_v59, %v1272_v11  ;;  %v1277_v48 = vrot.slane %v1272_v11, 4  ;;  %v1315_v54 = vshrl.u32 %v5635_v3, 16  ;;  %5900 = vmatpush3.bf16.msra.mxu1 %v6442_v58  ;;  %v7083_v59 = vld [vmem:[%s8359_s5 + $0x30] sm:$0xff]  }
 0x120   : > { %v1035_v53 = vor.u32 %v1033_v5, %v7061_v19  ;;  %v1014_v57 = vrot.slane %v1012_v12, 7  ;;  %v1233_v44 = vmax.f32 %v1215_v4, 0.0  ;;  %v1236_v33 = vmax.f32 %v1226_v17, 0.0  ;;  %5909 = vmatprep.subr.bf16.mxu1 %v7083_v59 }
 0x121   : > { %v1317_v61 = vrot.slane %v1315_v54, 7  ;;  %v1234_v38 = vmax.f32 %v1218_v32, 0.0  ;;  %v1267_v35 = vor.u32 %v1265_v24, %v1264_v29  ;;  %v1285_v27 = vsel %vm6990_vm11, %v1277_v48, %v1284_v30  ;;  %v6446_v24 = vld [vmem:[%s8359_s5 + $0xa8] sm:$0xff]  }
 0x122   : > { %v1017_v43 = vor.u32 %v1015_v6, %v1014_v57  ;;  %v1019_v16 = vrot.slane %v1014_v57, 4  ;;  %v5633_v21 = vpack.c.bf16 %v1233_v44, %v1233_v44  ;;  %v5636_v25 = vpack.c.bf16 %v1236_v33, %v1236_v33  ;;  %1336 = vrot.lane.b32.xlu1 %v1285_v27, %s6655_s21  ;;  %5955 = vmatprep.subr.bf16.mxu0 %v6446_v24 }
 0x123   : > { %v1318_v29 = vshll.u32 %v5635_v3, 16  ;;  %v1322_v5 = vrot.slane %v1317_v61, 4  ;;  %v5634_v30 = vpack.c.bf16 %v1234_v38, %v1234_v38  ;;  %1332 = vrot.lane.b32.xlu0 %v1267_v35, %s6655_s21  ;;  %v1276_v11 = vsel %vm6990_vm11, %v1268_v60, %v1275_v39  ;;  %5956 = vmatpush3.bf16.msra.mxu0 %v6446_v24 }
 0x124   : > { %v1297_v27 = vshrl.u32 %v5633_v21, 16  ;;  %v1300_v4 = vshll.u32 %v5633_v21, 16  ;;  %v1324_v12 = vshrl.u32 %v5636_v25, 16  ;;  %v1327_v6 = vshll.u32 %v5636_v25, 16  ;;  %5957 = vmatprep.subr.bf16.mxu0 %v6451_v7 }
 0x125   : > { %v1306_v17 = vshrl.u32 %v5634_v30, 16  ;;  %v1309_v32 = vshll.u32 %v5634_v30, 16  ;;  %v1009_v3 = vsel %vm6990_vm11, %v1001_v51, %v6998_v9  ;;  %v1000_v60 = vsel %vm6990_vm11, %v992_v26, %v6933_v50 }
 0x126   : > { %v1299_v21 = vrot.slane %v1297_v27, 7  ;;  %v1326_v58 = vrot.slane %v1324_v12, 7  ;;  %1046 = vrot.lane.b32.xlu1 %v1009_v3, %s6654_s16  ;;  %v1027_v34 = vsel %vm6990_vm11, %v1019_v16, %v6978_v46  ;;  %v1018_v36 = vsel %vm6990_vm11, %v1010_v63, %v1017_v43  ;;  %v6452_v3 = vld [vmem:[%s8359_s5 + $0x40] sm:$0xff]  }
 0x127   : > { %v1320_v51 = vor.u32 %v1318_v29, %v1317_v61  ;;  %v1308_v9 = vrot.slane %v1306_v17, 7  ;;  %1334 = vrot.lane.b32.xlu0 %v1276_v11, %s6655_s21  ;;  %v1294_v26 = vsel %vm6990_vm11, %v1286_v52, %v1293_v42  ;;  %v1036_v50 = vsel %vm6990_vm11, %v1028_v55, %v1035_v53  ;;  %5958 = vmatpush3.bf16.msra.mxu0 %v6451_v7  ;;  %v6450_v29 = vld [vmem:[%s8359_s5 + $0x38] sm:$0xff]  }
 0x128   : > { %v1295_v43 = vrot.slane %v7059_v49, 4  ;;  %v1302_v46 = vor.u32 %v1300_v4, %v1299_v21  ;;  %v1304_v47 = vrot.slane %v1299_v21, 4  ;;  %v1329_v63 = vor.u32 %v1327_v6, %v1326_v58 }
 0x129   : > { %v1311_v16 = vor.u32 %v1309_v32, %v1308_v9  ;;  %v1313_v39 = vrot.slane %v1308_v9, 4  ;;  %v706_v10 = vsel %vm6990_vm11, %v698_v28, %v6946_v62  ;;  %v715_v14 = vsel %vm6990_vm11, %v707_v18, %v6900_v20  ;;  %v6453_v20 = vld [vmem:[%s8359_s5 + $0xb8] sm:$0xff]  }
 0x12a   : > { %v734_v55 = vrot.slane %v6963_v22, 4  ;;  %1050 = vrot.lane.b32.xlu1 %v1027_v34, %s6654_s16  ;;  %v1303_v52 = vsel %vm6990_vm11, %v1295_v43, %v1302_v46  ;;  %v1330_v49 = vsel %vm6990_vm11, %v1322_v5, %v1329_v63  ;;  %777 = vst.msk [vmem:[#allocation2 + $0x8] sm:$0xf] %vm771_vm7, %v706_v10  ;;  %778 = vst.msk [vmem:[#allocation2 + $0xc] sm:$0xf] %vm771_vm7, %v715_v14  ;;  %v8405_v23 = vrot.slane %v6884_v1, 4 }
 0x12b   : > { %v733_v8 = vsel %vm6990_vm11, %v725_v45, %v6995_v2  ;;  %1044 = vrot.lane.b32.xlu0 %v1000_v60, %s6654_s16  ;;  %v1321_v28 = vsel %vm6990_vm11, %v1313_v39, %v1320_v51  ;;  %v1312_v41 = vsel %vm6990_vm11, %v1304_v47, %v1311_v16  ;;  %v8406_v62 = vrot.slane %v7014_v31, 4  ;;  %5959 = vmatprep.subr.bf16.mxu0 %v6453_v20  ;;  %v1684_v5 = vld [vmem:[#allocation2] sm:$0xf]  ;;  %v6458_v14 = vld [vmem:[%s8359_s5 + $0xc8] sm:$0xff]  }
 0x12c   : > { %780 = vst.msk [vmem:[#allocation2 + $0x14] sm:$0xf] %vm771_vm7, %v733_v8  ;;  %v724_v45 = vsel %vm6990_vm11, %v8405_v23, %v6923_v40  ;;  %v742_v22 = vsel %vm6990_vm11, %v734_v55, %v7029_v56  ;;  %v8407_v1 = vrot.slane %v6951_v13, 4  ;;  %5960 = vmatpush3.bf16.msra.mxu0 %v6453_v20  ;;  %v1331_v13 = vrot.slane %v1326_v58, 4  ;;  %v6454_v58 = vld [vmem:[%s8359_s5 + $0x48] sm:$0xff]  }
 0x12d   : > { %v751_v18 = vsel %vm6990_vm11, %v8406_v62, %v6972_v37  ;;  %779 = vst.msk [vmem:[#allocation2 + $0x10] sm:$0xf] %vm771_vm7, %v724_v45  ;;  %781 = vst.msk [vmem:[#allocation2 + $0x18] sm:$0xf] %vm771_vm7, %v742_v22  ;;  %v7182_v37 = vld [vmem:[%s8359_s5 + $0xc0] sm:$0xff]   ;;  %v1037_v2 = vrot.slane %v7061_v19, 4 }
 0x12e   : > { %782 = vst.msk [vmem:[#allocation2 + $0x1c] sm:$0xf] %vm771_vm7, %v751_v18  ;;  %v760_v40 = vsel %vm6990_vm11, %v8407_v1, %v7026_v15  ;;  %1340 = vrot.lane.b32.xlu1 %v1303_v52, %s6655_s21  ;;  %5969 = vmatprep.subr.bf16.mxu0 %v7182_v37  ;;  %v1067_v15 = vld [vmem:[#allocation2 + $0x4] sm:$0xf]  ;;  %vm1372_vm8 = vcmask 778752   ;;  %vm8374_vm12 = vcmask 519168  }
 0x12f   : > { %783 = vst.msk [vmem:[#allocation2 + $0x20] sm:$0xf] %vm771_vm7, %v760_v40  ;;  %1048 = vrot.lane.b32.xlu0 %v1018_v36, %s6654_s16  ;;  %v6457_v36 = vld [vmem:[%s8359_s5 + $0x50] sm:$0xff]   ;;  %v1080_v23 = vld [vmem:[#allocation2 + $0x24] sm:$0x1]  ;;  %vm7300_vm9 = vmand %vm1372_vm8, %vm485_vm2 }
 0x130   : > { %vm8372_vm7 = vsmask.f32 7424 }
 0x132   : > { %1344 = vrot.lane.b32.xlu1 %v1321_v28, %s6655_s21 }
 0x133   : > { %1338 = vrot.lane.b32.xlu0 %v1294_v26, %s6655_s21 }
 0x136   : > { %1346 = vrot.lane.b32.xlu1 %v1330_v49, %s6655_s21 }
 0x137   : > { %1342 = vrot.lane.b32.xlu0 %v1312_v41, %s6655_s21 }
 0x13a   : > { %1348 = vrot.lane.b32.xlu1 %v1331_v13, %s6655_s21  ;;  %s6362_s21 = smul.u32 1792, %s6755_s10  ;;  %s8313_s10 = scalar_lea.sflag [#allocation6], %s463_s17 }
 0x13b   : > { %1052 = vrot.lane.b32.xlu0 %v1036_v50, %s6654_s16 }
 0x13c   : > { %s8307_s18 = scalar_lea.hbm %s8367_s13, %s6362_s21 }
 0x13f   : > { %1054 = vrot.lane.b32.xlu0 %v1037_v2, %s6654_s16  ;;  %s8272_s16 = scalar_lea.vmem [#allocation5], %s6361_s14  ;;  %s6595_s14 = scalar_lea.vmem %s6594_s22, 3584 }
 0x140   : > { %s5021_s24 = sshll.u32 %s8272_s16, 4  ;;  %s8300_s24 = int_to_ptr.vmem [resolvable:$true] %s5021_s24 }
 0x141   : > { %s6589_s26 = scalar_lea.vmem %s8300_s24, 1792  ;;  %p6596_p0 = scmp.lt.s32.totalorder %s8300_s24, %s6594_s22 }
 0x142   : > { %p6590_p11 = scmp.ne.s32.totalorder %s8300_s24, %s6589_s26  ;;  %p6597_p1 = scmp.lt.s32.totalorder %s6595_s14, %s6589_s26 }
 0x144   : > { %p6591_p12 = pnand %p6590_p11, %p6772_p5  ;;  %p6598_p2 = por %p6597_p1, %p6596_p0 }
 0x146   : > { %p6592_p13 = pneg %p6591_p12 }
 0x148   : > { %p6599_p3 = pnand %p6598_p2, %p6592_p13 }
 0x183   : > { %v1039_v31 = vpop.permute.xlu0 %1038 }
 0x184   : > { %v1068_v56 = vsel %vm1066_vm14, %v1039_v31, %v1067_v15  ;;  %v6462_v15 = vld [vmem:[%s8359_s5 + $0x58] sm:$0xff]  }
 0x185   : > { %1069 = vst [vmem:[#allocation2 + $0x4] sm:$0xf] %v1068_v56  ;;  %v6463_v56 = vld [vmem:[%s8359_s5 + $0xd0] sm:$0xff]  }
 0x187   : > { %v1041_v42 = vpop.permute.xlu1 %1040 }
 0x188   : > { %1071 = vst.msk [vmem:[#allocation2 + $0x8] sm:$0xf] %vm1065_vm13, %v1041_v42 }
 0x18b   : > { %v1043_v48 = vpop.permute.xlu1 %1042 }
 0x18c   : > { %1072 = vst.msk [vmem:[#allocation2 + $0xc] sm:$0xf] %vm1065_vm13, %v1043_v48  ;;  %v1361_v53 = vld [vmem:[#allocation2 + $0x4] sm:$0xf] }
 0x194   : > { %v1337_v19 = vpop.permute.xlu1 %1336 }
 0x195   : > { %v1333_v54 = vpop.permute.xlu0 %1332  ;;  %1366 = vst.msk [vmem:[#allocation2 + $0xc] sm:$0xf] %vm1359_vm15, %v1337_v19 }
 0x196   : > { %v1362_v57 = vsel %vm1360_vm1, %v1333_v54, %v1361_v53 }
 0x197   : > { %1363 = vst [vmem:[#allocation2 + $0x4] sm:$0xf] %v1362_v57 }
 0x198   : > { %v1047_v44 = vpop.permute.xlu1 %1046 }
 0x199   : > { %v1335_v33 = vpop.permute.xlu0 %1334  ;;  %1074 = vst.msk [vmem:[#allocation2 + $0x14] sm:$0xf] %vm1065_vm13, %v1047_v44  ;;  %v6470_v44 = vld [vmem:[%s8359_s5 + $0x60] sm:$0xff]  }
 0x19a   : > { %1365 = vst.msk [vmem:[#allocation2 + $0x8] sm:$0xf] %vm1359_vm15, %v1335_v33  ;;  %v6471_v33 = vld [vmem:[%s8359_s5 + $0xd8] sm:$0xff]  }
 0x19c   : > { %v1051_v61 = vpop.permute.xlu1 %1050  ;;  %v1687_v17 = vld [vmem:[#allocation2 + $0xc] sm:$0xf] }
 0x19d   : > { %v1045_v38 = vpop.permute.xlu0 %1044  ;;  %1076 = vst.msk [vmem:[#allocation2 + $0x1c] sm:$0xf] %vm1065_vm13, %v1051_v61  ;;  %v7234_v50 = vld [vmem:[#allocation2 + $0xc] sm:$0xf] }
 0x19e   : > { %1073 = vst.msk [vmem:[#allocation2 + $0x10] sm:$0xf] %vm1065_vm13, %v1045_v38  ;;  %v6444_v35 = vld [vmem:[#allocation2] sm:$0xff]  }
 0x19f   : > { %5901 = vmatprep.mubr.msk.bf16.mxu1 %vm1574_vm3, %v6444_v35  ;;  %v7205_v24 = vld [vmem:[#allocation2 + $0x4] sm:$0xf] }
 0x1a0   : > { %v1341_v25 = vpop.permute.xlu1 %1340  ;;  %v5224_v6 = vcombine.low %v1684_v5, %v7205_v24  ;;  %v2208_v51 = vld [vmem:[#allocation2 + $0x4] sm:$0xf] }
 0x1a1   : > { %v1049_v30 = vpop.permute.xlu0 %1048  ;;  %1368 = vst.msk [vmem:[#allocation2 + $0x14] sm:$0xf] %vm1359_vm15, %v1341_v25  ;;  %v6447_v11 = vld [vmem:[#allocation2 + $0x8] sm:$0xff]  }
 0x1a2   : > { %v1686_v27 = vld [vmem:[#allocation2 + $0x8] sm:$0xf]  ;;  %1075 = vst.msk [vmem:[#allocation2 + $0x18] sm:$0xf] %vm1065_vm13, %v1049_v30  ;;  %5902 = vmatmul.mubr.msk.bf16.vlgmr.msra.gmra.mrb[8].mxu1 %vm1574_vm3, %v6447_v11  ;;  %v1731_v52 = vshrl.u32 %v5224_v6, 16 }
 0x1a3   : > { %v5274_v4 = vcombine.low %v7205_v24, %v1686_v27  ;;  %5910 = vmatpush3.bf16.msra.mxu1 %v7083_v59  ;;  %v7222_v60 = vcombine.low %v1686_v27, %v1687_v17  ;;  %v1733_v59 = vshll.u32 %v5224_v6, 16  ;;  %v7227_v34 = vld [vmem:[#allocation2 + $0x8] sm:$0xf]  ;;  %v6484_v27 = vld [vmem:[%s8359_s5 + $0x160] sm:$0xff]  }
 0x1a4   : > { %v1345_v12 = vpop.permute.xlu1 %1344  ;;  %5911 = vmatprep.subr.bf16.mxu1 %v6450_v29  ;;  %v7239_v46 = vcombine.low %v2208_v51, %v7227_v34  ;;  %v6473_v51 = vld [vmem:[%s8359_s5 + $0xe0] sm:$0xff]  }
 0x1a5   : > { %5961 = vmatprep.mubr.msk.bf16.mxu0 %vm1574_vm3, %v5274_v4  ;;  %v1339_v32 = vpop.permute.xlu0 %1338  ;;  %1370 = vst.msk [vmem:[#allocation2 + $0x1c] sm:$0xf] %vm1359_vm15, %v1345_v12  ;;  %v1735_v9 = vrot.slane %v1733_v59, 1  ;;  %v1738_v26 = vshll.u32 %v7222_v60, 16  ;;  %v1742_v53 = vshrl.u32 %v7222_v60, 16 }
 0x1a6   : > { %1367 = vst.msk [vmem:[#allocation2 + $0x10] sm:$0xf] %vm1359_vm15, %v1339_v32  ;;  %v2256_v18 = vshll.u32 %v7239_v46, 16  ;;  %v2254_v57 = vshrl.u32 %v7239_v46, 16  ;;  %v1887_v32 = vld [vmem:[#allocation2] sm:$0xe] }
 0x1a7   : > { %5912 = vmatpush3.bf16.msra.mxu1 %v6450_v29  ;;  %v1736_v45 = vor.u32 %v1735_v9, %v1731_v52  ;;  %v1740_v62 = vrot.slane %v1738_v26, 1 }
 0x1a8   : > { %5913 = vmatprep.subr.bf16.mxu1 %v6452_v3  ;;  %v1689_v7 = vld [vmem:[#allocation2 + $0x14] sm:$0xf]  ;;  %v1347_v39 = vpop.permute.xlu1 %1346  ;;  %v2258_v19 = vrot.slane %v2256_v18, 1 }
 0x1a9   : > { %v1343_v21 = vpop.permute.xlu0 %1342  ;;  %v7236_v43 = vld [vmem:[#allocation2 + $0x14] sm:$0xf]  ;;  %v1741_v48 = vsel %vm8372_vm7, %v1736_v45, %v1740_v62  ;;  %v1744_v4 = vor.u32 %v1742_v53, %v1740_v62  ;;  %v2714_v45 = vld [vmem:[#allocation2 + $0x8] sm:$0xf]  ;;  %v7345_v62 = vld [vmem:[#allocation2 + $0xc] sm:$0xf] }
 0x1aa   : > { %1369 = vst.msk [vmem:[#allocation2 + $0x18] sm:$0xf] %vm1359_vm15, %v1343_v21  ;;  %v2259_v12 = vor.u32 %v2258_v19, %v2254_v57 }
 0x1ab   : > { %5914 = vmatpush3.bf16.msra.mxu1 %v6452_v3 }
 0x1ac   : > { %5915 = vmatprep.subr.bf16.mxu1 %v6454_v58  ;;  %v1691_v20 = vld [vmem:[#allocation2 + $0x1c] sm:$0xf]  ;;  %v1349_v59 = vpop.permute.xlu1 %1348 }
 0x1ad   : > { %v1053_v47 = vpop.permute.xlu0 %1052  ;;  %v6456_v63 = vld [vmem:[#allocation2 + $0x10] sm:$0xff]   ;;  %v7321_v26 = vld [vmem:[#allocation2 + $0x1c] sm:$0xf] }
 0x1ae   : > { %v1688_v16 = vld [vmem:[#allocation2 + $0x10] sm:$0xf]  ;;  %1077 = vst.msk [vmem:[#allocation2 + $0x20] sm:$0xf] %vm1065_vm13, %v1053_v47  ;;  %5905 = vmatprep.mubr.msk.bf16.mxu1 %vm1574_vm3, %v6456_v63  ;;  %vm500_vm13 = vcmask 516096  }
 0x1af   : > { %v5275_v10 = vcombine.low %v1687_v17, %v1688_v16  ;;  %v7245_v55 = vcombine.low %v1688_v16, %v1689_v7  ;;  %v7247_v49 = vld [vmem:[#allocation2 + $0x10] sm:$0xf]  ;;  %1371 = vst.msk [vmem:[#allocation2 + $0x20] sm:$0xf] %vm1359_vm15, %v1347_v39  ;;  %5916 = vmatpush3.bf16.msra.mxu1 %v6454_v58  ;;  %v6472_v17 = vld [vmem:[%s8359_s5 + $0x68] sm:$0xff]   ;;  %v5251_v39 = vcombine.low %v1887_v32, %v7205_v24  ;;  %vm7523_vm14 = vmand %vm500_vm13, %vm485_vm2 }
 0x1b0   : > { %v7259_v28 = vcombine.low %v7234_v50, %v7247_v49  ;;  %v5351_v41 = vcombine.low %v7247_v49, %v7236_v43  ;;  %5917 = vmatprep.subr.bf16.mxu1 %v6457_v36  ;;  %v6474_v16 = vld [vmem:[%s8359_s5 + $0x70] sm:$0xff]   ;;  %vm7534_vm15 = vmand %vm8374_vm12, %vm491_vm5 }
 0x1b1   : > { %5962 = vmatmul.mubr.msk.bf16.vlgmr.msra.gmra.mrb[16].mxu0 %vm1574_vm3, %v5275_v10  ;;  %v1055_v22 = vpop.permute.xlu0 %1054  ;;  %v6459_v1 = vld [vmem:[#allocation2 + $0x18] sm:$0xff]   ;;  %v1746_v13 = vshll.u32 %v7245_v55, 16  ;;  %v1750_v25 = vshrl.u32 %v7245_v55, 16 }
 0x1b2   : > { %5970 = vmatpush3.bf16.msra.mxu0 %v7182_v37  ;;  %v1690_v40 = vld [vmem:[#allocation2 + $0x18] sm:$0xf]  ;;  %v1081_v2 = vsel %vm7253_vm6, %v1055_v22, %v1080_v23  ;;  %v2261_v42 = vshll.u32 %v7259_v28, 16  ;;  %5906 = vmatmul.mubr.msk.bf16.gmra.mrb[12].mxu1 %vm1574_vm3, %v6459_v1  ;;  %v1906_v23 = vrot.slane %v7222_v60, 1  ;;  %v1905_v22 = vrot.slane %v5251_v39, 1  ;;  %v6491_v60 = vld [vmem:[%s8359_s5 + $0x100] sm:$0xff]  }
 0x1b3   : > { %5971 = vmatprep.subr.bf16.mxu0 %v6458_v14  ;;  %v5276_v31 = vcombine.low %v1689_v7, %v1690_v40  ;;  %v7275_v37 = vcombine.low %v1690_v40, %v1691_v20  ;;  %1082 = vst [vmem:[#allocation2 + $0x24] sm:$0x1] %v1081_v2  ;;  %5918 = vmatpush3.bf16.msra.mxu1 %v6457_v36  ;;  %v1748_v61 = vrot.slane %v1746_v13, 1  ;;  %v7294_v5 = vld [vmem:[#allocation2 + $0x18] sm:$0xf]  ;;  %v6478_v2 = vld [vmem:[%s8359_s5 + $0x150] sm:$0xff]  }
 0x1b4   : > { %5921 = vmatprep.mubr.msk.bf16.mxu1 %vm1574_vm3, %v1741_v48  ;;  %5919 = vmatprep.subr.bf16.mxu1 %v6462_v15  ;;  %v7291_v35 = vrot.slane %v2261_v42, 1  ;;  %v7312_v58 = vcombine.low %v7236_v43, %v7294_v5  ;;  %v5352_v10 = vcombine.low %v7294_v5, %v7321_v26  ;;  %v6477_v1 = vld [vmem:[%s8359_s5 + $0x78] sm:$0xff]  }
 0x1b5   : > { %5965 = vmatprep.mubr.msk.bf16.mxu0 %vm1574_vm3, %v5276_v31  ;;  %v1754_v54 = vshll.u32 %v7275_v37, 16  ;;  %v1752_v6 = vor.u32 %v1750_v25, %v1748_v61  ;;  %v1749_v7 = vsel %vm8372_vm7, %v1744_v4, %v1748_v61  ;;  %v1758_v52 = vshrl.u32 %v7275_v37, 16  ;;  %v7408_v39 = vld [vmem:[#allocation2 + $0x18] sm:$0xff]  }
 0x1b6   : > { %5972 = vmatpush3.bf16.msra.mxu0 %v6458_v14  ;;  %v2059_v38 = vld [vmem:[#allocation2 + $0x20] sm:$0xf]  ;;  %v2264_v36 = vsel %vm8372_vm7, %v2259_v12, %v7291_v35  ;;  %v6475_v14 = vld [vmem:[%s8359_s5 + $0xe8] sm:$0xff]   ;;  %v5376_v31 = vcombine.low %v2714_v45, %v7345_v62  ;;  %v2273_v48 = vshrl.u32 %v7312_v58, 16  ;;  %v6492_v45 = vld [vmem:[%s8359_s5 + $0x178] sm:$0xff]  }
 0x1b7   : > { %5973 = vmatprep.subr.bf16.mxu0 %v6463_v56  ;;  %v5277_v29 = vcombine.low %v1691_v20, %v2059_v38  ;;  %v1756_v30 = vrot.slane %v1754_v54, 1  ;;  %v7296_v11 = vld [vmem:[#allocation2 + $0x20] ss:$0 sps:$4 sm:$0x11]   ;;  %5920 = vmatpush3.bf16.msra.mxu1 %v6462_v15  ;;  %v2269_v20 = vshll.u32 %v7312_v58, 16  ;;  %v2265_v15 = vshrl.u32 %v7259_v28, 16 }
 0x1b8   : > { %5929 = vmatprep.subr.bf16.mxu1 %v6470_v44  ;;  %v7307_v3 = vld [vmem:[#allocation2 + $0x20] sm:$0xf]  ;;  %v1762_v9 = vshll.u32 %v7296_v11, 16  ;;  %v7365_v54 = vld [vmem:[#allocation2 + $0x10] sm:$0xff]   ;;  %v2762_v61 = vshll.u32 %v5376_v31, 16 }
 0x1b9   : > { %5966 = vmatmul.mubr.msk.bf16.gmra.mrb[20].mxu0 %vm1574_vm3, %v5277_v29  ;;  %v1757_v47 = vsel %vm8372_vm7, %v1752_v6, %v1756_v30  ;;  %v7331_v63 = vcombine.low %v7321_v26, %v7307_v3  ;;  %v1760_v24 = vor.u32 %v1758_v52, %v1756_v30  ;;  %v2271_v13 = vrot.slane %v2269_v20, 1  ;;  %v6482_v30 = vld [vmem:[%s8359_s5 + $0x88] sm:$0xff]   ;;  %v2410_v52 = vld [vmem:[#allocation2 + $0x4] sm:$0xe] }
 0x1ba   : > { %5974 = vmatpush3.bf16.msra.mxu0 %v6463_v56  ;;  %v1374_v21 = vld [vmem:[#allocation2 + $0x24] sm:$0x1]  ;;  %5981 = vmatprep.mubr.msk.bf16.mxu0 %vm1574_vm3, %v2264_v36  ;;  %v1764_v8 = vrot.slane %v1762_v9, 1  ;;  %v1907_v56 = vsel %vm8371_vm10, %v1905_v22, %v1906_v23  ;;  %v2267_v53 = vor.u32 %v2265_v15, %v7291_v35  ;;  %v2767_v29 = vshll.u32 %v7365_v54, 16 }
 0x1bb   : > { %5975 = vmatprep.subr.bf16.mxu0 %v6471_v33  ;;  %v1375_v46 = vsel %vm7300_vm9, %v1349_v59, %v1374_v21  ;;  %5922 = vmatmul.mubr.msk.bf16.vlgmr.msra.gmra.mrb[16].mxu1 %vm1574_vm3, %v1749_v7  ;;  %v2277_v18 = vshll.u32 %v7331_v63, 16  ;;  %v2275_v57 = vor.u32 %v2273_v48, %v2271_v13  ;;  %v2764_v4 = vrot.slane %v2762_v61, 1  ;;  %v6487_v7 = vld [vmem:[%s8359_s5 + $0xf0] sm:$0xff]   ;;  %v6498_v61 = vld [vmem:[%s8359_s5 + $0x118] sm:$0xff]   ;;  %v6514_v26 = vld [vmem:[%s8359_s5 + $0x1a0] sm:$0xff]  }
 0x1bc   : > { %1376 = vst [vmem:[#allocation2 + $0x24] sm:$0x1] %v1375_v46  ;;  %5930 = vmatpush3.bf16.msra.mxu1 %v6470_v44  ;;  %5925 = vmatprep.mubr.msk.bf16.mxu1 %vm1574_vm3, %v1757_v47  ;;  %v1765_v40 = vsel %vm8372_vm7, %v1760_v24, %v1764_v8  ;;  %v6480_v44 = vld [vmem:[%s8359_s5 + $0x80] sm:$0xff]   ;;  %v2272_v38 = vsel %vm8372_vm7, %v2267_v53, %v2271_v13  ;;  %v2281_v12 = vshrl.u32 %v7331_v63, 16  ;;  %v2769_v32 = vrot.slane %v2767_v29, 1  ;;  %v6497_v48 = vld [vmem:[%s8359_s5 + $0x110] sm:$0xff]  }
 0x1bd   : > { %5931 = vmatprep.subr.bf16.mxu1 %v6472_v17  ;;  %v2279_v19 = vrot.slane %v2277_v18, 1  ;;  %v1908_v36 = vrot.slane %v7245_v55, 1  ;;  %v1910_v46 = vrot.slane %v7275_v37, 1  ;;  %v6489_v55 = vld [vmem:[%s8359_s5 + $0xf8] sm:$0xff]   ;;  %v6490_v37 = vld [vmem:[%s8359_s5 + $0x170] sm:$0xff]   ;;  %v5327_v20 = vcombine.low %v2410_v52, %v7227_v34  ;;  %v6500_v29 = vld [vmem:[%s8359_s5 + $0x120] sm:$0xff]  }
 0x1be   : > { %5976 = vmatpush3.bf16.msra.mxu0 %v6471_v33  ;;  %v6481_v33 = vld [vmem:[%s8359_s5 + $0x158] sm:$0xff]   ;;  %v2775_v24 = vshll.u32 %v7408_v39, 16  ;;  %v2428_v18 = vrot.slane %v7259_v28, 1 }
 0x1bf   : > { %5977 = vmatprep.subr.bf16.mxu0 %v6473_v51  ;;  %v2280_v35 = vsel %vm8372_vm7, %v2275_v57, %v2279_v19  ;;  %v2283_v59 = vor.u32 %v2281_v12, %v2279_v19  ;;  %v7438_v19 = vld [vmem:[#allocation2 + $0x28] ss:$0 sps:$4 sm:$0x11]  }
 0x1c0   : > { %5932 = vmatpush3.bf16.msra.mxu1 %v6472_v17  ;;  %v2760_v17 = vshrl.u32 %v5376_v31, 16  ;;  %v2777_v13 = vrot.slane %v2775_v24, 1  ;;  %v2779_v31 = vshrl.u32 %v7408_v39, 16  ;;  %v6501_v12 = vld [vmem:[%s8359_s5 + $0x128] sm:$0xff]   ;;  %v8414_v24 = vmov 0  }
 0x1c1   : > { %5933 = vmatprep.subr.bf16.mxu1 %v6474_v16  ;;  %511 = vst.msk [vmem:[#allocation3 + $0x28] sm:$0x1] %vm500_vm13, %v8414_v24 }
 0x1c2   : > { %5978 = vmatpush3.bf16.msra.mxu0 %v6473_v51  ;;  %v2765_v21 = vor.u32 %v2764_v4, %v2760_v17  ;;  %v6488_v51 = vld [vmem:[%s8359_s5 + $0x168] sm:$0xff]   ;;  %v2781_v53 = vor.u32 %v2779_v31, %v2777_v13  ;;  %v2432_v4 = vrot.slane %v7331_v63, 1  ;;  %499 = vst.msk [vmem:[#allocation3] sm:$0xf] %vm8374_vm12, %v8414_v24 }
 0x1c3   : > { %5979 = vmatprep.subr.bf16.mxu0 %v6475_v14  ;;  %5926 = vmatmul.mubr.msk.bf16.gmra.mrb[20].mxu1 %vm1574_vm3, %v1765_v40  ;;  %v7361_v42 = vld [vmem:[#allocation2 + $0x24] ss:$0 sps:$4 sm:$0x11]   ;;  %v6494_v40 = vld [vmem:[%s8359_s5 + $0x108] sm:$0xff]  }
 0x1c4   : > { %5934 = vmatpush3.bf16.msra.mxu1 %v6474_v16  ;;  %5941 = vmatprep.mubr.msk.bf16.mxu1 %vm1574_vm3, %v1907_v56  ;;  %v2285_v25 = vshll.u32 %v7361_v42, 16  ;;  %v2770_v47 = vsel %vm8372_vm7, %v2765_v21, %v2769_v32  ;;  %v1909_v16 = vsel %vm8371_vm10, %v1906_v23, %v1908_v36  ;;  %v7413_v8 = vld [vmem:[#allocation2 + $0x20] sm:$0xff]   ;;  %v1912_v23 = vrot.slane %v7296_v11, 1 }
 0x1c5   : > { %5935 = vmatprep.subr.bf16.mxu1 %v6477_v1  ;;  %v2783_v22 = vshll.u32 %v7413_v8, 16  ;;  %v2434_v63 = vrot.slane %v7361_v42, 1  ;;  %v5350_v21 = vcombine.low %v7227_v34, %v7234_v50  ;;  %v6505_v42 = vld [vmem:[%s8359_s5 + $0x140] sm:$0xff]   ;;  %v6509_v50 = vld [vmem:[%s8359_s5 + $0x188] sm:$0xff]  }
 0x1c6   : > { %5980 = vmatpush3.bf16.msra.mxu0 %v6475_v14  ;;  %v2287_v6 = vrot.slane %v2285_v25, 1  ;;  %v1911_v14 = vsel %vm8371_vm10, %v1908_v36, %v1910_v46  ;;  %v1913_v11 = vsel %vm8371_vm10, %v1910_v46, %v1912_v23  ;;  %v6506_v36 = vld [vmem:[%s8359_s5 + $0x148] sm:$0xff]   ;;  %v6507_v34 = vld [vmem:[%s8359_s5 + $0x180] sm:$0xff]   ;;  %v507_v23 = vld [vmem:[#allocation3 + $0x24] sm:$0xf] }
 0x1c7   : > { %6029 = vmatprep.subr.bf16.mxu0 %v6478_v2  ;;  %v2785_v15 = vrot.slane %v2783_v22, 1  ;;  %v2565_v46 = vld [vmem:[#allocation2 + $0x24] sm:$0xf]  ;;  %v8415_v22 = vmov 0 }
 0x1c8   : > { %5936 = vmatpush3.bf16.msra.mxu1 %v6477_v1  ;;  %v2288_v9 = vsel %vm8372_vm7, %v2283_v59, %v2287_v6  ;;  %v2427_v1 = vrot.slane %v5327_v20, 1  ;;  %v2435_v59 = vsel %vm8371_vm10, %v2432_v4, %v2434_v63  ;;  %v5353_v43 = vcombine.low %v7307_v3, %v2565_v46  ;;  %v6515_v3 = vld [vmem:[%s8359_s5 + $0x1a8] sm:$0xff]   ;;  %v502_v20 = vld [vmem:[#allocation3 + $0x4] sm:$0x1] }
 0x1c9   : > { %5982 = vmatmul.mubr.msk.bf16.vlgmr.msra.gmra.mrb[24].mxu0 %vm1574_vm3, %v2272_v38  ;;  %5937 = vmatprep.subr.bf16.mxu1 %v6480_v44  ;;  %v2787_v38 = vshrl.u32 %v7413_v8, 16  ;;  %v8416_v22 = vsel %vm7534_vm15, 4294967295, %v8415_v22 }
 0x1ca   : > { %5985 = vmatprep.mubr.msk.bf16.mxu0 %vm1574_vm3, %v2280_v35  ;;  %6030 = vmatpush3.bf16.msra.mxu0 %v6478_v2  ;;  %v2771_v2 = vshrl.u32 %v7365_v54, 16  ;;  %v2429_v28 = vsel %vm8371_vm10, %v2427_v1, %v2428_v18 }
 0x1cb   : > { %6031 = vmatprep.subr.bf16.mxu0 %v6481_v33  ;;  %v2789_v25 = vor.u32 %v2787_v38, %v2785_v15 }
 0x1cc   : > { %5938 = vmatpush3.bf16.msra.mxu1 %v6480_v44  ;;  %v2773_v56 = vor.u32 %v2771_v2, %v2769_v32  ;;  %v2791_v44 = vshll.u32 %v7438_v19, 16  ;;  %v6504_v32 = vld [vmem:[%s8359_s5 + $0x138] sm:$0xff]  }
 0x1cd   : > { %5939 = vmatprep.subr.bf16.mxu1 %v6482_v30 }
 0x1ce   : > { %6032 = vmatpush3.bf16.msra.mxu0 %v6481_v33  ;;  %v2778_v57 = vsel %vm8372_vm7, %v2773_v56, %v2777_v13  ;;  %v2786_v33 = vsel %vm8372_vm7, %v2781_v53, %v2785_v15  ;;  %v2793_v35 = vrot.slane %v2791_v44, 1 }
 0x1cf   : > { %6033 = vmatprep.subr.bf16.mxu0 %v6484_v27 }
 0x1d0   : > { %5940 = vmatpush3.bf16.msra.mxu1 %v6482_v30  ;;  %v2430_v30 = vrot.slane %v7312_v58, 1  ;;  %v6502_v58 = vld [vmem:[%s8359_s5 + $0x130] sm:$0xff]  }
 0x1d1   : > { %5986 = vmatmul.mubr.msk.bf16.gmra.mrb[28].mxu0 %vm1574_vm3, %v2288_v9  ;;  %5989 = vmatprep.subr.bf16.mxu1 %v6487_v7 }
 0x1d2   : > { %6034 = vmatpush3.bf16.msra.mxu0 %v6484_v27  ;;  %6041 = vmatprep.mubr.msk.bf16.mxu0 %vm1574_vm3, %v2770_v47  ;;  %v2794_v27 = vsel %vm8372_vm7, %v2789_v25, %v2793_v35  ;;  %v2431_v6 = vsel %vm8371_vm10, %v2428_v18, %v2430_v30  ;;  %v2433_v17 = vsel %vm8371_vm10, %v2430_v30, %v2432_v4  ;;  %v2934_v47 = vrot.slane %v7365_v54, 1 }
 0x1d3   : > { %6035 = vmatprep.subr.bf16.mxu0 %v6488_v51  ;;  %5942 = vmatmul.mubr.msk.bf16.vlgmr.msra.gmra.mrb[24].mxu1 %vm1574_vm3, %v1909_v16  ;;  %v2940_v16 = vrot.slane %v7438_v19, 1  ;;  %v503_v18 = vsel %vm7523_vm14, 0, %v502_v20 }
 0x1d4   : > { %5945 = vmatprep.mubr.msk.bf16.mxu1 %vm1574_vm3, %v1911_v14  ;;  %5990 = vmatpush3.bf16.msra.mxu1 %v6487_v7  ;;  %v2916_v7 = vld [vmem:[#allocation2 + $0x8] sm:$0xe]  ;;  %504 = vst [vmem:[#allocation3 + $0x4] sm:$0x1] %v503_v18 }
 0x1d5   : > { %5991 = vmatprep.subr.bf16.mxu1 %v6489_v55  ;;  %v5403_v9 = vcombine.low %v2916_v7, %v7345_v62  ;;  %v2938_v62 = vrot.slane %v7413_v8, 1  ;;  %v1377_v8 = vlaneseq }
 0x1d6   : > { %6036 = vmatpush3.bf16.msra.mxu0 %v6488_v51  ;;  %v6511_v51 = vld [vmem:[%s8359_s5 + $0x190] sm:$0xff]  }
 0x1d7   : > { %6037 = vmatprep.subr.bf16.mxu0 %v6490_v37  ;;  %v2933_v49 = vrot.slane %v5403_v9, 1  ;;  %v7539_v1 = vshrl.u32 %v1377_v8, 7 }
 0x1d8   : > { %5992 = vmatpush3.bf16.msra.mxu1 %v6489_v55 }
 0x1d9   : > { %5993 = vmatprep.subr.bf16.mxu1 %v6491_v60  ;;  %v2935_v5 = vsel %vm8371_vm10, %v2933_v49, %v2934_v47  ;;  %v7556_v15 = vadd.s32 8, %v7539_v1  ;;  %v7573_v35 = vadd.s32 48, %v7539_v1  ;;  %v7582_v30 = vadd.s32 32, %v7539_v1 }
 0x1da   : > { %6038 = vmatpush3.bf16.msra.mxu0 %v6490_v37  ;;  %v2941_v37 = vsel %vm8371_vm10, %v2938_v62, %v2940_v16  ;;  %v7591_v4 = vadd.s32 56, %v7539_v1  ;;  %v6518_v16 = vld [vmem:[%s8361_s7 + $0x10] sm:$0xff]  }
 0x1db   : > { %6039 = vmatprep.subr.bf16.mxu0 %v6492_v45  ;;  %5946 = vmatmul.mubr.msk.bf16.gmra.mrb[28].mxu1 %vm1574_vm3, %v1913_v11  ;;  %v7544_v11 = vadd.s32 16, %v7539_v1  ;;  %v1397_v38 = vand.u32 7, %v7556_v15 }
 0x1dc   : > { %5994 = vmatpush3.bf16.msra.mxu1 %v6491_v60  ;;  %6001 = vmatprep.mubr.msk.bf16.mxu1 %vm1574_vm3, %v2429_v28  ;;  %v7551_v28 = vadd.s32 24, %v7539_v1  ;;  %v1439_v49 = vand.u32 7, %v7591_v4 }
 0x1dd   : > { %5995 = vmatprep.subr.bf16.mxu1 %v6494_v40  ;;  %v1404_v19 = vand.u32 7, %v7544_v11  ;;  %vm7715_vm0 = vcmp.lt.s32.totalorder %v1397_v38, 7 }
 0x1de   : > { %6040 = vmatpush3.bf16.msra.mxu0 %v6492_v45  ;;  %v8412_v45 = vmov 0  ;;  %vm7653_vm8 = vcmp.gt.s32.totalorder %v1439_v49, 0  ;;  %vm7752_vm11 = vcmp.lt.s32.totalorder %v1439_v49, 7 }
 0x1df   : > { %v8413_v45 = vsel %vm7523_vm14, 4294967295, %v8412_v45  ;;  %vm7568_vm2 = vcmp.gt.s32.totalorder %v1404_v19, 0  ;;  %vm7695_vm13 = vcmp.lt.s32.totalorder %v1404_v19, 7 }
 0x1e0   : > { %5996 = vmatpush3.bf16.msra.mxu1 %v6494_v40  ;;  %v508_v40 = vsel %vm7534_vm15, 0, %v507_v23 }
 0x1e1   : > { %6042 = vmatmul.mubr.msk.bf16.vlgmr.msra.gmra.mrb[24].mxu0 %vm1574_vm3, %v2778_v57  ;;  %5997 = vmatprep.subr.bf16.mxu1 %v6497_v48  ;;  %509 = vst [vmem:[#allocation3 + $0x24] sm:$0xf] %v508_v40  ;;  %v1390_v57 = vand.u32 7, %v7539_v1  ;;  %v6520_v40 = vld [vmem:[%s8361_s7 + $0x18] sm:$0xff]  }
 0x1e2   : > { %6045 = vmatprep.mubr.msk.bf16.mxu0 %vm1574_vm3, %v2786_v33  ;;  %v1411_v33 = vand.u32 7, %v7551_v28 }
 0x1e3   : > { %vm7577_vm5 = vcmp.gt.s32.totalorder %v1390_v57, 0 }
 0x1e4   : > { %5998 = vmatpush3.bf16.msra.mxu1 %v6497_v48  ;;  %vm7586_vm1 = vcmp.gt.s32.totalorder %v1411_v33, 0  ;;  %vm7707_vm7 = vcmp.lt.s32.totalorder %v1411_v33, 7 }
 0x1e5   : > { %5999 = vmatprep.subr.bf16.mxu1 %v6498_v61 }
 0x1e8   : > { %6000 = vmatpush3.bf16.msra.mxu1 %v6498_v61 }
 0x1e9   : > { %6046 = vmatmul.mubr.msk.bf16.gmra.mrb[28].mxu0 %vm1574_vm3, %v2794_v27  ;;  %6009 = vmatprep.subr.bf16.mxu1 %v6500_v29 }
 0x1eb   : > { %6002 = vmatmul.mubr.msk.bf16.vlgmr.msra.gmra.mrb[32].mxu1 %vm1574_vm3, %v2431_v6 }
 0x1ec   : > { %6005 = vmatprep.mubr.msk.bf16.mxu1 %vm1574_vm3, %v2433_v17  ;;  %6010 = vmatpush3.bf16.msra.mxu1 %v6500_v29 }
 0x1ed   : > { %6011 = vmatprep.subr.bf16.mxu1 %v6501_v12 }
 0x1f0   : > { %6012 = vmatpush3.bf16.msra.mxu1 %v6501_v12 }
 0x1f1   : > { %6013 = vmatprep.subr.bf16.mxu1 %v6502_v58 }
 0x1f3   : > { %6006 = vmatmul.mubr.msk.bf16.gmra.mrb[36].mxu1 %vm1574_vm3, %v2435_v59 }
 0x1f4   : > { %6014 = vmatpush3.bf16.msra.mxu1 %v6502_v58  ;;  %6021 = vmatprep.mubr.msk.bf16.mxu1 %vm1574_vm3, %v5350_v21  ;;  %v7604_v58 = vadd.s32 40, %v7539_v1  ;;  %v1432_v21 = vand.u32 7, %v7573_v35 }
 0x1f5   : > { %6015 = vmatprep.subr.bf16.mxu1 %v6504_v32 }
 0x1f6   : > { %vm7638_vm4 = vcmp.gt.s32.totalorder %v1432_v21, 0  ;;  %vm7740_vm12 = vcmp.lt.s32.totalorder %v1432_v21, 7 }
 0x1f8   : > { %6016 = vmatpush3.bf16.msra.mxu1 %v6504_v32 }
 0x1f9   : > { %6017 = vmatprep.subr.bf16.mxu1 %v6505_v42 }
 0x1fc   : > { %6018 = vmatpush3.bf16.msra.mxu1 %v6505_v42 }
 0x1fd   : > { %6019 = vmatprep.subr.bf16.mxu1 %v6506_v36 }
 0x200   : > { %6020 = vmatpush3.bf16.msra.mxu1 %v6506_v36 }
 0x201   : > { %6049 = vmatprep.subr.bf16.mxu1 %v6507_v34 }
 0x203   : > { %6022 = vmatmul.mubr.msk.bf16.vlgmr.msra.gmra.mrb[40].mxu1 %vm1574_vm3, %v5351_v41  ;;  %v6513_v41 = vld [vmem:[%s8359_s5 + $0x198] sm:$0xff]  }
 0x204   : > { %6025 = vmatprep.mubr.msk.bf16.mxu1 %vm1574_vm3, %v5352_v10  ;;  %6050 = vmatpush3.bf16.msra.mxu1 %v6507_v34  ;;  %v2936_v10 = vrot.slane %v7408_v39, 1 }
 0x205   : > { %6051 = vmatprep.subr.bf16.mxu1 %v6509_v50 }
 0x206   : > { %v2937_v54 = vsel %vm8371_vm10, %v2934_v47, %v2936_v10  ;;  %v2939_v55 = vsel %vm8371_vm10, %v2936_v10, %v2938_v62  ;;  %v1425_v10 = vand.u32 7, %v7604_v58  ;;  %vm7701_vm10 = vcmp.lt.s32.totalorder %v1390_v57, 7 }
 0x208   : > { %6052 = vmatpush3.bf16.msra.mxu1 %v6509_v50  ;;  %v6516_v50 = vld [vmem:[%s8361_s7] sm:$0xff]   ;;  %vm7664_vm9 = vcmp.gt.s32.totalorder %v1425_v10, 0  ;;  %vm7760_vm15 = vcmp.lt.s32.totalorder %v1425_v10, 7 }
 0x209   : > { %6053 = vmatprep.subr.bf16.mxu1 %v6511_v51  ;;  %6069 = vmatprep.subr.bf16.mxu0 %v6516_v50 }
 0x20a   : > { %6070 = vmatpush3.bf16.msra.mxu0 %v6516_v50 }
 0x20b   : > { %6026 = vmatmul.mubr.msk.bf16.gmra.mrb[44].mxu1 %vm1574_vm3, %v5353_v43 }
 0x20c   : > { %6054 = vmatpush3.bf16.msra.mxu1 %v6511_v51  ;;  %6061 = vmatprep.mubr.msk.bf16.mxu1 %vm1574_vm3, %v2935_v5  ;;  %v1418_v51 = vand.u32 7, %v7582_v30  ;;  %v8447_v30 = vmov 0 }
 0x20d   : > { %6055 = vmatprep.subr.bf16.mxu1 %v6513_v41  ;;  %v8448_v30 = vsel %vm7760_vm15, 4294967295, %v8447_v30 }
 0x20e   : > { %vm7647_vm6 = vcmp.gt.s32.totalorder %v1418_v51, 0  ;;  %vm7746_vm14 = vcmp.lt.s32.totalorder %v1418_v51, 7 }
 0x210   : > { %6056 = vmatpush3.bf16.msra.mxu1 %v6513_v41 }
 0x211   : > { %6057 = vmatprep.subr.bf16.mxu1 %v6514_v26 }
 0x214   : > { %6058 = vmatpush3.bf16.msra.mxu1 %v6514_v26  ;;  %v6517_v26 = vld [vmem:[%s8361_s7 + $0x8] sm:$0xff]  }
 0x215   : > { %6059 = vmatprep.subr.bf16.mxu1 %v6515_v3  ;;  %6071 = vmatprep.subr.bf16.mxu0 %v6517_v26 }
 0x216   : > { %6072 = vmatpush3.bf16.msra.mxu0 %v6517_v26 }
 0x217   : > { %6073 = vmatprep.subr.bf16.mxu0 %v6518_v16 }
 0x218   : > { %6060 = vmatpush3.bf16.msra.mxu1 %v6515_v3  ;;  %v6519_v3 = vld [vmem:[%s8361_s7 + $0x20] sm:$0xff]  }
 0x219   : > { %6085 = vmatprep.subr.bf16.mxu1 %v6519_v3 }
 0x21a   : > { %6074 = vmatpush3.bf16.msra.mxu0 %v6518_v16 }
 0x21b   : > { %6062 = vmatmul.mubr.msk.bf16.vlgmr.msra.gmra.mrb[48].mxu1 %vm1574_vm3, %v2937_v54  ;;  %v6522_v54 = vld [vmem:[%s8361_s7 + $0x28] sm:$0xff]   ;;  %6075 = vmatprep.subr.bf16.mxu0 %v6520_v40 }
 0x21c   : > { %6065 = vmatprep.mubr.msk.bf16.mxu1 %vm1574_vm3, %v2939_v55  ;;  %v8425_v55 = vmov 0  ;;  %6086 = vmatpush3.bf16.msra.mxu1 %v6519_v3 }
 0x21d   : > { %v8426_v55 = vsel %vm7638_vm4, 4294967295, %v8425_v55  ;;  %6087 = vmatprep.subr.bf16.mxu1 %v6522_v54 }
 0x21e   : > { %6076 = vmatpush3.bf16.msra.mxu0 %v6520_v40  ;;  %v8441_v40 = vmov 0 }
 0x21f   : > { %v8442_v40 = vsel %vm7740_vm12, 4294967295, %v8441_v40 }
 0x220   : > { %6088 = vmatpush3.bf16.msra.mxu1 %v6522_v54 }
 0x223   : > { %6066 = vmatmul.mubr.msk.bf16.gmra.mrb[52].mxu1 %vm1574_vm3, %v2941_v37  ;;  %vm7599_vm3 = vcmp.gt.s32.totalorder %v1397_v38, 0  ;;  %v8427_v37 = vmov 0 }
 0x224   : > { %v8428_v37 = vsel %vm7647_vm6, 4294967295, %v8427_v37 }
 0x275   : > { %v5903_v14 = vpop.f32.mrb[8].mxu1 }
 0x276   : > { %v1621_v52 = vpop.f32.mrb[9].mxu1  ;;  %v1670_v6 = vsel %vm7568_vm2, %v5903_v14, 0.0  ;;  %v8429_v14 = vmov 0 }
 0x277   : > { %v5904_v39 = vpop.f32.mrb[10].mxu1  ;;  %v1668_v59 = vsel %vm7577_vm5, %v1621_v52, 0.0  ;;  %v8430_v14 = vsel %vm7653_vm8, 4294967295, %v8429_v14  ;;  %v6525_v52 = vld [vmem:[%s8361_s7 + $0x30] sm:$0xff]  }
 0x278   : > { %v1624_v60 = vpop.f32.mrb[11].mxu1  ;;  %v1671_v7 = vsel %vm7586_vm1, %v5904_v39, 0.0  ;;  %6089 = vmatprep.subr.bf16.mxu1 %v6525_v52 }
 0x279   : > { %v1669_v43 = vsel %vm7599_vm3, %v1624_v60, 0.0  ;;  %v8431_v60 = vmov 0  ;;  %6090 = vmatpush3.bf16.msra.mxu1 %v6525_v52 }
 0x27a   : > { %v8432_v60 = vsel %vm7664_vm9, 4294967295, %v8431_v60 }
 0x284   : > { %v7546_v13 = vpop.f32.mrb[16].mxu0 }
 0x285   : > { %v7548_v2 = vpop.f32.mrb[17].mxu0  ;;  %v5907_v48 = vpop.f32.mrb[12].mxu1  ;;  %v2194_v33 = vsel %vm7568_vm2, %v7546_v13, 0.0 }
 0x286   : > { %v7553_v31 = vpop.f32.mrb[18].mxu0  ;;  %v1637_v53 = vpop.f32.mrb[13].mxu1  ;;  %v1674_v39 = vsel %vm7638_vm4, %v5907_v48, 0.0  ;;  %v2192_v15 = vsel %vm7577_vm5, %v7548_v2, 0.0 }
 0x287   : > { %v7558_v56 = vpop.f32.mrb[19].mxu0  ;;  %v5908_v44 = vpop.f32.mrb[14].mxu1  ;;  %v1672_v23 = vsel %vm7647_vm6, %v1637_v53, 0.0  ;;  %v6532_v53 = vld [vmem:[%s8361_s7 + $0x38] sm:$0xff]  }
 0x288   : > { %v7563_v61 = vpop.f32.mrb[15].mxu1  ;;  %v1675_v48 = vsel %vm7653_vm8, %v5908_v44, 0.0  ;;  %v7684_v44 = vld [vmem:[%s8361_s7 + $0x40] sm:$0xff]   ;;  %6091 = vmatprep.subr.bf16.mxu1 %v6532_v53 }
 0x289   : > { %6101 = vmatprep.subr.bf16.mxu0 %v7684_v44  ;;  %6092 = vmatpush3.bf16.msra.mxu1 %v6532_v53 }
 0x28c   : > { %v7593_v12 = vpop.f32.mrb[20].mxu0 }
 0x28d   : > { %v7606_v63 = vpop.f32.mrb[21].mxu0  ;;  %v2198_v4 = vsel %vm7638_vm4, %v7593_v12, 0.0 }
 0x28e   : > { %v5923_v32 = vpop.f32.mrb[16].mxu1  ;;  %v7611_v42 = vpop.f32.mrb[22].mxu0  ;;  %v2196_v58 = vsel %vm7647_vm6, %v7606_v63, 0.0 }
 0x28f   : > { %v7613_v36 = vadd.f32 %v5923_v32, %v1670_v6  ;;  %v1848_v34 = vpop.f32.mrb[17].mxu1  ;;  %v7621_v9 = vpop.f32.mrb[23].mxu0 }
 0x290   : > { %v1879_v46 = vadd.f32 %v1848_v34, %v1668_v59  ;;  %v5924_v47 = vpop.f32.mrb[18].mxu1  ;;  %v1673_v59 = vsel %vm7664_vm9, %v7563_v61, 0.0  ;;  %v7689_v61 = vld [vmem:[%s8361_s7 + $0x60] sm:$0xff]  }
 0x291   : > { %v1882_v41 = vadd.f32 %v5924_v47, %v1671_v7  ;;  %v1851_v5 = vpop.f32.mrb[19].mxu1  ;;  %6117 = vmatprep.subr.bf16.mxu1 %v7689_v61 }
 0x292   : > { %v1880_v62 = vadd.f32 %v1851_v5, %v1669_v43 }
 0x296   : > { %v5927_v20 = vpop.f32.mrb[20].mxu1 }
 0x297   : > { %v1885_v24 = vadd.f32 %v5927_v20, %v1674_v39  ;;  %v1864_v18 = vpop.f32.mrb[21].mxu1 }
 0x298   : > { %v1883_v6 = vadd.f32 %v1864_v18, %v1672_v23  ;;  %v5928_v32 = vpop.f32.mrb[22].mxu1  ;;  %v2195_v23 = vsel %vm7586_vm1, %v7553_v31, 0.0 }
 0x299   : > { %v1886_v34 = vadd.f32 %v5928_v32, %v1675_v48  ;;  %v1867_v50 = vpop.f32.mrb[23].mxu1  ;;  %v8445_v48 = vmov 0 }
 0x29a   : > { %v1884_v7 = vadd.f32 %v1867_v50, %v1673_v59  ;;  %v8446_v48 = vsel %vm7752_vm11, 4294967295, %v8445_v48 }
 0x2a6   : > { %v5943_v5 = vpop.f32.mrb[24].mxu1 }
 0x2a7   : > { %v2045_v11 = vsel %vm7695_vm13, %v5943_v5, 0.0  ;;  %v1996_v19 = vpop.f32.mrb[25].mxu1  ;;  %v2199_v5 = vsel %vm7653_vm8, %v7611_v42, 0.0 }
 0x2a8   : > { %v2053_v57 = vadd.f32 %v2045_v11, %v7613_v36  ;;  %v2043_v54 = vsel %vm7701_vm10, %v1996_v19, 0.0  ;;  %v5944_v28 = vpop.f32.mrb[26].mxu1  ;;  %v2197_v19 = vsel %vm7664_vm9, %v7621_v9, 0.0 }
 0x2a9   : > { %v2051_v16 = vadd.f32 %v2043_v54, %v1879_v46  ;;  %v2046_v52 = vsel %vm7707_vm7, %v5944_v28, 0.0  ;;  %v1999_v39 = vpop.f32.mrb[27].mxu1  ;;  %v2193_v46 = vsel %vm7599_vm3, %v7558_v56, 0.0 }
 0x2aa   : > { %v2054_v38 = vadd.f32 %v2046_v52, %v1882_v41  ;;  %v2044_v36 = vsel %vm7715_vm0, %v1999_v39, 0.0  ;;  %v2202_v20 = vadd.f32 %v2194_v33, %v2053_v57  ;;  %v8443_v41 = vmov 0 }
 0x2ab   : > { %v2052_v18 = vadd.f32 %v2044_v36, %v1880_v62  ;;  %v2200_v13 = vadd.f32 %v2192_v15, %v2051_v16  ;;  %v8444_v41 = vsel %vm7746_vm14, 4294967295, %v8443_v41 }
 0x2ac   : > { %v2203_v2 = vadd.f32 %v2195_v23, %v2054_v38 }
 0x2ad   : > { %v2201_v31 = vadd.f32 %v2193_v46, %v2052_v18 }
 0x2ae   : > { %v5947_v62 = vpop.f32.mrb[28].mxu1 }
 0x2af   : > { %v2049_v56 = vsel %vm7740_vm12, %v5947_v62, 0.0  ;;  %v2012_v35 = vpop.f32.mrb[29].mxu1 }
 0x2b0   : > { %v2057_v21 = vadd.f32 %v2049_v56, %v1885_v24  ;;  %v2047_v51 = vsel %vm7746_vm14, %v2012_v35, 0.0  ;;  %v5948_v32 = vpop.f32.mrb[30].mxu1 }
 0x2b1   : > { %v2055_v49 = vadd.f32 %v2047_v51, %v1883_v6  ;;  %v2050_v59 = vsel %vm7752_vm11, %v5948_v32, 0.0  ;;  %v2015_v50 = vpop.f32.mrb[31].mxu1 }
 0x2b2   : > { %v2058_v10 = vadd.f32 %v2050_v59, %v1886_v34  ;;  %v2048_v24 = vsel %vm7760_vm15, %v2015_v50, 0.0  ;;  %v2206_v53 = vadd.f32 %v2198_v4, %v2057_v21 }
 0x2b3   : > { %v2056_v11 = vadd.f32 %v2048_v24, %v1884_v7  ;;  %v2204_v6 = vadd.f32 %v2196_v58, %v2055_v49 }
 0x2b4   : > { %v6043_v12 = vpop.f32.mrb[24].mxu0  ;;  %v2207_v54 = vadd.f32 %v2199_v5, %v2058_v10 }
 0x2b5   : > { %v2877_v57 = vpop.f32.mrb[25].mxu0  ;;  %v2205_v63 = vadd.f32 %v2197_v19, %v2056_v11 }
 0x2b6   : > { %v6044_v28 = vpop.f32.mrb[26].mxu0 }
 0x2b7   : > { %v2880_v34 = vpop.f32.mrb[27].mxu0 }
 0x2bc   : > { %v6047_v33 = vpop.f32.mrb[28].mxu0 }
 0x2bd   : > { %v2893_v16 = vpop.f32.mrb[29].mxu0 }
 0x2be   : > { %v6048_v52 = vpop.f32.mrb[30].mxu0  ;;  %v6003_v15 = vpop.f32.mrb[32].mxu1 }
 0x2bf   : > { %v2896_v39 = vpop.f32.mrb[31].mxu0  ;;  %v2551_v42 = vsel %vm7695_vm13, %v6003_v15, 0.0  ;;  %v2518_v7 = vpop.f32.mrb[33].mxu1 }
 0x2c0   : > { %v6252_v38 = vadd.f32 %v2551_v42, %v2202_v20  ;;  %v2549_v36 = vsel %vm7701_vm10, %v2518_v7, 0.0  ;;  %v6004_v23 = vpop.f32.mrb[34].mxu1 }
 0x2c1   : > { %v6258_v9 = vadd.f32 %v2549_v36, %v2200_v13  ;;  %v2552_v18 = vsel %vm7707_vm7, %v6004_v23, 0.0  ;;  %v2521_v46 = vpop.f32.mrb[35].mxu1 }
 0x2c2   : > { %v6264_v62 = vadd.f32 %v2552_v18, %v2203_v2  ;;  %v2550_v56 = vsel %vm7715_vm0, %v2521_v46, 0.0 }
 0x2c3   : > { %v6270_v35 = vadd.f32 %v2550_v56, %v2201_v31 }
 0x2c6   : > { %v6007_v21 = vpop.f32.mrb[36].mxu1 }
 0x2c7   : > { %v2555_v51 = vsel %vm7740_vm12, %v6007_v21, 0.0  ;;  %v2534_v32 = vpop.f32.mrb[37].mxu1 }
 0x2c8   : > { %v6276_v20 = vadd.f32 %v2555_v51, %v2206_v53  ;;  %v2553_v4 = vsel %vm7746_vm14, %v2534_v32, 0.0  ;;  %v6008_v49 = vpop.f32.mrb[38].mxu1 }
 0x2c9   : > { %v6282_v13 = vadd.f32 %v2553_v4, %v2204_v6  ;;  %v2556_v59 = vsel %vm7752_vm11, %v6008_v49, 0.0  ;;  %v2537_v50 = vpop.f32.mrb[39].mxu1 }
 0x2ca   : > { %v6288_v2 = vadd.f32 %v2556_v59, %v2207_v54  ;;  %v2554_v58 = vsel %vm7760_vm15, %v2537_v50, 0.0 }
 0x2cb   : > { %v6294_v31 = vadd.f32 %v2554_v58, %v2205_v63 }
 0x2d6   : > { %v6023_v10 = vpop.f32.mrb[40].mxu1 }
 0x2d7   : > { %v2700_v24 = vsel %vm7568_vm2, %v6023_v10, 0.0  ;;  %v2667_v5 = vpop.f32.mrb[41].mxu1 }
 0x2d8   : > { %v6253_v53 = vadd.f32 %v6252_v38, %v2700_v24  ;;  %v2698_v11 = vsel %vm7577_vm5, %v2667_v5, 0.0  ;;  %v6024_v19 = vpop.f32.mrb[42].mxu1 }
 0x2d9   : > { %v6259_v6 = vadd.f32 %v6258_v9, %v2698_v11  ;;  %v2701_v15 = vsel %vm7586_vm1, %v6024_v19, 0.0  ;;  %v2670_v42 = vpop.f32.mrb[43].mxu1 }
 0x2da   : > { %v6265_v54 = vadd.f32 %v6264_v62, %v2701_v15  ;;  %v2699_v7 = vsel %vm7599_vm3, %v2670_v42, 0.0  ;;  %v6254_v63 = vadd.f32 %v6253_v53, %v6043_v12 }
 0x2db   : > { %v6271_v36 = vadd.f32 %v6270_v35, %v2699_v7  ;;  %v6260_v23 = vadd.f32 %v6259_v6, %v2877_v57 }
 0x2dc   : > { %v6266_v18 = vadd.f32 %v6265_v54, %v6044_v28 }
 0x2dd   : > { %v6272_v46 = vadd.f32 %v6271_v36, %v2880_v34 }
 0x2de   : > { %v6027_v56 = vpop.f32.mrb[44].mxu1 }
 0x2df   : > { %v2704_v38 = vsel %vm7638_vm4, %v6027_v56, 0.0  ;;  %v2683_v21 = vpop.f32.mrb[45].mxu1 }
 0x2e0   : > { %v6277_v51 = vadd.f32 %v6276_v20, %v2704_v38  ;;  %v2702_v9 = vsel %vm7647_vm6, %v2683_v21, 0.0  ;;  %v6028_v32 = vpop.f32.mrb[46].mxu1 }
 0x2e1   : > { %v6283_v4 = vadd.f32 %v6282_v13, %v2702_v9  ;;  %v2705_v62 = vsel %vm7653_vm8, %v6028_v32, 0.0  ;;  %v2686_v49 = vpop.f32.mrb[47].mxu1  ;;  %v7823_v13 = vld [vmem:[%s8360_s6] ss:$0 sm:$0xff]  ;;  %vm8451_vm8 = vcmask 519168  }
 0x2e2   : > { %v6289_v12 = vadd.f32 %v6288_v2, %v2705_v62  ;;  %v2703_v57 = vsel %vm7664_vm9, %v2686_v49, 0.0  ;;  %v6278_v28 = vadd.f32 %v6277_v51, %v6047_v33  ;;  %vm8449_vm9 = vnez %v8416_v22 }
 0x2e3   : > { %v6295_v34 = vadd.f32 %v6294_v31, %v2703_v57  ;;  %v6284_v35 = vadd.f32 %v6283_v4, %v2893_v16 }
 0x2e4   : > { %v7814_v59 = vadd.f32 %v6289_v12, %v6048_v52 }
 0x2e5   : > { %v7816_v50 = vadd.f32 %v6295_v34, %v2896_v39 }
 0x2ee   : > { %v6063_v20 = vpop.f32.mrb[48].mxu1 }
 0x2ef   : > { %v3057_v58 = vsel %vm7695_vm13, %v6063_v20, 0.0  ;;  %v3024_v2 = vpop.f32.mrb[49].mxu1 }
 0x2f0   : > { %v3065_v10 = vadd.f32 %v6254_v63, %v3057_v58  ;;  %v3055_v33 = vsel %vm7701_vm10, %v3024_v2, 0.0  ;;  %v6064_v31 = vpop.f32.mrb[50].mxu1 }
 0x2f1   : > { %v3063_v16 = vadd.f32 %v6260_v23, %v3055_v33  ;;  %v3058_v52 = vsel %vm7707_vm7, %v6064_v31, 0.0  ;;  %v3027_v39 = vpop.f32.mrb[51].mxu1 }
 0x2f2   : > { %v3080_v24 = vadd.f32 %v7823_v13, %v3065_v10  ;;  %v3066_v5 = vadd.f32 %v6266_v18, %v3058_v52  ;;  %v3056_v53 = vsel %vm7715_vm0, %v3027_v39, 0.0  ;;  %v3198_v52 = vld [vmem:[#allocation3 + $0x4] sm:$0xf] }
 0x2f3   : > { %v3078_v11 = vadd.f32 %v7823_v13, %v3063_v16  ;;  %v3064_v19 = vadd.f32 %v6272_v46, %v3056_v53 }
 0x2f4   : > { %v3088_v6 = vmax.f32 %v3080_v24, 0.0  ;;  %v3081_v15 = vadd.f32 %v7823_v13, %v3066_v5 }
 0x2f5   : > { %v3086_v42 = vmax.f32 %v3078_v11, 0.0  ;;  %v3079_v54 = vadd.f32 %v7823_v13, %v3064_v19 }
 0x2f6   : > { %v5639_v7 = vpack.c.bf16 %v3088_v6, %v3088_v6  ;;  %v3089_v63 = vmax.f32 %v3081_v15, 0.0  ;;  %v6067_v36 = vpop.f32.mrb[52].mxu1 }
 0x2f7   : > { %v5637_v23 = vpack.c.bf16 %v3086_v42, %v3086_v42  ;;  %v3087_v56 = vmax.f32 %v3079_v54, 0.0  ;;  %v3061_v18 = vsel %vm7740_vm12, %v6067_v36, 0.0  ;;  %v3040_v38 = vpop.f32.mrb[53].mxu1 }
 0x2f8   : > { %v3136_v21 = vshrl.u32 %v5639_v7, 16  ;;  %v5640_v51 = vpack.c.bf16 %v3089_v63, %v3089_v63  ;;  %v3069_v9 = vadd.f32 %v6278_v28, %v3061_v18  ;;  %v6068_v32 = vpop.f32.mrb[54].mxu1  ;;  %v3139_v46 = vshll.u32 %v5639_v7, 16 }
 0x2f9   : > { %v3119_v4 = vshrl.u32 %v5637_v23, 16  ;;  %v5638_v62 = vpack.c.bf16 %v3087_v56, %v3087_v56  ;;  %v3059_v49 = vsel %vm7746_vm14, %v3040_v38, 0.0  ;;  %v3043_v12 = vpop.f32.mrb[55].mxu1  ;;  %v3122_v34 = vshll.u32 %v5637_v23, 16 }
 0x2fa   : > { %v3138_v57 = vrot.slane %v3136_v21, 7  ;;  %v3145_v20 = vshrl.u32 %v5640_v51, 16  ;;  %v3084_v58 = vadd.f32 %v7823_v13, %v3069_v9  ;;  %v3148_v10 = vshll.u32 %v5640_v51, 16 }
 0x2fb   : > { %v3121_v2 = vrot.slane %v3119_v4, 7  ;;  %v3127_v33 = vshrl.u32 %v5638_v62, 16  ;;  %v3067_v31 = vadd.f32 %v6284_v35, %v3059_v49  ;;  %v3130_v39 = vshll.u32 %v5638_v62, 16 }
 0x2fc   : > { %v3141_v16 = vor.u32 %v3139_v46, %v3138_v57  ;;  %v3147_v28 = vrot.slane %v3145_v20, 7  ;;  %v3092_v24 = vmax.f32 %v3084_v58, 0.0  ;;  %v3143_v5 = vrot.slane %v3138_v57, 4  ;;  %v3364_v57 = vld [vmem:[#allocation3] sm:$0xf] }
 0x2fd   : > { %v3124_v53 = vor.u32 %v3122_v34, %v3121_v2  ;;  %v3129_v11 = vrot.slane %v3127_v33, 7  ;;  %v3082_v19 = vadd.f32 %v7823_v13, %v3067_v31  ;;  %v3125_v6 = vrot.slane %v3121_v2, 4 }
 0x2fe   : > { %v3150_v15 = vor.u32 %v3148_v10, %v3147_v28  ;;  %v5643_v42 = vpack.c.bf16 %v3092_v24, %v3092_v24  ;;  %v3062_v54 = vsel %vm7752_vm11, %v6068_v32, 0.0  ;;  %vm8450_vm14 = vnez %v8402_v0  ;;  %vm8453_vm11 = vmmov %vm8451_vm8 }
 0x2ff   : > { %v3199_v7 = vsel %vm8449_vm9, %v3124_v53, %v3198_v52  ;;  %v3132_v35 = vor.u32 %v3130_v39, %v3129_v11  ;;  %v3134_v63 = vrot.slane %v3129_v11, 4  ;;  %v3090_v36 = vmax.f32 %v3082_v19, 0.0  ;;  %vm8452_vm9 = vmmov %vm8451_vm8  ;;  %v3208_v39 = vld [vmem:[#allocation3 + $0x24] sm:$0x1] }
 0x300   : > { %3200 = vst [vmem:[#allocation3 + $0x4] sm:$0xf] %v3199_v7  ;;  %v3151_v23 = vsel %vm8450_vm14, %v3143_v5, %v3150_v15  ;;  %v3070_v56 = vadd.f32 %v7814_v59, %v3062_v54  ;;  %v3060_v22 = vsel %vm7760_vm15, %v3043_v12, 0.0  ;;  %v3172_v9 = vshrl.u32 %v5643_v42, 16 }
 0x301   : > { %3203 = vst.msk [vmem:[#allocation3 + $0x10] sm:$0xf] %vm8451_vm8, %v3151_v23  ;;  %v3133_v18 = vsel %vm8450_vm14, %v3125_v6, %v3132_v35  ;;  %v3142_v38 = vsel %vm8450_vm14, %v3134_v63, %v3141_v16  ;;  %v5641_v21 = vpack.c.bf16 %v3090_v36, %v3090_v36  ;;  %v3068_v59 = vadd.f32 %v7816_v50, %v3060_v22  ;;  %v6526_v50 = vld [vmem:[%s8361_s7 + $0x48] sm:$0xff]  }
 0x302   : > { %3201 = vst.msk [vmem:[#allocation3 + $0x8] sm:$0xf] %vm8452_vm9, %v3133_v18  ;;  %v3085_v51 = vadd.f32 %v7823_v13, %v3070_v56  ;;  %v3152_v34 = vrot.slane %v3147_v28, 4  ;;  %v3174_v12 = vrot.slane %v3172_v9, 7  ;;  %v3175_v19 = vshll.u32 %v5643_v42, 16 }
 0x303   : > { %3202 = vst.msk [vmem:[#allocation3 + $0xc] sm:$0xf] %vm8453_vm11, %v3142_v38  ;;  %v3154_v32 = vshrl.u32 %v5641_v21, 16  ;;  %v3083_v4 = vadd.f32 %v7823_v13, %v3068_v59  ;;  %v3157_v49 = vshll.u32 %v5641_v21, 16  ;;  %vm8454_vm11 = vcmask 523264   ;;  %v6534_v21 = vld [vmem:[%s8361_s7 + $0x50] sm:$0xff]  }
 0x304   : > { %v3093_v46 = vmax.f32 %v3085_v51, 0.0  ;;  %v3179_v6 = vrot.slane %v3174_v12, 4  ;;  %vm8455_vm9 = vmmov %vm8454_vm11  ;;  %v3177_v56 = vor.u32 %v3175_v19, %v3174_v12 }
 0x305   : > { %v3156_v62 = vrot.slane %v3154_v32, 7  ;;  %v3091_v58 = vmax.f32 %v3083_v4, 0.0 }
 0x306   : > { %v5644_v20 = vpack.c.bf16 %v3093_v46, %v3093_v46 }
 0x307   : > { %v3159_v2 = vor.u32 %v3157_v49, %v3156_v62  ;;  %v6521_v10 = vld [vmem:[#allocation3] sm:$0xff]   ;;  %v5642_v16 = vpack.c.bf16 %v3091_v58, %v3091_v58  ;;  %v3161_v18 = vrot.slane %v3156_v62, 4 }
 0x308   : > { %v7860_v33 = vld [vmem:[#allocation3 + $0x4] sm:$0xf]  ;;  %v3181_v31 = vshrl.u32 %v5644_v20, 16  ;;  %6077 = vmatprep.mubr.msk.bf16.mxu0 %vm8454_vm11, %v6521_v10  ;;  %v3184_v5 = vshll.u32 %v5644_v20, 16  ;;  %vm8456_vm11 = vnez %v8413_v45  ;;  %v7893_v62 = vld [vmem:[#allocation3 + $0x10] sm:$0xf] }
 0x309   : > { %v5443_v52 = vcombine.low %v3364_v57, %v7860_v33  ;;  %v3160_v13 = vsel %vm8450_vm14, %v3152_v34, %v3159_v2  ;;  %v3163_v53 = vshrl.u32 %v5642_v16, 16  ;;  %v7870_v11 = vld [vmem:[#allocation3 + $0x8] sm:$0xf]  ;;  %v3166_v15 = vshll.u32 %v5642_v16, 16  ;;  %v3550_v49 = vld [vmem:[#allocation3] sm:$0xe] }
 0x30a   : > { %v6523_v28 = vld [vmem:[#allocation3 + $0x8] sm:$0xff]   ;;  %3204 = vst.msk [vmem:[#allocation3 + $0x14] sm:$0xf] %vm8451_vm8, %v3160_v13  ;;  %v3183_v24 = vrot.slane %v3181_v31, 7  ;;  %v5464_v2 = vcombine.low %v3550_v49, %v7860_v33  ;;  %v6540_v31 = vld [vmem:[%s8361_s7 + $0xa0] sm:$0xff]   ;;  %v6539_v13 = vld [vmem:[%s8361_s7 + $0x68] sm:$0xff]  }
 0x30b   : > { %6078 = vmatmul.mubr.msk.bf16.vlgmr.msra.gmra.mrb[32].mxu0 %vm8455_vm9, %v6523_v28  ;;  %v7873_v54 = vld [vmem:[#allocation3 + $0xc] sm:$0xf]  ;;  %v3408_v7 = vshll.u32 %v5443_v52, 16  ;;  %v3165_v36 = vrot.slane %v3163_v53, 7  ;;  %v3406_v42 = vshrl.u32 %v5443_v52, 16  ;;  %vm8457_vm9 = vmmov %vm8451_vm8 }
 0x30c   : > { %v3186_v35 = vor.u32 %v3184_v5, %v3183_v24  ;;  %v3188_v63 = vrot.slane %v3183_v24, 4  ;;  %6102 = vmatpush3.bf16.msra.mxu0 %v7684_v44  ;;  %v7878_v23 = vcombine.low %v7870_v11, %v7873_v54  ;;  %v6537_v45 = vld [vmem:[%s8361_s7 + $0x58] sm:$0xff]   ;;  %v3563_v24 = vrot.slane %v5464_v2, 1  ;;  %v6546_v2 = vld [vmem:[%s8361_s7 + $0xb0] sm:$0xff]  }
 0x30d   : > { %6103 = vmatprep.subr.bf16.mxu0 %v6526_v50  ;;  %v3410_v38 = vrot.slane %v3408_v7, 1  ;;  %v3168_v44 = vor.u32 %v3166_v15, %v3165_v36  ;;  %v3170_v59 = vrot.slane %v3165_v36, 4 }
 0x30e   : > { %v3187_v22 = vsel %vm8450_vm14, %v3179_v6, %v3186_v35  ;;  %v3209_v51 = vsel %vm8456_vm11, %v3188_v63, %v3208_v39  ;;  %v3413_v32 = vshll.u32 %v7878_v23, 16  ;;  %vm8458_vm11 = vmmov %vm8451_vm8  ;;  %v3417_v12 = vshrl.u32 %v7878_v23, 16  ;;  %v6542_v35 = vld [vmem:[%s8361_s7 + $0x70] sm:$0xff]  }
 0x30f   : > { %3207 = vst.msk [vmem:[#allocation3 + $0x20] sm:$0xf] %vm8451_vm8, %v3187_v22  ;;  %3210 = vst [vmem:[#allocation3 + $0x24] sm:$0x1] %v3209_v51  ;;  %v3411_v9 = vor.u32 %v3410_v38, %v3406_v42  ;;  %v3169_v46 = vsel %vm8450_vm14, %v3161_v18, %v3168_v44  ;;  %v3178_v4 = vsel %vm8450_vm14, %v3170_v59, %v3177_v56  ;;  %vm8459_vm14 = vsmask.f32 7424 }
 0x310   : > { %6104 = vmatpush3.bf16.msra.mxu0 %v6526_v50  ;;  %3205 = vst.msk [vmem:[#allocation3 + $0x18] sm:$0xf] %vm8457_vm9, %v3169_v46  ;;  %v3415_v34 = vrot.slane %v3413_v32, 1  ;;  %vm8460_vm8 = vcmask 523264   ;;  %v3564_v50 = vrot.slane %v7878_v23, 1  ;;  %v6544_v59 = vld [vmem:[%s8361_s7 + $0xa8] sm:$0xff]  }
 0x311   : > { %3206 = vst.msk [vmem:[#allocation3 + $0x1c] sm:$0xf] %vm8458_vm11, %v3178_v4  ;;  %v7900_v57 = vld [vmem:[#allocation3 + $0x14] sm:$0xf]  ;;  %6105 = vmatprep.subr.bf16.mxu0 %v6534_v21  ;;  %vm8461_vm15 = vmmov %vm8460_vm8  ;;  %v7934_v42 = vld [vmem:[#allocation3 + $0x8] sm:$0xf] }
 0x312   : > { %v6531_v20 = vld [vmem:[#allocation3 + $0x10] sm:$0xff]   ;;  %v5445_v0 = vcombine.low %v7893_v62, %v7900_v57  ;;  %v3416_v58 = vsel %vm8459_vm14, %v3411_v9, %v3415_v34  ;;  %v3419_v16 = vor.u32 %v3417_v12, %v3415_v34  ;;  %vm8463_vm9 = vmmov %vm8460_vm8  ;;  %v4008_v4 = vld [vmem:[#allocation3 + $0x4] sm:$0xe] }
 0x313   : > { %6081 = vmatprep.mubr.msk.bf16.mxu0 %vm8460_vm8, %v6531_v20  ;;  %6093 = vmatprep.mubr.msk.bf16.mxu1 %vm8461_vm15, %v3416_v58  ;;  %vm8462_vm15 = vmmov %vm8459_vm14  ;;  %vm8465_vm14 = vcmask 1046528   ;;  %v7938_v22 = vld [vmem:[#allocation3 + $0x10] sm:$0xf]  ;;  %v5522_v34 = vcombine.low %v4008_v4, %v7934_v42  ;;  %v6551_v58 = vld [vmem:[%s8361_s7 + $0x80] sm:$0xff]  }
 0x314   : > { %6106 = vmatpush3.bf16.msra.mxu0 %v6534_v21  ;;  %v3421_v10 = vshll.u32 %v5445_v0, 16  ;;  %vm8464_vm11 = vmmov %vm8460_vm8  ;;  %v3565_v6 = vsel %vm8465_vm14, %v3563_v24, %v3564_v50  ;;  %v3425_v7 = vshrl.u32 %v5445_v0, 16  ;;  %v3566_v23 = vrot.slane %v5445_v0, 1  ;;  %v7936_v21 = vld [vmem:[#allocation3 + $0xc] sm:$0xf] }
 0x315   : > { %6107 = vmatprep.subr.bf16.mxu0 %v6537_v45  ;;  %v6545_v46 = vld [vmem:[%s8361_s7 + $0x78] sm:$0xff]   ;;  %v5481_v0 = vcombine.low %v7860_v33, %v7870_v11  ;;  %v3822_v12 = vld [vmem:[#allocation3 + $0x4] sm:$0xf]  ;;  %v4021_v33 = vrot.slane %v5522_v34, 1  ;;  %v4280_v4 = vld [vmem:[#allocation3 + $0x8] sm:$0xf] }
 0x316   : > { %v3423_v52 = vrot.slane %v3421_v10, 1  ;;  %v7916_v39 = vld [vmem:[#allocation3 + $0x20] ss:$0 sps:$4 sm:$0x11]   ;;  %v5501_v10 = vcombine.low %v3822_v12, %v7934_v42  ;;  %v8020_v34 = vld [vmem:[#allocation3 + $0xc] sm:$0xf] }
 0x317   : > { %v7920_v53 = vld [vmem:[#allocation3 + $0x18] sm:$0xf]  ;;  %v3437_v18 = vshll.u32 %v7916_v39, 16 }
 0x318   : > { %v6533_v28 = vld [vmem:[#allocation3 + $0x18] sm:$0xff]   ;;  %v3424_v5 = vsel %vm8462_vm15, %v3419_v16, %v3423_v52  ;;  %6108 = vmatpush3.bf16.msra.mxu0 %v6537_v45  ;;  %v3427_v63 = vor.u32 %v3425_v7, %v3423_v52  ;;  %v7953_v45 = vcombine.low %v7936_v21, %v7938_v22  ;;  %v3570_v16 = vrot.slane %v7916_v39, 1  ;;  %v7975_v52 = vld [vmem:[#allocation3 + $0x20] sm:$0xf] }
 0x319   : > { %6094 = vmatmul.mubr.msk.bf16.vlgmr.msra.gmra.mrb[56].mxu1 %vm8463_vm9, %v3424_v5  ;;  %v7922_v19 = vld [vmem:[#allocation3 + $0x1c] sm:$0xf]  ;;  %6149 = vmatprep.subr.bf16.mxu0 %v6540_v31  ;;  %vm8466_vm9 = vmmov %vm8460_vm8  ;;  %v3439_v32 = vrot.slane %v3437_v18, 1  ;;  %v3866_v24 = vshll.u32 %v5501_v10, 16  ;;  %v5482_v39 = vcombine.low %v7873_v54, %v7893_v62  ;;  %v6555_v54 = vld [vmem:[%s8361_s7 + $0xc0] sm:$0xff]  }
 0x31a   : > { %6082 = vmatmul.mubr.msk.bf16.gmra.mrb[36].mxu0 %vm8464_vm11, %v6533_v28  ;;  %6118 = vmatpush3.bf16.msra.mxu1 %v7689_v61  ;;  %v5446_v15 = vcombine.low %v7920_v53, %v7922_v19  ;;  %vm8467_vm11 = vmmov %vm8465_vm14  ;;  %v4022_v11 = vrot.slane %v7953_v45, 1  ;;  %v6553_v28 = vld [vmem:[%s8361_s7 + $0xb8] sm:$0xff]   ;;  %v6554_v7 = vld [vmem:[%s8361_s7 + $0x88] sm:$0xff]  }
 0x31b   : > { %6109 = vmatprep.mubr.msk.bf16.mxu0 %vm8460_vm8, %v3565_v6  ;;  %6119 = vmatprep.subr.bf16.mxu1 %v6539_v13  ;;  %v3567_v9 = vsel %vm8467_vm11, %v3564_v50, %v3566_v23  ;;  %vm8468_vm14 = vmmov %vm8460_vm8  ;;  %v7973_v50 = vld [vmem:[#allocation3 + $0x1c] sm:$0xf]  ;;  %v3868_v62 = vrot.slane %v3866_v24, 1  ;;  %v3689_v18 = vld [vmem:[#allocation3 + $0x20] sm:$0xf] }
 0x31c   : > { %v3429_v36 = vshll.u32 %v5446_v15, 16  ;;  %v3568_v56 = vrot.slane %v5446_v15, 1  ;;  %v3433_v38 = vshrl.u32 %v5446_v15, 16  ;;  %vm8469_vm8 = vmmov %vm8467_vm11  ;;  %v8037_v24 = vld [vmem:[#allocation3 + $0x10] sm:$0xff]  }
 0x31d   : > { %vm8472_vm11 = vmmov %vm8468_vm14 }
 0x31e   : > { %v3431_v61 = vrot.slane %v3429_v36, 1  ;;  %6120 = vmatpush3.bf16.msra.mxu1 %v6539_v13  ;;  %v3569_v49 = vsel %vm8469_vm8, %v3566_v23, %v3568_v56  ;;  %v7977_v13 = vld [vmem:[#allocation3 + $0x14] sm:$0xf]  ;;  %v3571_v5 = vsel %vm8469_vm8, %v3568_v56, %v3570_v16  ;;  %v6558_v56 = vld [vmem:[%s8361_s7 + $0x90] sm:$0xff]  }
 0x31f   : > { %6121 = vmatprep.subr.bf16.mxu1 %v6542_v35 }
 0x320   : > { %v3432_v51 = vsel %vm8462_vm15, %v3427_v63, %v3431_v61  ;;  %v3435_v44 = vor.u32 %v3433_v38, %v3431_v61  ;;  %vm8470_vm15 = vmmov %vm8466_vm9  ;;  %v5483_v63 = vcombine.low %v7900_v57, %v7920_v53  ;;  %v3864_v57 = vshrl.u32 %v5501_v10, 16  ;;  %v6560_v38 = vld [vmem:[%s8361_s7 + $0xc8] sm:$0xff]  }
 0x321   : > { %6097 = vmatprep.mubr.msk.bf16.mxu1 %vm8466_vm9, %v3432_v51  ;;  %vm8471_vm9 = vsmask.f32 7424  ;;  %v3871_v53 = vshll.u32 %v7953_v45, 16  ;;  %v5559_v10 = vcombine.low %v4280_v4, %v8020_v34 }
 0x322   : > { %6110 = vmatmul.mubr.msk.bf16.vlgmr.msra.gmra.mrb[40].mxu0 %vm8468_vm14, %v3567_v9  ;;  %6122 = vmatpush3.bf16.msra.mxu1 %v6542_v35  ;;  %v3440_v20 = vsel %vm8471_vm9, %v3435_v44, %v3439_v32  ;;  %vm8473_vm14 = vmmov %vm8472_vm11  ;;  %v7994_v35 = vcombine.low %v7973_v50, %v7975_v52  ;;  %v3869_v61 = vor.u32 %v3868_v62, %v3864_v57  ;;  %v8054_v62 = vld [vmem:[#allocation3 + $0x18] sm:$0xff]  }
 0x323   : > { %6113 = vmatprep.mubr.msk.bf16.mxu0 %vm8470_vm15, %v3569_v49  ;;  %6150 = vmatpush3.bf16.msra.mxu0 %v6540_v31  ;;  %v7969_v31 = vld [vmem:[#allocation3 + $0x18] sm:$0xf]  ;;  %vm8474_vm15 = vmmov %vm8472_vm11  ;;  %v5484_v9 = vcombine.low %v7922_v19, %v3689_v18  ;;  %v3873_v32 = vrot.slane %v3871_v53, 1  ;;  %v6562_v49 = vld [vmem:[#allocation3 + $0x24] ss:$0 sps:$4 sm:$0x11]   ;;  %v5540_v18 = vcombine.low %v7938_v22, %v7977_v13 }
 0x324   : > { %6098 = vmatmul.mubr.msk.bf16.gmra.mrb[60].mxu1 %vm8472_vm11, %v3440_v20  ;;  %6151 = vmatprep.subr.bf16.mxu0 %v6544_v59  ;;  %v5503_v6 = vcombine.low %v7977_v13, %v7969_v31  ;;  %vm8475_vm9 = vmmov %vm8469_vm8  ;;  %v4026_v23 = vrot.slane %v7994_v35, 1  ;;  %v6563_v19 = vld [vmem:[%s8361_s7 + $0xd0] sm:$0xff]   ;;  %v6574_v22 = vld [vmem:[%s8361_s7 + $0xf8] sm:$0xff]  }
 0x325   : > { %6125 = vmatprep.mubr.msk.bf16.mxu1 %vm8473_vm14, %v5481_v0  ;;  %6123 = vmatprep.subr.bf16.mxu1 %v6545_v46  ;;  %v4023_v15 = vsel %vm8475_vm9, %v4021_v33, %v4022_v11  ;;  %vm8476_vm14 = vmmov %vm8472_vm11  ;;  %v3875_v33 = vshrl.u32 %v7953_v45, 16  ;;  %v6579_v13 = vld [vmem:[#allocation3 + $0x20] sm:$0xff]  }
 0x326   : > { %6124 = vmatpush3.bf16.msra.mxu1 %v6545_v46  ;;  %vm8477_vm8 = vmmov %vm8472_vm11  ;;  %v4024_v36 = vrot.slane %v5503_v6, 1  ;;  %v3879_v51 = vshll.u32 %v5503_v6, 16  ;;  %v6561_v46 = vld [vmem:[%s8361_s7 + $0x98] sm:$0xff]   ;;  %v3883_v12 = vshrl.u32 %v5503_v6, 16 }
 0x327   : > { %6152 = vmatpush3.bf16.msra.mxu0 %v6544_v59  ;;  %6133 = vmatprep.subr.bf16.mxu1 %v6551_v58  ;;  %vm8496_vm12 = vmmov %vm8477_vm8 }
 0x328   : > { %6153 = vmatprep.subr.bf16.mxu0 %v6546_v2  ;;  %v3881_v0 = vrot.slane %v3879_v51, 1  ;;  %v6573_v51 = vld [vmem:[%s8361_s7 + $0x108] sm:$0xff]  }
 0x32a   : > { %6114 = vmatmul.mubr.msk.bf16.gmra.mrb[44].mxu0 %vm8474_vm15, %v3571_v5  ;;  %vm8478_vm15 = vmmov %vm8475_vm9  ;;  %v3885_v16 = vor.u32 %v3883_v12, %v3881_v0  ;;  %v3877_v5 = vor.u32 %v3875_v33, %v3873_v32  ;;  %v4345_v12 = vshll.u32 %v6579_v13, 16 }
 0x32b   : > { %6154 = vmatpush3.bf16.msra.mxu0 %v6546_v2  ;;  %6157 = vmatprep.mubr.msk.bf16.mxu0 %vm8472_vm11, %v4023_v15  ;;  %v4025_v44 = vsel %vm8478_vm15, %v4022_v11, %v4024_v36  ;;  %vm8479_vm9 = vmmov %vm8477_vm8  ;;  %v3887_v2 = vshll.u32 %v7994_v35, 16  ;;  %v4028_v11 = vrot.slane %v6562_v49, 1  ;;  %v6567_v15 = vld [vmem:[%s8361_s7 + $0xe8] sm:$0xff]  }
 0x32c   : > { %6126 = vmatmul.mubr.msk.bf16.vlgmr.msra.gmra.mrb[64].mxu1 %vm8476_vm14, %v5482_v39  ;;  %6155 = vmatprep.subr.bf16.mxu0 %v6553_v28  ;;  %vm8480_vm11 = vmmov %vm8478_vm15  ;;  %vm8482_vm15 = vsmask.f32 7424  ;;  %v5539_v39 = vcombine.low %v7934_v42, %v7936_v21  ;;  %v6568_v42 = vld [vmem:[%s8361_s7 + $0x100] sm:$0xff]   ;;  %v4329_v21 = vshll.u32 %v8037_v24, 16 }
 0x32d   : > { %6129 = vmatprep.mubr.msk.bf16.mxu1 %vm8477_vm8, %v5483_v63  ;;  %6134 = vmatpush3.bf16.msra.mxu1 %v6551_v58  ;;  %v4027_v59 = vsel %vm8480_vm11, %v4024_v36, %v4026_v23  ;;  %vm8481_vm14 = vmmov %vm8477_vm8  ;;  %v3874_v20 = vsel %vm8482_vm15, %v3869_v61, %v3873_v32  ;;  %v6565_v58 = vld [vmem:[%s8361_s7 + $0xe0] sm:$0xff]   ;;  %v4029_v6 = vsel %vm8480_vm11, %v4026_v23, %v4028_v11  ;;  %v3889_v45 = vrot.slane %v3887_v2, 1  ;;  %v6580_v11 = vld [vmem:[%s8361_s7 + $0x118] sm:$0xff]  }
 0x32e   : > { %6135 = vmatprep.subr.bf16.mxu1 %v6554_v7  ;;  %v3882_v63 = vsel %vm8482_vm15, %v3877_v5, %v3881_v0  ;;  %vm8486_vm11 = vmmov %vm8482_vm15  ;;  %v3891_v36 = vshrl.u32 %v7994_v35, 16  ;;  %v3895_v23 = vshll.u32 %v6562_v49, 16  ;;  %v4322_v61 = vshrl.u32 %v5559_v10, 16 }
 0x32f   : > { %6156 = vmatpush3.bf16.msra.mxu0 %v6553_v28  ;;  %v6566_v28 = vld [vmem:[%s8361_s7 + $0xd8] sm:$0xff]   ;;  %v4337_v35 = vshll.u32 %v8054_v62, 16  ;;  %vm8488_vm15 = vmmov %vm8477_vm8  ;;  %v4480_v0 = vrot.slane %v8037_v24, 1 }
 0x330   : > { %6165 = vmatprep.subr.bf16.mxu0 %v6555_v54  ;;  %v3893_v53 = vor.u32 %v3891_v36, %v3889_v45 }
 0x331   : > { %6136 = vmatpush3.bf16.msra.mxu1 %v6554_v7  ;;  %v4324_v7 = vshll.u32 %v5559_v10, 16  ;;  %v4339_v49 = vrot.slane %v4337_v35, 1 }
 0x332   : > { %6158 = vmatmul.mubr.msk.bf16.vlgmr.msra.gmra.mrb[48].mxu0 %vm8479_vm9, %v4025_v44  ;;  %6137 = vmatprep.subr.bf16.mxu1 %v6558_v56  ;;  %vm8483_vm9 = vmmov %vm8477_vm8  ;;  %v5541_v44 = vcombine.low %v7969_v31, %v7973_v50  ;;  %v6576_v50 = vld [vmem:[%s8361_s7 + $0x110] sm:$0xff]  }
 0x333   : > { %6161 = vmatprep.mubr.msk.bf16.mxu0 %vm8481_vm14, %v4027_v59  ;;  %6166 = vmatpush3.bf16.msra.mxu0 %v6555_v54  ;;  %vm8484_vm14 = vmmov %vm8477_vm8  ;;  %v3890_v54 = vsel %vm8486_vm11, %v3885_v16, %v3889_v45  ;;  %v4326_v57 = vrot.slane %v4324_v7, 1  ;;  %v3897_v59 = vrot.slane %v3895_v23, 1  ;;  %v6581_v16 = vld [vmem:[#allocation3 + $0x28] ss:$0 sps:$4 sm:$0x11]   ;;  %v4349_v45 = vshrl.u32 %v6579_v13, 16 }
 0x334   : > { %6130 = vmatmul.mubr.msk.bf16.gmra.mrb[68].mxu1 %vm8477_vm8, %v5484_v9  ;;  %6167 = vmatprep.subr.bf16.mxu0 %v6560_v38  ;;  %v4466_v9 = vld [vmem:[#allocation3 + $0x8] sm:$0xe]  ;;  %v4486_v36 = vrot.slane %v6581_v16, 1 }
 0x335   : > { %6138 = vmatpush3.bf16.msra.mxu1 %v6558_v56  ;;  %6141 = vmatprep.mubr.msk.bf16.mxu1 %vm8483_vm9, %v3874_v20  ;;  %vm8485_vm9 = vmmov %vm8477_vm8  ;;  %v6570_v56 = vld [vmem:[%s8361_s7 + $0xf0] sm:$0xff]   ;;  %v4327_v32 = vor.u32 %v4326_v57, %v4322_v61  ;;  %v5580_v4 = vcombine.low %v4466_v9, %v8020_v34  ;;  %v4333_v20 = vshrl.u32 %v8037_v24, 16  ;;  %v4347_v24 = vrot.slane %v4345_v12, 1 }
 0x336   : > { %6139 = vmatprep.subr.bf16.mxu1 %v6561_v46 }
 0x337   : > { %6168 = vmatpush3.bf16.msra.mxu0 %v6560_v38  ;;  %v4331_v38 = vrot.slane %v4329_v21, 1  ;;  %v4479_v33 = vrot.slane %v5580_v4, 1  ;;  %v4351_v7 = vor.u32 %v4349_v45, %v4347_v24 }
 0x338   : > { %6169 = vmatprep.subr.bf16.mxu0 %v6563_v19 }
 0x339   : > { %6140 = vmatpush3.bf16.msra.mxu1 %v6561_v46  ;;  %v4335_v2 = vor.u32 %v4333_v20, %v4331_v38 }
 0x33a   : > { %6162 = vmatmul.mubr.msk.bf16.gmra.mrb[52].mxu0 %vm8484_vm14, %v4029_v6  ;;  %6181 = vmatprep.subr.bf16.mxu1 %v6565_v58  ;;  %vm8487_vm14 = vmmov %vm8477_vm8 }
 0x33b   : > { %6170 = vmatpush3.bf16.msra.mxu0 %v6563_v19  ;;  %6173 = vmatprep.mubr.msk.bf16.mxu0 %vm8477_vm8, %v5539_v39  ;;  %v4147_v19 = vld [vmem:[#allocation3 + $0x24] sm:$0xf]  ;;  %v4482_v39 = vrot.slane %v8054_v62, 1 }
 0x33c   : > { %6142 = vmatmul.mubr.msk.bf16.vlgmr.msra.gmra.mrb[56].mxu1 %vm8485_vm9, %v3882_v63  ;;  %6171 = vmatprep.subr.bf16.mxu0 %v6566_v28  ;;  %vm8489_vm9 = vmmov %vm8486_vm11  ;;  %v5542_v10 = vcombine.low %v7975_v52, %v4147_v19  ;;  %v4353_v52 = vshll.u32 %v6581_v16, 16 }
 0x33d   : > { %6145 = vmatprep.mubr.msk.bf16.mxu1 %vm8487_vm14, %v3890_v54  ;;  %6182 = vmatpush3.bf16.msra.mxu1 %v6565_v58  ;;  %v3898_v46 = vsel %vm8489_vm9, %v3893_v53, %v3897_v59  ;;  %vm8490_vm11 = vmmov %vm8477_vm8  ;;  %v4341_v58 = vshrl.u32 %v8054_v62, 16 }
 0x33e   : > { %6183 = vmatprep.subr.bf16.mxu1 %v6567_v15  ;;  %vm8491_vm14 = vmmov %vm8489_vm9  ;;  %vm8493_vm9 = vcmask 1046528   ;;  %v4355_v63 = vrot.slane %v4353_v52, 1 }
 0x33f   : > { %6172 = vmatpush3.bf16.msra.mxu0 %v6566_v28  ;;  %v4332_v31 = vsel %vm8491_vm14, %v4327_v32, %v4331_v38  ;;  %v4343_v34 = vor.u32 %v4341_v58, %v4339_v49  ;;  %v4481_v28 = vsel %vm8493_vm9, %v4479_v33, %v4480_v0  ;;  %v4340_v5 = vsel %vm8491_vm14, %v4335_v2, %v4339_v49  ;;  %vm8495_vm6 = vmmov %vm8491_vm14 }
 0x340   : > { %6197 = vmatprep.subr.bf16.mxu0 %v6568_v42  ;;  %vm8500_vm14 = vmmov %vm8477_vm8 }
 0x341   : > { %6184 = vmatpush3.bf16.msra.mxu1 %v6567_v15  ;;  %v4348_v6 = vsel %vm8495_vm6, %v4343_v34, %v4347_v24  ;;  %v4484_v15 = vrot.slane %v6579_v13, 1 }
 0x342   : > { %6174 = vmatmul.mubr.msk.bf16.vlgmr.msra.gmra.mrb[56].mxu0 %vm8477_vm8, %v5540_v18  ;;  %6185 = vmatprep.subr.bf16.mxu1 %v6570_v56 }
 0x343   : > { %6177 = vmatprep.mubr.msk.bf16.mxu0 %vm8488_vm15, %v5541_v44  ;;  %6198 = vmatpush3.bf16.msra.mxu0 %v6568_v42  ;;  %vm8492_vm15 = vmmov %vm8477_vm8 }
 0x344   : > { %6146 = vmatmul.mubr.msk.bf16.gmra.mrb[60].mxu1 %vm8490_vm11, %v3898_v46  ;;  %6199 = vmatprep.subr.bf16.mxu0 %v6573_v51  ;;  %vm8494_vm11 = vmmov %vm8477_vm8 }
 0x345   : > { %6186 = vmatpush3.bf16.msra.mxu1 %v6570_v56  ;;  %6189 = vmatprep.mubr.msk.bf16.mxu1 %vm8477_vm8, %v4332_v31 }
 0x346   : > { %6187 = vmatprep.subr.bf16.mxu1 %v6574_v22 }
 0x347   : > { %6200 = vmatpush3.bf16.msra.mxu0 %v6573_v51 }
 0x348   : > { %6201 = vmatprep.subr.bf16.mxu0 %v6576_v50 }
 0x349   : > { %6188 = vmatpush3.bf16.msra.mxu1 %v6574_v22 }
 0x34a   : > { %6178 = vmatmul.mubr.msk.bf16.gmra.mrb[60].mxu0 %vm8492_vm15, %v5542_v10  ;;  %vm8497_vm15 = vmmov %vm8493_vm9 }
 0x34b   : > { %6202 = vmatpush3.bf16.msra.mxu0 %v6576_v50  ;;  %6205 = vmatprep.mubr.msk.bf16.mxu0 %vm8494_vm11, %v4481_v28  ;;  %v4483_v54 = vsel %vm8497_vm15, %v4480_v0, %v4482_v39  ;;  %vm8498_vm9 = vmmov %vm8477_vm8 }
 0x34c   : > { %6190 = vmatmul.mubr.msk.bf16.vlgmr.msra.gmra.mrb[56].mxu1 %vm8477_vm8, %v4340_v5  ;;  %6203 = vmatprep.subr.bf16.mxu0 %v6580_v11  ;;  %vm8499_vm11 = vmmov %vm8497_vm15  ;;  %vm8506_vm15 = vnez %v8442_v40 }
 0x34d   : > { %6193 = vmatprep.mubr.msk.bf16.mxu1 %vm8496_vm12, %v4348_v6  ;;  %v4485_v42 = vsel %vm8499_vm11, %v4482_v39, %v4484_v15  ;;  %vm8501_vm8 = vmmov %vm8495_vm6 }
 0x34e   : > { %v4356_v21 = vsel %vm8501_vm8, %v4351_v7, %v4355_v63  ;;  %vm8502_vm6 = vmmov %vm8498_vm9  ;;  %vm8510_vm8 = vnez %v8432_v60 }
 0x34f   : > { %6204 = vmatpush3.bf16.msra.mxu0 %v6580_v11  ;;  %vm8503_vm12 = vmmov %vm8499_vm11  ;;  %vm8508_vm11 = vnez %v8430_v14  ;;  %v5589_v14 = vld [vmem:[%s8362_s8] ss:$0 sm:$0xff] }
 0x350   : > { %v4487_v62 = vsel %vm8503_vm12, %v4484_v15, %v4486_v36  ;;  %vm8504_vm4 = vmmov %vm8502_vm6  ;;  %vm8512_vm12 = vnez %v8448_v30 }
 0x352   : > { %6206 = vmatmul.mubr.msk.bf16.vlgmr.msra.gmra.mrb[64].mxu0 %vm8498_vm9, %v4483_v54  ;;  %vm8507_vm9 = vnez %v8428_v37 }
 0x353   : > { %6209 = vmatprep.mubr.msk.bf16.mxu0 %vm8500_vm14, %v4485_v42  ;;  %vm8509_vm14 = vnez %v8444_v41 }
 0x354   : > { %6194 = vmatmul.mubr.msk.bf16.gmra.mrb[60].mxu1 %vm8502_vm6, %v4356_v21  ;;  %vm8511_vm6 = vnez %v8446_v48 }
 0x35a   : > { %6210 = vmatmul.mubr.msk.bf16.gmra.mrb[68].mxu0 %vm8504_vm4, %v4487_v62  ;;  %vm8505_vm4 = vnez %v8426_v55 }
 0x3de   : > { %v6079_v23 = vpop.f32.mrb[32].mxu0 }
 0x3df   : > { %v3317_v56 = vpop.f32.mrb[33].mxu0  ;;  %v3350_v44 = vsel %vm7568_vm2, %v6079_v23, 0.0 }
 0x3e0   : > { %v6080_v57 = vpop.f32.mrb[34].mxu0  ;;  %v3348_v32 = vsel %vm7577_vm5, %v3317_v56, 0.0 }
 0x3e1   : > { %v3320_v53 = vpop.f32.mrb[35].mxu0  ;;  %v3351_v31 = vsel %vm7586_vm1, %v6080_v57, 0.0 }
 0x3e2   : > { %v3349_v20 = vsel %vm7599_vm3, %v3320_v53, 0.0 }
 0x3ed   : > { %v6083_v18 = vpop.f32.mrb[36].mxu0 }
 0x3ee   : > { %v3333_v61 = vpop.f32.mrb[37].mxu0  ;;  %v3354_v2 = vsel %vm8505_vm4, %v6083_v18, 0.0 }
 0x3ef   : > { %v6084_v38 = vpop.f32.mrb[38].mxu0  ;;  %v3352_v34 = vsel %vm8507_vm9, %v3333_v61, 0.0 }
 0x3f0   : > { %v3336_v51 = vpop.f32.mrb[39].mxu0  ;;  %v3355_v11 = vsel %vm8508_vm11, %v6084_v38, 0.0 }
 0x3f1   : > { %v3353_v52 = vsel %vm8510_vm8, %v3336_v51, 0.0 }
 0x3f5   : > { %v6111_v35 = vpop.f32.mrb[40].mxu0 }
 0x3f6   : > { %v3675_v59 = vsel %vm7695_vm13, %v6111_v35, 0.0  ;;  %v3642_v9 = vpop.f32.mrb[41].mxu0 }
 0x3f7   : > { %v6297_v22 = vadd.f32 %v3675_v59, %v3350_v44  ;;  %v3673_v13 = vsel %vm7701_vm10, %v3642_v9, 0.0  ;;  %v6112_v46 = vpop.f32.mrb[42].mxu0 }
 0x3f8   : > { %v6302_v50 = vadd.f32 %v3673_v13, %v3348_v32  ;;  %v3676_v4 = vsel %vm7707_vm7, %v6112_v46, 0.0  ;;  %v3645_v49 = vpop.f32.mrb[43].mxu0 }
 0x3f9   : > { %v6307_v19 = vadd.f32 %v3676_v4, %v3351_v31  ;;  %v3674_v0 = vsel %vm7715_vm0, %v3645_v49, 0.0 }
 0x3fa   : > { %v6312_v58 = vadd.f32 %v3674_v0, %v3349_v20 }
 0x3fd   : > { %v6115_v12 = vpop.f32.mrb[44].mxu0 }
 0x3fe   : > { %v3679_v10 = vsel %vm8506_vm15, %v6115_v12, 0.0  ;;  %v3658_v33 = vpop.f32.mrb[45].mxu0 }
 0x3ff   : > { %v6317_v16 = vadd.f32 %v3679_v10, %v3354_v2  ;;  %v3677_v28 = vsel %vm8509_vm14, %v3658_v33, 0.0  ;;  %v6116_v24 = vpop.f32.mrb[46].mxu0  ;;  %v6127_v5 = vpop.f32.mrb[64].mxu1 }
 0x400   : > { %v6322_v6 = vadd.f32 %v3677_v28, %v3352_v34  ;;  %v3680_v39 = vsel %vm8511_vm6, %v6116_v24, 0.0  ;;  %v3661_v45 = vpop.f32.mrb[47].mxu0  ;;  %v3808_v15 = vsel %vm7568_vm2, %v6127_v5, 0.0  ;;  %v3775_v7 = vpop.f32.mrb[65].mxu1 }
 0x401   : > { %v6327_v63 = vadd.f32 %v3680_v39, %v3355_v11  ;;  %v3678_v54 = vsel %vm8512_vm12, %v3661_v45, 0.0  ;;  %v6298_v42 = vadd.f32 %v6297_v22, %v3808_v15  ;;  %v3806_v21 = vsel %vm7577_vm5, %v3775_v7, 0.0  ;;  %v6128_v36 = vpop.f32.mrb[66].mxu1 }
 0x402   : > { %v6332_v62 = vadd.f32 %v3678_v54, %v3353_v52  ;;  %v6303_v23 = vadd.f32 %v6302_v50, %v3806_v21  ;;  %v3809_v56 = vsel %vm7586_vm1, %v6128_v36, 0.0  ;;  %v3778_v57 = vpop.f32.mrb[67].mxu1 }
 0x403   : > { %v6308_v53 = vadd.f32 %v6307_v19, %v3809_v56  ;;  %v3807_v18 = vsel %vm7599_vm3, %v3778_v57, 0.0 }
 0x404   : > { %v6313_v61 = vadd.f32 %v6312_v58, %v3807_v18 }
 0x405   : > { %v6159_v38 = vpop.f32.mrb[48].mxu0 }
 0x406   : > { %v4133_v51 = vsel %vm7695_vm13, %v6159_v38, 0.0  ;;  %v4100_v35 = vpop.f32.mrb[49].mxu0 }
 0x407   : > { %v6299_v44 = vadd.f32 %v6298_v42, %v4133_v51  ;;  %v4131_v59 = vsel %vm7701_vm10, %v4100_v35, 0.0  ;;  %v6160_v9 = vpop.f32.mrb[50].mxu0  ;;  %v6131_v32 = vpop.f32.mrb[68].mxu1 }
 0x408   : > { %v6304_v22 = vadd.f32 %v6303_v23, %v4131_v59  ;;  %v4134_v13 = vsel %vm7707_vm7, %v6160_v9, 0.0  ;;  %v3812_v46 = vsel %vm8505_vm4, %v6131_v32, 0.0  ;;  %v4103_v31 = vpop.f32.mrb[51].mxu0  ;;  %v3791_v50 = vpop.f32.mrb[69].mxu1 }
 0x409   : > { %v6309_v4 = vadd.f32 %v6308_v53, %v4134_v13  ;;  %v6318_v49 = vadd.f32 %v6317_v16, %v3812_v46  ;;  %v4132_v20 = vsel %vm7715_vm0, %v4103_v31, 0.0  ;;  %v3810_v19 = vsel %vm8507_vm9, %v3791_v50, 0.0  ;;  %v6132_v0 = vpop.f32.mrb[70].mxu1 }
 0x40a   : > { %v6314_v58 = vadd.f32 %v6313_v61, %v4132_v20  ;;  %v6323_v12 = vadd.f32 %v6322_v6, %v3810_v19  ;;  %v3813_v2 = vsel %vm8508_vm11, %v6132_v0, 0.0  ;;  %v3794_v10 = vpop.f32.mrb[71].mxu1 }
 0x40b   : > { %v6328_v33 = vadd.f32 %v6327_v63, %v3813_v2  ;;  %v3811_v34 = vsel %vm8510_vm8, %v3794_v10, 0.0 }
 0x40c   : > { %v6333_v11 = vadd.f32 %v6332_v62, %v3811_v34 }
 0x40d   : > { %v6163_v28 = vpop.f32.mrb[52].mxu0 }
 0x40e   : > { %v4137_v16 = vsel %vm8506_vm15, %v6163_v28, 0.0  ;;  %v4116_v24 = vpop.f32.mrb[53].mxu0 }
 0x40f   : > { %v6319_v5 = vadd.f32 %v6318_v49, %v4137_v16  ;;  %v4135_v52 = vsel %vm8509_vm14, %v4116_v24, 0.0  ;;  %v6164_v39 = vpop.f32.mrb[54].mxu0 }
 0x410   : > { %v6324_v6 = vadd.f32 %v6323_v12, %v4135_v52  ;;  %v4138_v45 = vsel %vm8511_vm6, %v6164_v39, 0.0  ;;  %v4119_v15 = vpop.f32.mrb[55].mxu0 }
 0x411   : > { %v6329_v7 = vadd.f32 %v6328_v33, %v4138_v45  ;;  %v4136_v63 = vsel %vm8512_vm12, %v4119_v15, 0.0 }
 0x412   : > { %v6334_v54 = vadd.f32 %v6333_v11, %v4136_v63  ;;  %v5590_v63 = vld [vmem:[%s8363_s9] ss:$0 sm:$0xff] }
 0x415   : > { %v6175_v42 = vpop.f32.mrb[56].mxu0 }
 0x416   : > { %v4266_v21 = vsel %vm7568_vm2, %v6175_v42, 0.0  ;;  %v4233_v36 = vpop.f32.mrb[57].mxu0  ;;  %vm4766_vm2 = vcmask 1041409  }
 0x417   : > { %v6300_v62 = vadd.f32 %v6299_v44, %v4266_v21  ;;  %v4264_v23 = vsel %vm7577_vm5, %v4233_v36, 0.0  ;;  %v6176_v56 = vpop.f32.mrb[58].mxu0  ;;  %vm4768_vm5 = vcmask 1042434  }
 0x418   : > { %v6305_v57 = vadd.f32 %v6304_v22, %v4264_v23  ;;  %v4267_v53 = vsel %vm7586_vm1, %v6176_v56, 0.0  ;;  %v4236_v18 = vpop.f32.mrb[59].mxu0  ;;  %vm4770_vm1 = vcmask 1043459  }
 0x419   : > { %v6310_v61 = vadd.f32 %v6309_v4, %v4267_v53  ;;  %v4265_v38 = vsel %vm7599_vm3, %v4236_v18, 0.0  ;;  %vm4772_vm3 = vcmask 1044484  }
 0x41a   : > { %v6315_v51 = vadd.f32 %v6314_v58, %v4265_v38 }
 0x41d   : > { %v6179_v35 = vpop.f32.mrb[60].mxu0 }
 0x41e   : > { %v4270_v25 = vsel %vm8505_vm4, %v6179_v35, 0.0  ;;  %v4249_v59 = vpop.f32.mrb[61].mxu0  ;;  %vm4776_vm4 = vcmask 1046534  }
 0x41f   : > { %v6320_v44 = vadd.f32 %v6319_v5, %v4270_v25  ;;  %v4268_v29 = vsel %vm8507_vm9, %v4249_v59, 0.0  ;;  %v6180_v9 = vpop.f32.mrb[62].mxu0  ;;  %v6191_v32 = vpop.f32.mrb[56].mxu1  ;;  %vm4781_vm9 = vcmask 64512  }
 0x420   : > { %v6325_v22 = vadd.f32 %v6324_v6, %v4268_v29  ;;  %v4271_v27 = vsel %vm8508_vm11, %v6180_v9, 0.0  ;;  %v4252_v13 = vpop.f32.mrb[63].mxu0  ;;  %v6301_v46 = vadd.f32 %v6300_v62, %v6191_v32  ;;  %v4427_v17 = vpop.f32.mrb[57].mxu1  ;;  %vm4992_vm11 = vcmask 916480  }
 0x421   : > { %v6330_v31 = vadd.f32 %v6329_v7, %v4271_v27  ;;  %v4269_v50 = vsel %vm8510_vm8, %v4252_v13, 0.0  ;;  %v6306_v55 = vadd.f32 %v6305_v57, %v4427_v17  ;;  %v6192_v4 = vpop.f32.mrb[58].mxu1 }
 0x422   : > { %v6335_v49 = vadd.f32 %v6334_v54, %v4269_v50  ;;  %v6311_v20 = vadd.f32 %v6310_v61, %v6192_v4  ;;  %v4430_v19 = vpop.f32.mrb[59].mxu1 }
 0x423   : > { %v6316_v37 = vadd.f32 %v6315_v51, %v4430_v19 }
 0x425   : > { %v6207_v0 = vpop.f32.mrb[64].mxu0 }
 0x426   : > { %v4591_v58 = vsel %vm7695_vm13, %v6207_v0, 0.0  ;;  %v4558_v12 = vpop.f32.mrb[65].mxu0  ;;  %vm4774_vm13 = vcmask 1045509  }
 0x427   : > { %v4599_v2 = vadd.f32 %v6301_v46, %v4591_v58  ;;  %v4589_v60 = vsel %vm7701_vm10, %v4558_v12, 0.0  ;;  %v6208_v10 = vpop.f32.mrb[66].mxu0  ;;  %v6195_v33 = vpop.f32.mrb[60].mxu1  ;;  %vm6657_vm10 = vmmov 0  }
 0x428   : > { %v4597_v34 = vadd.f32 %v6306_v55, %v4589_v60  ;;  %v4592_v11 = vsel %vm7707_vm7, %v6208_v10, 0.0  ;;  %v6321_v28 = vadd.f32 %v6320_v44, %v6195_v33  ;;  %v4561_v16 = vpop.f32.mrb[67].mxu0  ;;  %v4443_v24 = vpop.f32.mrb[61].mxu1  ;;  %vm4643_vm7 = vcmask 261120   ;;  %v5591_v60 = vld [vmem:[#allocation4] ss:$0 sm:$0xff] }
 0x429   : > { %v4614_v47 = vadd.f32 %v5589_v14, %v4599_v2  ;;  %v4600_v5 = vadd.f32 %v6311_v20, %v4592_v11  ;;  %v4590_v52 = vsel %vm7715_vm0, %v4561_v16, 0.0  ;;  %v6326_v39 = vadd.f32 %v6325_v22, %v4443_v24  ;;  %v6196_v6 = vpop.f32.mrb[62].mxu1 }
 0x42a   : > { %v4612_v45 = vadd.f32 %v5589_v14, %v4597_v34  ;;  %v4598_v15 = vadd.f32 %v6316_v37, %v4590_v52  ;;  %v6331_v43 = vadd.f32 %v6330_v31, %v6196_v6  ;;  %v4446_v7 = vpop.f32.mrb[63].mxu1  ;;  %vm4785_vm0 = vcmask 1043456  }
 0x42b   : > { %v4622_v26 = vmax.f32 %v4614_v47, 0.0  ;;  %v4615_v54 = vadd.f32 %v5589_v14, %v4600_v5  ;;  %v6336_v42 = vadd.f32 %v6335_v49, %v4446_v7 }
 0x42c   : > { %v4620_v21 = vmax.f32 %v4612_v45, 0.0  ;;  %v4613_v36 = vadd.f32 %v5589_v14, %v4598_v15 }
 0x42d   : > { %v6211_v62 = vpop.f32.mrb[68].mxu0  ;;  %v4637_v23 = vmul.f32 %v5590_v63, %v4622_v26  ;;  %v4623_v3 = vmax.f32 %v4615_v54, 0.0 }
 0x42e   : > { %v4621_v56 = vmax.f32 %v4613_v36, 0.0  ;;  %v4595_v57 = vsel %vm8506_vm15, %v6211_v62, 0.0  ;;  %v4574_v53 = vpop.f32.mrb[69].mxu0  ;;  %v4635_v35 = vmul.f32 %v5590_v63, %v4620_v21  ;;  %vm4778_vm15 = vcmask 1047559  }
 0x42f   : > { %v4603_v18 = vadd.f32 %v6321_v28, %v4595_v57  ;;  %v4593_v61 = vsel %vm8509_vm14, %v4574_v53, 0.0  ;;  %v6212_v38 = vpop.f32.mrb[70].mxu0  ;;  %v4650_v51 = vsel %vm4643_vm7, %v4637_v23, 0.0  ;;  %v4638_v17 = vmul.f32 %v5590_v63, %v4623_v3 }
 0x430   : > { %v4601_v25 = vadd.f32 %v6326_v39, %v4593_v61  ;;  %v4596_v59 = vsel %vm8511_vm6, %v6212_v38, 0.0  ;;  %4651 = vadd.xlane.f32.xlu0 %v4650_v51  ;;  %v4577_v44 = vpop.f32.mrb[71].mxu0  ;;  %v4636_v29 = vmul.f32 %v5590_v63, %v4621_v56  ;;  %v4644_v46 = vsel %vm4643_vm7, %v4635_v35, 0.0  ;;  %v4691_v51 = vld [vmem:[%s8366_s12] sm:$0xf] }
 0x431   : > { %v4618_v9 = vadd.f32 %v5589_v14, %v4603_v18  ;;  %v4604_v32 = vadd.f32 %v6331_v43, %v4596_v59  ;;  %v4594_v40 = vsel %vm8512_vm12, %v4577_v44, 0.0  ;;  %v4653_v20 = vsel %vm4643_vm7, %v4638_v17, 0.0 }
 0x432   : > { %v4616_v22 = vadd.f32 %v5589_v14, %v4601_v25  ;;  %v4602_v27 = vadd.f32 %v6336_v42, %v4594_v40  ;;  %v4647_v41 = vsel %vm4643_vm7, %v4636_v29, 0.0  ;;  %v6656_v35 = vmov 0.0  }
 0x433   : > { %v4619_v13 = vadd.f32 %v5589_v14, %v4604_v32  ;;  %4648 = vadd.xlane.f32.xlu1 %v4647_v41  ;;  %v4626_v31 = vmax.f32 %v4618_v9, 0.0  ;;  %6213 = vmatprep.subr.bf16.mxu1 %v6656_v35  ;;  %v4787_v25 = vsel %vm4785_vm0, %v4691_v51, 0  ;;  %v4733_v29 = vand.u32 127, %v1377_v8 }
 0x434   : > { %v4624_v48 = vmax.f32 %v4616_v22, 0.0  ;;  %v4617_v50 = vadd.f32 %v5589_v14, %v4602_v27  ;;  %4645 = vadd.xlane.f32.xlu0 %v4644_v46  ;;  %6215 = vmatprep.mubr.msk.bf16.mxu1 %vm6657_vm10, %v6656_v35 }
 0x435   : > { %v4627_v49 = vmax.f32 %v4619_v13, 0.0  ;;  %v4641_v37 = vmul.f32 %v5590_v63, %v4626_v31  ;;  %6214 = vmatpush3.bf16.msra.mxu1 %v4787_v25  ;;  %6219 = vmatprep.subr.bf16.mxu0 %v6656_v35  ;;  %v4736_v32 = vsub.s32 %v4733_v29, %v7539_v1 }
 0x436   : > { %v4625_v55 = vmax.f32 %v4617_v50, 0.0  ;;  %v4639_v4 = vmul.f32 %v5590_v63, %v4624_v48  ;;  %6221 = vmatprep.mubr.msk.bf16.mxu0 %vm6657_vm10, %v6656_v35 }
 0x437   : > { %v4642_v58 = vmul.f32 %v5590_v63, %v4627_v49  ;;  %v4662_v12 = vsel %vm4643_vm7, %v4641_v37, 0.0 }
 0x438   : > { %4654 = vadd.xlane.f32.xlu0 %v4653_v20  ;;  %v4656_v30 = vsel %vm4643_vm7, %v4639_v4, 0.0  ;;  %v4640_v19 = vmul.f32 %v5590_v63, %v4625_v55 }
 0x439   : > { %4657 = vadd.xlane.f32.xlu1 %v4656_v30  ;;  %v4665_v14 = vsel %vm4643_vm7, %v4642_v58, 0.0 }
 0x43a   : > { %v4659_v0 = vsel %vm4643_vm7, %v4640_v19, 0.0 }
 0x43c   : > { %4660 = vadd.xlane.f32.xlu0 %v4659_v0 }
 0x43d   : > { %4663 = vadd.xlane.f32.xlu1 %v4662_v12 }
 0x440   : > { %4666 = vadd.xlane.f32.xlu0 %v4665_v14 }
 0x4bd   : > { %v4652_v2 = vpop.xlane.xlu0 %4651 }
 0x4be   : > { %v4677_v11 = vadd.f32 %v5591_v60, %v4652_v2 }
 0x4c0   : > { %v4649_v10 = vpop.xlane.xlu1 %4648  ;;  %v4685_v52 = vpack.c.bf16 %v4677_v11, %v4677_v11  ;;  %v6583_v11 = vld [vmem:[%s8365_s11 + $0x8] sm:$0xff]  }
 0x4c1   : > { %v4676_v33 = vadd.f32 %v5591_v60, %v4649_v10  ;;  %v4646_v34 = vpop.xlane.xlu0 %4645 }
 0x4c2   : > { %v4675_v28 = vadd.f32 %v5591_v60, %v4646_v34  ;;  %v4702_v15 = vunpack.c.l.b16 %v4685_v52  ;;  %v6582_v34 = vld [vmem:[%s8365_s11] sm:$0xff]  }
 0x4c3   : > { %v4684_v16 = vpack.c.bf16 %v4676_v33, %v4676_v33 }
 0x4c4   : > { %v4683_v24 = vpack.c.bf16 %v4675_v28, %v4675_v28  ;;  %v6584_v28 = vld [vmem:[%s8365_s11 + $0x10] sm:$0xff]  }
 0x4c5   : > { %v4701_v47 = vunpack.c.l.b16 %v4684_v16  ;;  %v4655_v5 = vpop.xlane.xlu0 %4654  ;;  %v6585_v16 = vld [vmem:[%s8365_s11 + $0x18] sm:$0xff]  }
 0x4c6   : > { %v4700_v39 = vunpack.c.l.b16 %v4683_v24  ;;  %v4678_v6 = vadd.f32 %v5591_v60, %v4655_v5  ;;  %v4658_v45 = vpop.xlane.xlu1 %4657  ;;  %v6586_v24 = vld [vmem:[%s8365_s11 + $0x20] sm:$0xff]   ;;  %v6588_v5 = vld [vmem:[%s8365_s11 + $0x30] sm:$0xff]  }
 0x4c7   : > { %4712 = vperm.xlu0 %6410, %v4701_v47   ;;  %v4679_v42 = vadd.f32 %v5591_v60, %v4658_v45  ;;  %v6587_v47 = vld [vmem:[%s8365_s11 + $0x28] sm:$0xff]  }
 0x4c8   : > { %4709 = vperm.xlu1 %6409, %v4700_v39   ;;  %v4686_v43 = vpack.c.bf16 %v4678_v6, %v4678_v6 }
 0x4c9   : > { %v4661_v26 = vpop.xlane.xlu0 %4660  ;;  %v4687_v36 = vpack.c.bf16 %v4679_v42, %v4679_v42 }
 0x4ca   : > { %v4664_v7 = vpop.xlane.xlu1 %4663  ;;  %v4703_v54 = vunpack.c.l.b16 %v4686_v43  ;;  %v4680_v62 = vadd.f32 %v5591_v60, %v4661_v26 }
 0x4cb   : > { %v4681_v63 = vadd.f32 %v5591_v60, %v4664_v7  ;;  %v4704_v56 = vunpack.c.l.b16 %v4687_v36 }
 0x4cc   : > { %4715 = vperm.xlu1 %6409, %v4702_v15   ;;  %v4688_v57 = vpack.c.bf16 %v4680_v62, %v4680_v62 }
 0x4cd   : > { %v4689_v21 = vpack.c.bf16 %v4681_v63, %v4681_v63  ;;  %v4667_v3 = vpop.xlane.xlu0 %4666 }
 0x4ce   : > { %v4682_v53 = vadd.f32 %v5591_v60, %v4667_v3  ;;  %v4705_v18 = vunpack.c.l.b16 %v4688_v57 }
 0x4cf   : > { %v4706_v23 = vunpack.c.l.b16 %v4689_v21 }
 0x4d0   : > { %4718 = vperm.xlu1 %6409, %v4703_v54   ;;  %v4690_v61 = vpack.c.bf16 %v4682_v53, %v4682_v53 }
 0x4d2   : > { %v4707_v38 = vunpack.c.l.b16 %v4690_v61 }
 0x4d4   : > { %4727 = vperm.xlu1 %6409, %v4706_v23  }
 0x4d8   : > { %4721 = vperm.xlu1 %6409, %v4704_v56  }
 0x4dc   : > { %4724 = vperm.xlu1 %6409, %v4705_v18  }
 0x4e0   : > { %4730 = vperm.xlu1 %6409, %v4707_v38  }
 0x546   : > { %v4713_v40 = vpop.permute.xlu0 %4712 }
 0x547   : > { %v4710_v59 = vpop.permute.xlu1 %4709  ;;  %v4741_v27 = vrot.slane %v4713_v40, %v4736_v32 }
 0x548   : > { %v4737_v41 = vrot.slane %v4710_v59, %v4736_v32 }
 0x54a   : > { %v4767_v48 = vsel %vm4766_vm2, %v4741_v27, %v4737_v41 }
 0x54b   : > { %v4716_v44 = vpop.permute.xlu1 %4715 }
 0x54c   : > { %v4745_v13 = vrot.slane %v4716_v44, %v4736_v32 }
 0x54e   : > { %v4769_v50 = vsel %vm4768_vm5, %v4745_v13, %v4767_v48 }
 0x54f   : > { %v4719_v9 = vpop.permute.xlu1 %4718 }
 0x550   : > { %v4749_v17 = vrot.slane %v4719_v9, %v4736_v32 }
 0x552   : > { %v4771_v8 = vsel %vm4770_vm1, %v4749_v17, %v4769_v50 }
 0x553   : > { %v4728_v22 = vpop.permute.xlu1 %4727 }
 0x554   : > { %v4761_v20 = vrot.slane %v4728_v22, %v4736_v32 }
 0x557   : > { %v4722_v46 = vpop.permute.xlu1 %4721 }
 0x558   : > { %v4753_v31 = vrot.slane %v4722_v46, %v4736_v32 }
 0x55a   : > { %v4773_v49 = vsel %vm4772_vm3, %v4753_v31, %v4771_v8 }
 0x55b   : > { %v4725_v55 = vpop.permute.xlu1 %4724 }
 0x55c   : > { %v4757_v4 = vrot.slane %v4725_v55, %v4736_v32 }
 0x55e   : > { %v4775_v1 = vsel %vm4774_vm13, %v4757_v4, %v4773_v49 }
 0x55f   : > { %v4731_v30 = vpop.permute.xlu1 %4730  ;;  %v4777_v37 = vsel %vm4776_vm4, %v4761_v20, %v4775_v1 }
 0x560   : > { %v4765_v19 = vrot.slane %v4731_v30, %v4736_v32 }
 0x562   : > { %v4779_v0 = vsel %vm4778_vm15, %v4765_v19, %v4777_v37 }
 0x563   : > { %v4780_v58 = vpack.c.b16 %v4779_v0, %v4779_v0 }
 0x565   : > { %6216 = vmatmul.mubr.msk.bf16.vlgmr.msra.gmra.mrb[72].mxu1 %vm4781_vm9, %v4780_v58 }
 0x638   : > { %v4823_v12 = vpop.f32.mrb[72].mxu1 }
 0x639   : > { %v4843_v14 = vpack.c.bf16 %v4823_v12, %v4823_v12  ;;  %v6217_v2 = vpop.f32.mrb[73].mxu1 }
 0x63a   : > { %v4826_v60 = vpop.f32.mrb[74].mxu1 }
 0x63b   : > { %v4901_v10 = vsel %vm4785_vm0, %v4843_v14, 0  ;;  %v6218_v33 = vpop.f32.mrb[75].mxu1 }
 0x63c   : > { %6220 = vmatpush3.bf16.msra.mxu0 %v4901_v10 }
 0x63f   : > { %6222 = vmatmul.mubr.msk.bf16.vlgmr.msra.gmra.mrb[72].mxu0 %vm4781_vm9, %v6582_v34 }
 0x640   : > { %6225 = vmatprep.mubr.msk.bf16.mxu0 %vm6657_vm10, %v6656_v35 }
 0x647   : > { %6226 = vmatmul.mubr.msk.bf16.gmra.mrb[76].mxu0 %vm4781_vm9, %v6583_v11 }
 0x648   : > { %6229 = vmatprep.mubr.msk.bf16.mxu0 %vm6657_vm10, %v6656_v35 }
 0x64f   : > { %6230 = vmatmul.mubr.msk.bf16.gmra.mrb[80].mxu0 %vm4781_vm9, %v6584_v28 }
 0x650   : > { %6233 = vmatprep.mubr.msk.bf16.mxu0 %vm6657_vm10, %v6656_v35 }
 0x657   : > { %6234 = vmatmul.mubr.msk.bf16.gmra.mrb[84].mxu0 %vm4781_vm9, %v6585_v16 }
 0x658   : > { %6237 = vmatprep.mubr.msk.bf16.mxu0 %vm6657_vm10, %v6656_v35 }
 0x65f   : > { %6238 = vmatmul.mubr.msk.bf16.gmra.mrb[88].mxu0 %vm4781_vm9, %v6586_v24 }
 0x660   : > { %6241 = vmatprep.mubr.msk.bf16.mxu0 %vm6657_vm10, %v6656_v35 }
 0x667   : > { %6242 = vmatmul.mubr.msk.bf16.gmra.mrb[92].mxu0 %vm4781_vm9, %v6587_v47 }
 0x668   : > { %6245 = vmatprep.mubr.msk.bf16.mxu0 %vm6657_vm10, %v6656_v35 }
 0x66f   : > { %6246 = vmatmul.mubr.msk.bf16.gmra.mrb[96].mxu0 %vm4781_vm9, %v6588_v5 }
 0x712   : > { %v4937_v52 = vpop.f32.mrb[72].mxu0 }
 0x713   : > { %4993 = vst.msk [vmem:[%s8272_s16] sm:$0xff] %vm4992_vm11, %v4937_v52  ;;  %v6223_v39 = vpop.f32.mrb[73].mxu0 }
 0x714   : > { %v4940_v6 = vpop.f32.mrb[74].mxu0 }
 0x715   : > { %4994 = vst.msk [vmem:[%s8272_s16 + $0x8] sm:$0xff] %vm4992_vm11, %v4940_v6  ;;  %v6224_v45 = vpop.f32.mrb[75].mxu0 }
 0x71a   : > { %v4945_v15 = vpop.f32.mrb[76].mxu0 }
 0x71b   : > { %4995 = vst.msk [vmem:[%s8272_s16 + $0x10] sm:$0xff] %vm4992_vm11, %v4945_v15  ;;  %v6227_v43 = vpop.f32.mrb[77].mxu0 }
 0x71c   : > { %v4948_v7 = vpop.f32.mrb[78].mxu0 }
 0x71d   : > { %4996 = vst.msk [vmem:[%s8272_s16 + $0x18] sm:$0xff] %vm4992_vm11, %v4948_v7  ;;  %v6228_v63 = vpop.f32.mrb[79].mxu0 }
 0x722   : > { %v4953_v26 = vpop.f32.mrb[80].mxu0 }
 0x723   : > { %4997 = vst.msk [vmem:[%s8272_s16 + $0x20] sm:$0xff] %vm4992_vm11, %v4953_v26  ;;  %v6231_v54 = vpop.f32.mrb[81].mxu0 }
 0x724   : > { %v4956_v42 = vpop.f32.mrb[82].mxu0 }
 0x725   : > { %4998 = vst.msk [vmem:[%s8272_s16 + $0x28] sm:$0xff] %vm4992_vm11, %v4956_v42  ;;  %v6232_v21 = vpop.f32.mrb[83].mxu0 }
 0x72a   : > { %v4961_v36 = vpop.f32.mrb[84].mxu0 }
 0x72b   : > { %4999 = vst.msk [vmem:[%s8272_s16 + $0x30] sm:$0xff] %vm4992_vm11, %v4961_v36  ;;  %v6235_v62 = vpop.f32.mrb[85].mxu0 }
 0x72c   : > { %v4964_v23 = vpop.f32.mrb[86].mxu0 }
 0x72d   : > { %5000 = vst.msk [vmem:[%s8272_s16 + $0x38] sm:$0xff] %vm4992_vm11, %v4964_v23  ;;  %v6236_v3 = vpop.f32.mrb[87].mxu0 }
 0x732   : > { %v4969_v56 = vpop.f32.mrb[88].mxu0 }
 0x733   : > { %5001 = vst.msk [vmem:[%s8272_s16 + $0x40] sm:$0xff] %vm4992_vm11, %v4969_v56  ;;  %v6239_v57 = vpop.f32.mrb[89].mxu0 }
 0x734   : > { %v4972_v53 = vpop.f32.mrb[90].mxu0 }
 0x735   : > { %5002 = vst.msk [vmem:[%s8272_s16 + $0x48] sm:$0xff] %vm4992_vm11, %v4972_v53  ;;  %v6240_v18 = vpop.f32.mrb[91].mxu0 }
 0x73a   : > { %v4977_v61 = vpop.f32.mrb[92].mxu0 }
 0x73b   : > { %5003 = vst.msk [vmem:[%s8272_s16 + $0x50] sm:$0xff] %vm4992_vm11, %v4977_v61  ;;  %v6243_v38 = vpop.f32.mrb[93].mxu0 }
 0x73c   : > { %v4980_v51 = vpop.f32.mrb[94].mxu0 }
 0x73d   : > { %5004 = vst.msk [vmem:[%s8272_s16 + $0x58] sm:$0xff] %vm4992_vm11, %v4980_v51  ;;  %v6244_v35 = vpop.f32.mrb[95].mxu0 }
 0x742   : > { %v4985_v25 = vpop.f32.mrb[96].mxu0 }
 0x743   : > { %5005 = vst.msk [vmem:[%s8272_s16 + $0x60] sm:$0xff] %vm4992_vm11, %v4985_v25  ;;  %v6247_v59 = vpop.f32.mrb[97].mxu0 }
 0x744   : > { %v4988_v44 = vpop.f32.mrb[98].mxu0 }
 0x745   : > { %5006 = vst.msk [vmem:[%s8272_s16 + $0x68] sm:$0xff] %vm4992_vm11, %v4988_v44  ;;  %v6248_v29 = vpop.f32.mrb[99].mxu0 }
 0x746   : > { %6602 = shalt.err (!%p6599_p3)
}
 0x747   : > { %s6603_s17 = scalar_lea.hbm %s8307_s18, 1792  ;;  %s6607_s25 = scalar_lea.hbm %s8367_s13, 3584 }
 0x748   : > { %p6604_p4 = scmp.ne.s32.totalorder %s8307_s18, %s6603_s17  ;;  %p6608_p9 = scmp.lt.u32.totalorder %s8307_s18, %s8367_s13 }
 0x749   : > { %p6609_p10 = scmp.lt.u32.totalorder %s6607_s25, %s6603_s17  ;;  %p6611_p12 = scmp.lt.u32.totalorder %s6603_s17, %s8307_s18 }
 0x74a   : > { %p6605_p7 = pnand %p6604_p4, %p6772_p5 }
 0x74b   : > { %p6610_p11 = por %p6609_p10, %p6608_p9 }
 0x74c   : > { %p6606_p8 = pneg %p6605_p7 }
 0x74d   : > { %p6612_p13 = por %p6611_p12, %p6610_p11 }
 0x74f   : > { %p6613_p0 = pnand %p6612_p13, %p6606_p8 }
 0x751   : > { %6616 = shalt.err (!%p6613_p0)
}
 0x752   : > { %s6659_s26 = smov 128   ;;  %s6660_s22 = smov 8  }
 0x753   : > { %6363 = dma.vmem_to_hbm [thread:$0]  (%p6772_p5), %s8300_s24, 1792, %s8307_s18, %s8313_s10, %s6659_s26, %s6659_s26, %s6660_s22  }
 0x754 PF: > { %p6369_p1 = scmp.ge.s32.totalorder %s6651_s30, 2  ;;  %s5036_s14 = sand.u32 1, %s6639_s27  }
 0x755   : > { %s5037_s17 = scalar_lea.sflag [#allocation6], %s5036_s14 }
 0x756   : > { %p6366_p2 = pnand %p6369_p1, %p6776_p6 }
 0x758   : > { %6634 = dma.done.wait (!%p6366_p2), %s5037_s17, 1792  }
 0x759   : > { %6636 = vsyncadd (!%p6366_p2), %s5037_s17, 4294965504  ;;  %s8513_s16 = sld [smem:[#allocation8_spill]]  ;;  %s8514_s29 = sld [smem:[#allocation9_spill]] }
 0x75a   : > { %p25_p3 = scmp.ge.s32.totalorder %s6759_s15, 4   ;;  %s8515_s27 = smov %s6643_s28 }
 0x75b   : > { %s8517_s30 = smov %s6759_s15 }
 0x75c   :  { %27 = sbr.rel (!%p25_p3) target bundleno = 6 (0x6), region = 133 }
 0x75f   : > { %s8516_s28 = smov %s8513_s16 }
 0x763   :  { %5042 = vsyncpa [#allocation6], 1 }
 0x764   :  { %5044 = vsyncpa [#allocation6 + $0x1], 1 }

</bundles_post_ra>
